<compile_context>
chip_gen: v5e
topology: v5e:2x2
jax: 0.10.0
libtpu: 0.0.40
codegen_flags: <defaults>
</compile_context>

<pallas_src>
import functools

import numpy as np

import jax
import jax.numpy as jnp
from jax import lax
from jax.experimental import pallas as pl
from jax.experimental.pallas import tpu as pltpu

# ----------------------------- configuration -------------------------------
B         = 2      # batch
SEQ_LEN   = 8      # L  (time steps)
N_VARS    = 8      # N  (variates / channels); power of two (used as >> shift)
PRED_LEN  = 4
D_MODEL   = 32
N_HEADS   = 4
D_FF      = 64
E_LAYERS  = 2
EPS_NORM  = 1e-5   # series-normalization eps (torch.sqrt(var + 1e-05))
EPS_LN    = 1e-5   # nn.LayerNorm default eps

FC_H1     = 256
FC_H2     = 92
FC_H2_PAD = 128    # zero-padded fc hidden (lane-dense, exact)

D_HEAD = D_MODEL // N_HEADS
BN = B * N_VARS
NEG_INF = -1e30

assert (N_VARS & (N_VARS - 1)) == 0, "N_VARS must be a power of two"


# ------------------------ kernel-only math helpers --------------------------
def _ln(z, gamma, beta):
    mu = jnp.mean(z, axis=-1, keepdims=True)
    zc = z - mu
    var = jnp.mean(zc * zc, axis=-1, keepdims=True)
    return zc * lax.rsqrt(var + EPS_LN) * gamma + beta


def _softmax(s):
    m = jnp.max(s, axis=-1, keepdims=True)
    e = jnp.exp(s - m)
    return e * pl.reciprocal(jnp.sum(e, axis=-1, keepdims=True), approx=True)


def _mish(x):
    # mish(x) = x * tanh(softplus(x)) = x * ((1+e^x)^2 - 1) / ((1+e^x)^2 + 1)
    t = jnp.exp(jnp.minimum(x, 20.0))          # clamp: for x>=20, mish(x)==x
    u = (1.0 + t) * (1.0 + t)
    return x * (u - 1.0) * pl.reciprocal(u + 1.0, approx=True)


def _take(ref, meta, name):
    off, rows = meta[name]
    return ref[off:off + rows, :]


# ------------------------------ Pallas kernel -------------------------------
def itransformer_kernel(x_ref, a32_ref, a64_ref, a256_ref, a128_ref, a4_ref,
                        out_ref, *, m32, m64, m256, m128, m4):
    f32 = jnp.float32
    w32 = functools.partial(_take, a32_ref, m32)
    w64 = functools.partial(_take, a64_ref, m64)
    w256 = functools.partial(_take, a256_ref, m256)
    w128 = functools.partial(_take, a128_ref, m128)
    w4 = functools.partial(_take, a4_ref, m4)

    # --- stack both batches as [B*N, L] rows (variates become tokens) -------
    xt = jnp.concatenate([x_ref[b].T for b in range(B)], axis=0)     # [BN, L]

    # --- series normalization over time (per batch & variate) ---------------
    mean = jnp.mean(xt, axis=-1, keepdims=True)                      # [BN, 1]
    xc = xt - mean
    var = jnp.mean(xc * xc, axis=-1, keepdims=True)                  # unbiased=False
    stdev = jnp.sqrt(var + EPS_NORM)
    xn = xc * lax.rsqrt(var + EPS_NORM)                              # [BN, L]

    # --- inverted embedding: Linear over the time dimension -----------------
    h = jnp.dot(xn, w32("emb_w"), preferred_element_type=f32) + w32("emb_b")

    # block-diagonal mask: tokens only attend within their own batch element
    shift = N_VARS.bit_length() - 1
    r = lax.broadcasted_iota(jnp.int32, (BN, BN), 0)
    c = lax.broadcasted_iota(jnp.int32, (BN, BN), 1)
    bmask = jnp.where((r >> shift) == (c >> shift), 0.0, NEG_INF).astype(f32)

    scale = 1.0 / float(D_HEAD) ** 0.5

    # --- encoder layers ------------------------------------------------------
    for l in range(E_LAYERS):
        q = jnp.dot(h, w32(f"wq{l}"), preferred_element_type=f32) + w32(f"bq{l}")
        k = jnp.dot(h, w32(f"wk{l}"), preferred_element_type=f32) + w32(f"bk{l}")
        v = jnp.dot(h, w32(f"wv{l}"), preferred_element_type=f32) + w32(f"bv{l}")
        wo = w32(f"wo{l}")                                           # [D, D]

        attn = jnp.zeros((BN, D_MODEL), f32)
        for hh in range(N_HEADS):
            sl = slice(hh * D_HEAD, (hh + 1) * D_HEAD)
            s = lax.dot_general(q[:, sl], k[:, sl],
                                (((1,), (1,)), ((), ())),
                                preferred_element_type=f32) * scale  # [BN, BN]
            a = _softmax(s + bmask)
            oh = jnp.dot(a, v[:, sl], preferred_element_type=f32)    # [BN, dk]
            # fold the head concat into the output projection (wo row-slice
            # is 8-aligned -> cheap; no lane-axis concatenate needed).
            attn = attn + jnp.dot(oh, wo[sl, :], preferred_element_type=f32)
        attn = attn + w32(f"bo{l}")

        h = _ln(h + attn, w32(f"g1{l}"), w32(f"be1{l}"))
        y = jnp.maximum(
            jnp.dot(h, w64(f"wc1{l}"), preferred_element_type=f32) + w64(f"bc1{l}"),
            0.0)                                                     # relu
        y = jnp.dot(y, w32(f"wc2{l}"), preferred_element_type=f32) + w32(f"bc2{l}")
        h = _ln(h + y, w32(f"g2{l}"), w32(f"be2{l}"))

    # encoder final norm
    h = _ln(h, w32("gf"), w32("bef"))                                # [BN, D]

    # --- projection of concat([xn, h]) as two summed matmuls ----------------
    p = (jnp.dot(xn, w64("wp_x"), preferred_element_type=f32)
         + jnp.dot(h, w64("wp_h"), preferred_element_type=f32)
         + w64("bp"))                                                # [BN, d_ff]

    # --- fc head: Linear -> Mish -> Linear -> Mish -> Linear -----------------
    f = _mish(jnp.dot(p, w256("w1"), preferred_element_type=f32) + w256("b1"))
    f = _mish(jnp.dot(f, w128("w2"), preferred_element_type=f32) + w128("b2"))
    f = jnp.dot(f, w4("w3"), preferred_element_type=f32) + w4("b3")  # [BN, PRED]

    # --- de-normalize and write [B, PRED, N] ---------------------------------
    dec = f * stdev + mean                                           # [BN, PRED]
    for b in range(B):
        out_ref[b] = dec[b * N_VARS:(b + 1) * N_VARS, :].T           # [PRED, N]


# --------------------------- weight packing (host) ---------------------------
def _round8(n):
    return (n + 7) // 8 * 8


def _pack_group(entries):
    """entries: [(name, 2-D np array)], all with identical lane width.
    Returns (packed f32 device buffer, {name: (row_offset, rows)}).
    Row offsets are 8-aligned so in-kernel slices are aligned sublane windows."""
    width = entries[0][1].shape[1]
    meta, off = {}, 0
    for name, arr in entries:
        assert arr.ndim == 2 and arr.shape[1] == width, (name, arr.shape)
        meta[name] = (off, arr.shape[0])
        off += _round8(arr.shape[0])
    buf = np.zeros((max(off, 8), width), np.float32)
    for name, arr in entries:
        o, rows = meta[name]
        buf[o:o + rows, :] = np.asarray(arr, np.float32)
    return jnp.asarray(buf), meta


def pack_weights(p):
    q = {k: np.asarray(v, np.float32) for k, v in p.items()}

    # lane width 32 (= d_model): all D-wide matrices, biases and LayerNorms
    g32 = [("emb_w", q["emb_w"]), ("emb_b", q["emb_b"]),
           ("gf", q["gf"]), ("bef", q["bef"])]
    for l in range(E_LAYERS):
        g32 += [(f"wq{l}", q["wq"][l]), (f"bq{l}", q["bq"][l]),
                (f"wk{l}", q["wk"][l]), (f"bk{l}", q["bk"][l]),
                (f"wv{l}", q["wv"][l]), (f"bv{l}", q["bv"][l]),
                (f"wo{l}", q["wo"][l]), (f"bo{l}", q["bo"][l]),
                (f"wc2{l}", q["wc2"][l]), (f"bc2{l}", q["bc2"][l]),
                (f"g1{l}", q["g1"][l]), (f"be1{l}", q["be1"][l]),
                (f"g2{l}", q["g2"][l]), (f"be2{l}", q["be2"][l])]
    a32, m32 = _pack_group(g32)

    # lane width 64 (= d_ff): FFN up-proj, and wp split at the 8-aligned row L
    g64 = [("wp_x", q["wp"][:SEQ_LEN]), ("wp_h", q["wp"][SEQ_LEN:]),
           ("bp", q["bp"])]
    for l in range(E_LAYERS):
        g64 += [(f"wc1{l}", q["wc1"][l]), (f"bc1{l}", q["bc1"][l])]
    a64, m64 = _pack_group(g64)

    # lane width 256
    a256, m256 = _pack_group([("w1", q["w1"]), ("b1", q["b1"])])

    # lane width 128: fc hidden 92 zero-padded to 128 (exact: pads are zeros)
    w2p = np.zeros((FC_H1, FC_H2_PAD), np.float32)
    w2p[:, :FC_H2] = q["w2"]
    b2p = np.zeros((1, FC_H2_PAD), np.float32)
    b2p[:, :FC_H2] = q["b2"]
    a128, m128 = _pack_group([("w2", w2p), ("b2", b2p)])

    # lane width PRED_LEN: final projection (rows 92:128 zero-padded)
    w3p = np.zeros((FC_H2_PAD, PRED_LEN), np.float32)
    w3p[:FC_H2, :] = q["w3"]
    a4, m4 = _pack_group([("w3", w3p), ("b3", q["b3"])])

    return (a32, a64, a256, a128, a4), (m32, m64, m256, m128, m4)


# ------------------------------ parameters -----------------------------------
def make_params(key):
    def rnd(k, shape, scale=0.05):
        return (scale * jax.random.normal(k, shape)).astype(jnp.float32)

    ks = list(jax.random.split(key, 24))
    E, D, L = E_LAYERS, D_MODEL, SEQ_LEN
    p = {
        "emb_w": rnd(ks[0], (L, D)),
        "emb_b": rnd(ks[1], (1, D)),
        "wq": rnd(ks[2], (E, D, D)), "bq": rnd(ks[3], (E, 1, D)),
        "wk": rnd(ks[4], (E, D, D)), "bk": rnd(ks[5], (E, 1, D)),
        "wv": rnd(ks[6], (E, D, D)), "bv": rnd(ks[7], (E, 1, D)),
        "wo": rnd(ks[8], (E, D, D)), "bo": rnd(ks[9], (E, 1, D)),
        "wc1": rnd(ks[10], (E, D, D_FF)), "bc1": rnd(ks[11], (E, 1, D_FF)),
        "wc2": rnd(ks[12], (E, D_FF, D)), "bc2": rnd(ks[13], (E, 1, D)),
        # LayerNorm params: torch default init (gamma=1, beta=0)
        "g1": jnp.ones((E, 1, D), jnp.float32), "be1": jnp.zeros((E, 1, D), jnp.float32),
        "g2": jnp.ones((E, 1, D), jnp.float32), "be2": jnp.zeros((E, 1, D), jnp.float32),
        "gf": jnp.ones((1, D), jnp.float32),    "bef": jnp.zeros((1, D), jnp.float32),
        "wp": rnd(ks[14], (L + D, D_FF)), "bp": rnd(ks[15], (1, D_FF)),
        "w1": rnd(ks[16], (D_FF, FC_H1)), "b1": rnd(ks[17], (1, FC_H1)),
        "w2": rnd(ks[18], (FC_H1, FC_H2)), "b2": rnd(ks[19], (1, FC_H2)),
        "w3": rnd(ks[20], (FC_H2, PRED_LEN)), "b3": rnd(ks[21], (1, PRED_LEN)),
    }
    return p


# ------------------------------ wrapper ---------------------------------------
def itransformer_forward(x, packed, metas):
    m32, m64, m256, m128, m4 = metas
    kernel = functools.partial(itransformer_kernel,
                               m32=m32, m64=m64, m256=m256, m128=m128, m4=m4)
    vmem = pltpu.MemorySpace.VMEM
    return pl.pallas_call(
        kernel,
        out_shape=jax.ShapeDtypeStruct((B, PRED_LEN, N_VARS), jnp.float32),
        # No grid: single invocation, whole arrays resident in VMEM (~0.4 MiB).
        in_specs=[pl.BlockSpec(memory_space=vmem) for _ in range(1 + len(packed))],
        out_specs=pl.BlockSpec(memory_space=vmem),
    )(x, *packed)


# --------------------- pure-JAX reference (PyTorch semantics) -----------------
def _ref_mish(x):
    return x * jnp.tanh(jax.nn.softplus(x))


def reference_forward(x, p):
    mean = jnp.mean(x, axis=1, keepdims=True)                 # [B,1,N]
    xc = x - mean
    var = jnp.mean(xc * xc, axis=1, keepdims=True)
    std = jnp.sqrt(var + EPS_NORM)
    xn = xc / std
    xt = jnp.transpose(xn, (0, 2, 1))                         # [B,N,L]
    h = jnp.einsum("bnl,ld->bnd", xt, p["emb_w"]) + p["emb_b"][0]

    def ln(z, g, b):
        mu = jnp.mean(z, -1, keepdims=True)
        zc = z - mu
        v = jnp.mean(zc * zc, -1, keepdims=True)
        return zc / jnp.sqrt(v + EPS_LN) * g + b

    scale = 1.0 / float(D_HEAD) ** 0.5
    for l in range(E_LAYERS):
        q = jnp.einsum("bnd,de->bne", h, p["wq"][l]) + p["bq"][l, 0]
        k = jnp.einsum("bnd,de->bne", h, p["wk"][l]) + p["bk"][l, 0]
        v = jnp.einsum("bnd,de->bne", h, p["wv"][l]) + p["bv"][l, 0]
        Bq, Nq, _ = q.shape
        q = q.reshape(Bq, Nq, N_HEADS, D_HEAD)
        k = k.reshape(Bq, Nq, N_HEADS, D_HEAD)
        v = v.reshape(Bq, Nq, N_HEADS, D_HEAD)
        s = jnp.einsum("blhe,bshe->bhls", q, k) * scale
        a = jax.nn.softmax(s, axis=-1)
        o = jnp.einsum("bhls,bshe->blhe", a, v).reshape(Bq, Nq, D_MODEL)
        o = jnp.einsum("bnd,de->bne", o, p["wo"][l]) + p["bo"][l, 0]
        h = ln(h + o, p["g1"][l, 0], p["be1"][l, 0])
        y = jnp.maximum(jnp.einsum("bnd,df->bnf", h, p["wc1"][l]) + p["bc1"][l, 0], 0.0)
        y = jnp.einsum("bnf,fd->bnd", y, p["wc2"][l]) + p["bc2"][l, 0]
        h = ln(h + y, p["g2"][l, 0], p["be2"][l, 0])
    h = ln(h, p["gf"][0], p["bef"][0])

    cat = jnp.concatenate([xt, h], axis=-1)
    pr = jnp.einsum("bnc,cf->bnf", cat, p["wp"]) + p["bp"][0]
    f = _ref_mish(jnp.einsum("bnf,fg->bng", pr, p["w1"]) + p["b1"][0])
    f = _ref_mish(jnp.einsum("bng,gh->bnh", f, p["w2"]) + p["b2"][0])
    f = jnp.einsum("bnh,hp->bnp", f, p["w3"]) + p["b3"][0]
    dec = jnp.transpose(f, (0, 2, 1))                         # [B, PRED, N]
    dec = dec * std + mean
    return dec[:, -PRED_LEN:, :N_VARS]


# ------------------------------- main ------------------------------------------
if __name__ == "__main__":
    key = jax.random.PRNGKey(0)
    kx, kp = jax.random.split(key)
    x = jax.random.normal(kx, (B, SEQ_LEN, N_VARS), dtype=jnp.float32)
    params = make_params(kp)

    packed, metas = pack_weights(params)
    out = jax.block_until_ready(itransformer_forward(x, packed, metas))
    ref = jax.block_until_ready(reference_forward(x, params))

    assert out.shape == (B, PRED_LEN, N_VARS), out.shape
    # tolerance slightly relaxed vs exact math because softmax / Mish use the
    # EUP approx reciprocal (error ~1e-4, well inside the module's semantics)
    assert jnp.allclose(out, ref, atol=2e-3, rtol=2e-3), (
        float(jnp.max(jnp.abs(out - ref)))
    )
    print("KERNEL_OK")
</pallas_src>

<mosaic_0001>
module attributes {stable_mosaic.version = 11 : i64} {
  func.func @itransformer_kernel(%arg0: memref<2x8x8xf32, #tpu.memory_space<vmem>>, %arg1: memref<560x32xf32, #tpu.memory_space<vmem>>, %arg2: memref<128x64xf32, #tpu.memory_space<vmem>>, %arg3: memref<72x256xf32, #tpu.memory_space<vmem>>, %arg4: memref<264x128xf32, #tpu.memory_space<vmem>>, %arg5: memref<136x4xf32, #tpu.memory_space<vmem>>, %arg6: memref<2x4x8xf32, #tpu.memory_space<vmem>>) attributes {dimension_semantics = [], scalar_prefetch = 0 : i64, scratch_operands = 0 : i64, tpu.core_type = #tpu.core_type<tc>} {
    %c0 = arith.constant 0 : index
    %c0_0 = arith.constant 0 : index
    %c0_1 = arith.constant 0 : index
    %0 = vector.load %arg0[%c0, %c0_0, %c0_1] : memref<2x8x8xf32, #tpu.memory_space<vmem>>, vector<1x8x8xf32>
    %1 = vector.shape_cast %0 : vector<1x8x8xf32> to vector<8x8xf32>
    %2 = tpu.transpose %1, [1, 0] : vector<8x8xf32> -> vector<8x8xf32>
    %c1 = arith.constant 1 : index
    %c0_2 = arith.constant 0 : index
    %c0_3 = arith.constant 0 : index
    %3 = vector.load %arg0[%c1, %c0_2, %c0_3] : memref<2x8x8xf32, #tpu.memory_space<vmem>>, vector<1x8x8xf32>
    %4 = vector.shape_cast %3 : vector<1x8x8xf32> to vector<8x8xf32>
    %5 = tpu.transpose %4, [1, 0] : vector<8x8xf32> -> vector<8x8xf32>
    %6 = tpu.concatenate %2, %5 in 0 : vector<8x8xf32>, vector<8x8xf32> -> vector<16x8xf32>
    %cst = arith.constant dense<0.000000e+00> : vector<16xf32>
    %7 = vector.multi_reduction <add>, %6, %cst [1] : vector<16x8xf32> to vector<16xf32>
    %8 = vector.shape_cast %7 : vector<16xf32> to vector<16x1xf32>
    %cst_4 = arith.constant 8.000000e+00 : f32
    %9 = vector.broadcast %cst_4 : f32 to vector<16x1xf32>
    %10 = arith.divf %8, %9 : vector<16x1xf32>
    %11 = vector.broadcast %10 : vector<16x1xf32> to vector<16x8xf32>
    %12 = arith.subf %6, %11 : vector<16x8xf32>
    %13 = arith.mulf %12, %12 : vector<16x8xf32>
    %cst_5 = arith.constant dense<0.000000e+00> : vector<16xf32>
    %14 = vector.multi_reduction <add>, %13, %cst_5 [1] : vector<16x8xf32> to vector<16xf32>
    %15 = vector.shape_cast %14 : vector<16xf32> to vector<16x1xf32>
    %cst_6 = arith.constant 8.000000e+00 : f32
    %16 = vector.broadcast %cst_6 : f32 to vector<16x1xf32>
    %17 = arith.divf %15, %16 : vector<16x1xf32>
    %cst_7 = arith.constant 9.99999974E-6 : f32
    %18 = vector.broadcast %cst_7 : f32 to vector<16x1xf32>
    %19 = arith.addf %17, %18 : vector<16x1xf32>
    %20 = math.sqrt %19 : vector<16x1xf32>
    %cst_8 = arith.constant 9.99999974E-6 : f32
    %21 = vector.broadcast %cst_8 : f32 to vector<16x1xf32>
    %22 = arith.addf %17, %21 : vector<16x1xf32>
    %23 = math.rsqrt %22 : vector<16x1xf32>
    %24 = vector.broadcast %23 : vector<16x1xf32> to vector<16x8xf32>
    %25 = arith.mulf %12, %24 : vector<16x8xf32>
    %c0_9 = arith.constant 0 : index
    %c0_10 = arith.constant 0 : index
    %26 = vector.load %arg1[%c0_9, %c0_10] : memref<560x32xf32, #tpu.memory_space<vmem>>, vector<8x32xf32>
    %cst_11 = arith.constant dense<0.000000e+00> : vector<16x32xf32>
    %27 = tpu.matmul %25, %26, %cst_11 {dimension_numbers = #tpu.dot_dimension_numbers<[1], [0], [0], [1], [0, 0, 1, 1], [], []>} : vector<16x8xf32>, vector<8x32xf32>, vector<16x32xf32> -> vector<16x32xf32>
    %c8 = arith.constant 8 : index
    %c0_12 = arith.constant 0 : index
    %28 = vector.load %arg1[%c8, %c0_12] : memref<560x32xf32, #tpu.memory_space<vmem>>, vector<1x32xf32>
    %29 = vector.broadcast %28 : vector<1x32xf32> to vector<16x32xf32>
    %30 = arith.addf %27, %29 : vector<16x32xf32>
    %31 = tpu.iota {dimensions = array<i32: 0>} : vector<16x16xi32>
    %32 = tpu.iota {dimensions = array<i32: 1>} : vector<16x16xi32>
    %c3_i32 = arith.constant 3 : i32
    %33 = vector.broadcast %c3_i32 : i32 to vector<16x16xi32>
    %34 = arith.shrsi %31, %33 : vector<16x16xi32>
    %c3_i32_13 = arith.constant 3 : i32
    %35 = vector.broadcast %c3_i32_13 : i32 to vector<16x16xi32>
    %36 = arith.shrsi %32, %35 : vector<16x16xi32>
    %37 = arith.cmpi eq, %34, %36 : vector<16x16xi32>
    %cst_14 = arith.constant 0.000000e+00 : f32
    %cst_15 = arith.constant -1.000000e+30 : f32
    %38 = vector.broadcast %cst_14 : f32 to vector<16x16xf32>
    %39 = vector.broadcast %cst_15 : f32 to vector<16x16xf32>
    %40 = arith.select %37, %38, %39 : vector<16x16xi1>, vector<16x16xf32>
    %c32 = arith.constant 32 : index
    %c0_16 = arith.constant 0 : index
    %41 = vector.load %arg1[%c32, %c0_16] : memref<560x32xf32, #tpu.memory_space<vmem>>, vector<32x32xf32>
    %cst_17 = arith.constant dense<0.000000e+00> : vector<16x32xf32>
    %42 = tpu.matmul %30, %41, %cst_17 {dimension_numbers = #tpu.dot_dimension_numbers<[1], [0], [0], [1], [0, 0, 1, 1], [], []>} : vector<16x32xf32>, vector<32x32xf32>, vector<16x32xf32> -> vector<16x32xf32>
    %c64 = arith.constant 64 : index
    %c0_18 = arith.constant 0 : index
    %43 = vector.load %arg1[%c64, %c0_18] : memref<560x32xf32, #tpu.memory_space<vmem>>, vector<1x32xf32>
    %44 = vector.broadcast %43 : vector<1x32xf32> to vector<16x32xf32>
    %45 = arith.addf %42, %44 : vector<16x32xf32>
    %c72 = arith.constant 72 : index
    %c0_19 = arith.constant 0 : index
    %46 = vector.load %arg1[%c72, %c0_19] : memref<560x32xf32, #tpu.memory_space<vmem>>, vector<32x32xf32>
    %cst_20 = arith.constant dense<0.000000e+00> : vector<16x32xf32>
    %47 = tpu.matmul %30, %46, %cst_20 {dimension_numbers = #tpu.dot_dimension_numbers<[1], [0], [0], [1], [0, 0, 1, 1], [], []>} : vector<16x32xf32>, vector<32x32xf32>, vector<16x32xf32> -> vector<16x32xf32>
    %c104 = arith.constant 104 : index
    %c0_21 = arith.constant 0 : index
    %48 = vector.load %arg1[%c104, %c0_21] : memref<560x32xf32, #tpu.memory_space<vmem>>, vector<1x32xf32>
    %49 = vector.broadcast %48 : vector<1x32xf32> to vector<16x32xf32>
    %50 = arith.addf %47, %49 : vector<16x32xf32>
    %c112 = arith.constant 112 : index
    %c0_22 = arith.constant 0 : index
    %51 = vector.load %arg1[%c112, %c0_22] : memref<560x32xf32, #tpu.memory_space<vmem>>, vector<32x32xf32>
    %cst_23 = arith.constant dense<0.000000e+00> : vector<16x32xf32>
    %52 = tpu.matmul %30, %51, %cst_23 {dimension_numbers = #tpu.dot_dimension_numbers<[1], [0], [0], [1], [0, 0, 1, 1], [], []>} : vector<16x32xf32>, vector<32x32xf32>, vector<16x32xf32> -> vector<16x32xf32>
    %c144 = arith.constant 144 : index
    %c0_24 = arith.constant 0 : index
    %53 = vector.load %arg1[%c144, %c0_24] : memref<560x32xf32, #tpu.memory_space<vmem>>, vector<1x32xf32>
    %54 = vector.broadcast %53 : vector<1x32xf32> to vector<16x32xf32>
    %55 = arith.addf %52, %54 : vector<16x32xf32>
    %c152 = arith.constant 152 : index
    %c0_25 = arith.constant 0 : index
    %56 = vector.load %arg1[%c152, %c0_25] : memref<560x32xf32, #tpu.memory_space<vmem>>, vector<32x32xf32>
    %cst_26 = arith.constant 0.000000e+00 : f32
    %57 = vector.broadcast %cst_26 : f32 to vector<16x32xf32>
    %58 = vector.extract_strided_slice %45 {offsets = [0, 0], sizes = [16, 8], strides = [1, 1]} : vector<16x32xf32> to vector<16x8xf32>
    %59 = vector.extract_strided_slice %50 {offsets = [0, 0], sizes = [16, 8], strides = [1, 1]} : vector<16x32xf32> to vector<16x8xf32>
    %cst_27 = arith.constant dense<0.000000e+00> : vector<16x16xf32>
    %60 = tpu.matmul %58, %59, %cst_27 {dimension_numbers = #tpu.dot_dimension_numbers<[1], [1], [0], [0], [0, 0, 1, 0], [], []>} : vector<16x8xf32>, vector<16x8xf32>, vector<16x16xf32> -> vector<16x16xf32>
    %cst_28 = arith.constant 0.353553385 : f32
    %61 = vector.broadcast %cst_28 : f32 to vector<16x16xf32>
    %62 = arith.mulf %60, %61 : vector<16x16xf32>
    %63 = arith.addf %62, %40 : vector<16x16xf32>
    %cst_29 = arith.constant dense<0xFF800000> : vector<16xf32>
    %64 = vector.multi_reduction <maximumf>, %63, %cst_29 [1] : vector<16x16xf32> to vector<16xf32>
    %65 = vector.shape_cast %64 : vector<16xf32> to vector<16x1xf32>
    %66 = vector.broadcast %65 : vector<16x1xf32> to vector<16x16xf32>
    %67 = arith.subf %63, %66 : vector<16x16xf32>
    %68 = math.exp %67 : vector<16x16xf32>
    %cst_30 = arith.constant dense<0.000000e+00> : vector<16xf32>
    %69 = vector.multi_reduction <add>, %68, %cst_30 [1] : vector<16x16xf32> to vector<16xf32>
    %70 = vector.shape_cast %69 : vector<16xf32> to vector<16x1xf32>
    %71 = tpu.reciprocal %70 {approx = true} : vector<16x1xf32> -> vector<16x1xf32>
    %72 = vector.broadcast %71 : vector<16x1xf32> to vector<16x16xf32>
    %73 = arith.mulf %68, %72 : vector<16x16xf32>
    %74 = vector.extract_strided_slice %55 {offsets = [0, 0], sizes = [16, 8], strides = [1, 1]} : vector<16x32xf32> to vector<16x8xf32>
    %cst_31 = arith.constant dense<0.000000e+00> : vector<16x8xf32>
    %75 = tpu.matmul %73, %74, %cst_31 {dimension_numbers = #tpu.dot_dimension_numbers<[1], [0], [0], [1], [0, 0, 1, 1], [], []>} : vector<16x16xf32>, vector<16x8xf32>, vector<16x8xf32> -> vector<16x8xf32>
    %76 = vector.extract_strided_slice %56 {offsets = [0, 0], sizes = [8, 32], strides = [1, 1]} : vector<32x32xf32> to vector<8x32xf32>
    %cst_32 = arith.constant dense<0.000000e+00> : vector<16x32xf32>
    %77 = tpu.matmul %75, %76, %cst_32 {dimension_numbers = #tpu.dot_dimension_numbers<[1], [0], [0], [1], [0, 0, 1, 1], [], []>} : vector<16x8xf32>, vector<8x32xf32>, vector<16x32xf32> -> vector<16x32xf32>
    %78 = arith.addf %57, %77 : vector<16x32xf32>
    %79 = vector.extract_strided_slice %45 {offsets = [0, 8], sizes = [16, 8], strides = [1, 1]} : vector<16x32xf32> to vector<16x8xf32>
    %80 = vector.extract_strided_slice %50 {offsets = [0, 8], sizes = [16, 8], strides = [1, 1]} : vector<16x32xf32> to vector<16x8xf32>
    %cst_33 = arith.constant dense<0.000000e+00> : vector<16x16xf32>
    %81 = tpu.matmul %79, %80, %cst_33 {dimension_numbers = #tpu.dot_dimension_numbers<[1], [1], [0], [0], [0, 0, 1, 0], [], []>} : vector<16x8xf32>, vector<16x8xf32>, vector<16x16xf32> -> vector<16x16xf32>
    %cst_34 = arith.constant 0.353553385 : f32
    %82 = vector.broadcast %cst_34 : f32 to vector<16x16xf32>
    %83 = arith.mulf %81, %82 : vector<16x16xf32>
    %84 = arith.addf %83, %40 : vector<16x16xf32>
    %cst_35 = arith.constant dense<0xFF800000> : vector<16xf32>
    %85 = vector.multi_reduction <maximumf>, %84, %cst_35 [1] : vector<16x16xf32> to vector<16xf32>
    %86 = vector.shape_cast %85 : vector<16xf32> to vector<16x1xf32>
    %87 = vector.broadcast %86 : vector<16x1xf32> to vector<16x16xf32>
    %88 = arith.subf %84, %87 : vector<16x16xf32>
    %89 = math.exp %88 : vector<16x16xf32>
    %cst_36 = arith.constant dense<0.000000e+00> : vector<16xf32>
    %90 = vector.multi_reduction <add>, %89, %cst_36 [1] : vector<16x16xf32> to vector<16xf32>
    %91 = vector.shape_cast %90 : vector<16xf32> to vector<16x1xf32>
    %92 = tpu.reciprocal %91 {approx = true} : vector<16x1xf32> -> vector<16x1xf32>
    %93 = vector.broadcast %92 : vector<16x1xf32> to vector<16x16xf32>
    %94 = arith.mulf %89, %93 : vector<16x16xf32>
    %95 = vector.extract_strided_slice %55 {offsets = [0, 8], sizes = [16, 8], strides = [1, 1]} : vector<16x32xf32> to vector<16x8xf32>
    %cst_37 = arith.constant dense<0.000000e+00> : vector<16x8xf32>
    %96 = tpu.matmul %94, %95, %cst_37 {dimension_numbers = #tpu.dot_dimension_numbers<[1], [0], [0], [1], [0, 0, 1, 1], [], []>} : vector<16x16xf32>, vector<16x8xf32>, vector<16x8xf32> -> vector<16x8xf32>
    %97 = vector.extract_strided_slice %56 {offsets = [8, 0], sizes = [8, 32], strides = [1, 1]} : vector<32x32xf32> to vector<8x32xf32>
    %cst_38 = arith.constant dense<0.000000e+00> : vector<16x32xf32>
    %98 = tpu.matmul %96, %97, %cst_38 {dimension_numbers = #tpu.dot_dimension_numbers<[1], [0], [0], [1], [0, 0, 1, 1], [], []>} : vector<16x8xf32>, vector<8x32xf32>, vector<16x32xf32> -> vector<16x32xf32>
    %99 = arith.addf %78, %98 : vector<16x32xf32>
    %100 = vector.extract_strided_slice %45 {offsets = [0, 16], sizes = [16, 8], strides = [1, 1]} : vector<16x32xf32> to vector<16x8xf32>
    %101 = vector.extract_strided_slice %50 {offsets = [0, 16], sizes = [16, 8], strides = [1, 1]} : vector<16x32xf32> to vector<16x8xf32>
    %cst_39 = arith.constant dense<0.000000e+00> : vector<16x16xf32>
    %102 = tpu.matmul %100, %101, %cst_39 {dimension_numbers = #tpu.dot_dimension_numbers<[1], [1], [0], [0], [0, 0, 1, 0], [], []>} : vector<16x8xf32>, vector<16x8xf32>, vector<16x16xf32> -> vector<16x16xf32>
    %cst_40 = arith.constant 0.353553385 : f32
    %103 = vector.broadcast %cst_40 : f32 to vector<16x16xf32>
    %104 = arith.mulf %102, %103 : vector<16x16xf32>
    %105 = arith.addf %104, %40 : vector<16x16xf32>
    %cst_41 = arith.constant dense<0xFF800000> : vector<16xf32>
    %106 = vector.multi_reduction <maximumf>, %105, %cst_41 [1] : vector<16x16xf32> to vector<16xf32>
    %107 = vector.shape_cast %106 : vector<16xf32> to vector<16x1xf32>
    %108 = vector.broadcast %107 : vector<16x1xf32> to vector<16x16xf32>
    %109 = arith.subf %105, %108 : vector<16x16xf32>
    %110 = math.exp %109 : vector<16x16xf32>
    %cst_42 = arith.constant dense<0.000000e+00> : vector<16xf32>
    %111 = vector.multi_reduction <add>, %110, %cst_42 [1] : vector<16x16xf32> to vector<16xf32>
    %112 = vector.shape_cast %111 : vector<16xf32> to vector<16x1xf32>
    %113 = tpu.reciprocal %112 {approx = true} : vector<16x1xf32> -> vector<16x1xf32>
    %114 = vector.broadcast %113 : vector<16x1xf32> to vector<16x16xf32>
    %115 = arith.mulf %110, %114 : vector<16x16xf32>
    %116 = vector.extract_strided_slice %55 {offsets = [0, 16], sizes = [16, 8], strides = [1, 1]} : vector<16x32xf32> to vector<16x8xf32>
    %cst_43 = arith.constant dense<0.000000e+00> : vector<16x8xf32>
    %117 = tpu.matmul %115, %116, %cst_43 {dimension_numbers = #tpu.dot_dimension_numbers<[1], [0], [0], [1], [0, 0, 1, 1], [], []>} : vector<16x16xf32>, vector<16x8xf32>, vector<16x8xf32> -> vector<16x8xf32>
    %118 = vector.extract_strided_slice %56 {offsets = [16, 0], sizes = [8, 32], strides = [1, 1]} : vector<32x32xf32> to vector<8x32xf32>
    %cst_44 = arith.constant dense<0.000000e+00> : vector<16x32xf32>
    %119 = tpu.matmul %117, %118, %cst_44 {dimension_numbers = #tpu.dot_dimension_numbers<[1], [0], [0], [1], [0, 0, 1, 1], [], []>} : vector<16x8xf32>, vector<8x32xf32>, vector<16x32xf32> -> vector<16x32xf32>
    %120 = arith.addf %99, %119 : vector<16x32xf32>
    %121 = vector.extract_strided_slice %45 {offsets = [0, 24], sizes = [16, 8], strides = [1, 1]} : vector<16x32xf32> to vector<16x8xf32>
    %122 = vector.extract_strided_slice %50 {offsets = [0, 24], sizes = [16, 8], strides = [1, 1]} : vector<16x32xf32> to vector<16x8xf32>
    %cst_45 = arith.constant dense<0.000000e+00> : vector<16x16xf32>
    %123 = tpu.matmul %121, %122, %cst_45 {dimension_numbers = #tpu.dot_dimension_numbers<[1], [1], [0], [0], [0, 0, 1, 0], [], []>} : vector<16x8xf32>, vector<16x8xf32>, vector<16x16xf32> -> vector<16x16xf32>
    %cst_46 = arith.constant 0.353553385 : f32
    %124 = vector.broadcast %cst_46 : f32 to vector<16x16xf32>
    %125 = arith.mulf %123, %124 : vector<16x16xf32>
    %126 = arith.addf %125, %40 : vector<16x16xf32>
    %cst_47 = arith.constant dense<0xFF800000> : vector<16xf32>
    %127 = vector.multi_reduction <maximumf>, %126, %cst_47 [1] : vector<16x16xf32> to vector<16xf32>
    %128 = vector.shape_cast %127 : vector<16xf32> to vector<16x1xf32>
    %129 = vector.broadcast %128 : vector<16x1xf32> to vector<16x16xf32>
    %130 = arith.subf %126, %129 : vector<16x16xf32>
    %131 = math.exp %130 : vector<16x16xf32>
    %cst_48 = arith.constant dense<0.000000e+00> : vector<16xf32>
    %132 = vector.multi_reduction <add>, %131, %cst_48 [1] : vector<16x16xf32> to vector<16xf32>
    %133 = vector.shape_cast %132 : vector<16xf32> to vector<16x1xf32>
    %134 = tpu.reciprocal %133 {approx = true} : vector<16x1xf32> -> vector<16x1xf32>
    %135 = vector.broadcast %134 : vector<16x1xf32> to vector<16x16xf32>
    %136 = arith.mulf %131, %135 : vector<16x16xf32>
    %137 = vector.extract_strided_slice %55 {offsets = [0, 24], sizes = [16, 8], strides = [1, 1]} : vector<16x32xf32> to vector<16x8xf32>
    %cst_49 = arith.constant dense<0.000000e+00> : vector<16x8xf32>
    %138 = tpu.matmul %136, %137, %cst_49 {dimension_numbers = #tpu.dot_dimension_numbers<[1], [0], [0], [1], [0, 0, 1, 1], [], []>} : vector<16x16xf32>, vector<16x8xf32>, vector<16x8xf32> -> vector<16x8xf32>
    %139 = vector.extract_strided_slice %56 {offsets = [24, 0], sizes = [8, 32], strides = [1, 1]} : vector<32x32xf32> to vector<8x32xf32>
    %cst_50 = arith.constant dense<0.000000e+00> : vector<16x32xf32>
    %140 = tpu.matmul %138, %139, %cst_50 {dimension_numbers = #tpu.dot_dimension_numbers<[1], [0], [0], [1], [0, 0, 1, 1], [], []>} : vector<16x8xf32>, vector<8x32xf32>, vector<16x32xf32> -> vector<16x32xf32>
    %141 = arith.addf %120, %140 : vector<16x32xf32>
    %c184 = arith.constant 184 : index
    %c0_51 = arith.constant 0 : index
    %142 = vector.load %arg1[%c184, %c0_51] : memref<560x32xf32, #tpu.memory_space<vmem>>, vector<1x32xf32>
    %143 = vector.broadcast %142 : vector<1x32xf32> to vector<16x32xf32>
    %144 = arith.addf %141, %143 : vector<16x32xf32>
    %145 = arith.addf %30, %144 : vector<16x32xf32>
    %c264 = arith.constant 264 : index
    %c0_52 = arith.constant 0 : index
    %146 = vector.load %arg1[%c264, %c0_52] : memref<560x32xf32, #tpu.memory_space<vmem>>, vector<1x32xf32>
    %c272 = arith.constant 272 : index
    %c0_53 = arith.constant 0 : index
    %147 = vector.load %arg1[%c272, %c0_53] : memref<560x32xf32, #tpu.memory_space<vmem>>, vector<1x32xf32>
    %cst_54 = arith.constant dense<0.000000e+00> : vector<16xf32>
    %148 = vector.multi_reduction <add>, %145, %cst_54 [1] : vector<16x32xf32> to vector<16xf32>
    %149 = vector.shape_cast %148 : vector<16xf32> to vector<16x1xf32>
    %cst_55 = arith.constant 3.200000e+01 : f32
    %150 = vector.broadcast %cst_55 : f32 to vector<16x1xf32>
    %151 = arith.divf %149, %150 : vector<16x1xf32>
    %152 = vector.broadcast %151 : vector<16x1xf32> to vector<16x32xf32>
    %153 = arith.subf %145, %152 : vector<16x32xf32>
    %154 = arith.mulf %153, %153 : vector<16x32xf32>
    %cst_56 = arith.constant dense<0.000000e+00> : vector<16xf32>
    %155 = vector.multi_reduction <add>, %154, %cst_56 [1] : vector<16x32xf32> to vector<16xf32>
    %156 = vector.shape_cast %155 : vector<16xf32> to vector<16x1xf32>
    %cst_57 = arith.constant 3.200000e+01 : f32
    %157 = vector.broadcast %cst_57 : f32 to vector<16x1xf32>
    %158 = arith.divf %156, %157 : vector<16x1xf32>
    %cst_58 = arith.constant 9.99999974E-6 : f32
    %159 = vector.broadcast %cst_58 : f32 to vector<16x1xf32>
    %160 = arith.addf %158, %159 : vector<16x1xf32>
    %161 = math.rsqrt %160 : vector<16x1xf32>
    %162 = vector.broadcast %161 : vector<16x1xf32> to vector<16x32xf32>
    %163 = arith.mulf %153, %162 : vector<16x32xf32>
    %164 = vector.broadcast %146 : vector<1x32xf32> to vector<16x32xf32>
    %165 = arith.mulf %163, %164 : vector<16x32xf32>
    %166 = vector.broadcast %147 : vector<1x32xf32> to vector<16x32xf32>
    %167 = arith.addf %165, %166 : vector<16x32xf32>
    %c48 = arith.constant 48 : index
    %c0_59 = arith.constant 0 : index
    %168 = vector.load %arg2[%c48, %c0_59] : memref<128x64xf32, #tpu.memory_space<vmem>>, vector<32x64xf32>
    %cst_60 = arith.constant dense<0.000000e+00> : vector<16x64xf32>
    %169 = tpu.matmul %167, %168, %cst_60 {dimension_numbers = #tpu.dot_dimension_numbers<[1], [0], [0], [1], [0, 0, 1, 1], [], []>} : vector<16x32xf32>, vector<32x64xf32>, vector<16x64xf32> -> vector<16x64xf32>
    %c80 = arith.constant 80 : index
    %c0_61 = arith.constant 0 : index
    %170 = vector.load %arg2[%c80, %c0_61] : memref<128x64xf32, #tpu.memory_space<vmem>>, vector<1x64xf32>
    %171 = vector.broadcast %170 : vector<1x64xf32> to vector<16x64xf32>
    %172 = arith.addf %169, %171 : vector<16x64xf32>
    %cst_62 = arith.constant 0.000000e+00 : f32
    %173 = vector.broadcast %cst_62 : f32 to vector<16x64xf32>
    %174 = arith.maximumf %172, %173 : vector<16x64xf32>
    %c192 = arith.constant 192 : index
    %c0_63 = arith.constant 0 : index
    %175 = vector.load %arg1[%c192, %c0_63] : memref<560x32xf32, #tpu.memory_space<vmem>>, vector<64x32xf32>
    %cst_64 = arith.constant dense<0.000000e+00> : vector<16x32xf32>
    %176 = tpu.matmul %174, %175, %cst_64 {dimension_numbers = #tpu.dot_dimension_numbers<[1], [0], [0], [1], [0, 0, 1, 1], [], []>} : vector<16x64xf32>, vector<64x32xf32>, vector<16x32xf32> -> vector<16x32xf32>
    %c256 = arith.constant 256 : index
    %c0_65 = arith.constant 0 : index
    %177 = vector.load %arg1[%c256, %c0_65] : memref<560x32xf32, #tpu.memory_space<vmem>>, vector<1x32xf32>
    %178 = vector.broadcast %177 : vector<1x32xf32> to vector<16x32xf32>
    %179 = arith.addf %176, %178 : vector<16x32xf32>
    %180 = arith.addf %167, %179 : vector<16x32xf32>
    %c280 = arith.constant 280 : index
    %c0_66 = arith.constant 0 : index
    %181 = vector.load %arg1[%c280, %c0_66] : memref<560x32xf32, #tpu.memory_space<vmem>>, vector<1x32xf32>
    %c288 = arith.constant 288 : index
    %c0_67 = arith.constant 0 : index
    %182 = vector.load %arg1[%c288, %c0_67] : memref<560x32xf32, #tpu.memory_space<vmem>>, vector<1x32xf32>
    %cst_68 = arith.constant dense<0.000000e+00> : vector<16xf32>
    %183 = vector.multi_reduction <add>, %180, %cst_68 [1] : vector<16x32xf32> to vector<16xf32>
    %184 = vector.shape_cast %183 : vector<16xf32> to vector<16x1xf32>
    %cst_69 = arith.constant 3.200000e+01 : f32
    %185 = vector.broadcast %cst_69 : f32 to vector<16x1xf32>
    %186 = arith.divf %184, %185 : vector<16x1xf32>
    %187 = vector.broadcast %186 : vector<16x1xf32> to vector<16x32xf32>
    %188 = arith.subf %180, %187 : vector<16x32xf32>
    %189 = arith.mulf %188, %188 : vector<16x32xf32>
    %cst_70 = arith.constant dense<0.000000e+00> : vector<16xf32>
    %190 = vector.multi_reduction <add>, %189, %cst_70 [1] : vector<16x32xf32> to vector<16xf32>
    %191 = vector.shape_cast %190 : vector<16xf32> to vector<16x1xf32>
    %cst_71 = arith.constant 3.200000e+01 : f32
    %192 = vector.broadcast %cst_71 : f32 to vector<16x1xf32>
    %193 = arith.divf %191, %192 : vector<16x1xf32>
    %cst_72 = arith.constant 9.99999974E-6 : f32
    %194 = vector.broadcast %cst_72 : f32 to vector<16x1xf32>
    %195 = arith.addf %193, %194 : vector<16x1xf32>
    %196 = math.rsqrt %195 : vector<16x1xf32>
    %197 = vector.broadcast %196 : vector<16x1xf32> to vector<16x32xf32>
    %198 = arith.mulf %188, %197 : vector<16x32xf32>
    %199 = vector.broadcast %181 : vector<1x32xf32> to vector<16x32xf32>
    %200 = arith.mulf %198, %199 : vector<16x32xf32>
    %201 = vector.broadcast %182 : vector<1x32xf32> to vector<16x32xf32>
    %202 = arith.addf %200, %201 : vector<16x32xf32>
    %c296 = arith.constant 296 : index
    %c0_73 = arith.constant 0 : index
    %203 = vector.load %arg1[%c296, %c0_73] : memref<560x32xf32, #tpu.memory_space<vmem>>, vector<32x32xf32>
    %cst_74 = arith.constant dense<0.000000e+00> : vector<16x32xf32>
    %204 = tpu.matmul %202, %203, %cst_74 {dimension_numbers = #tpu.dot_dimension_numbers<[1], [0], [0], [1], [0, 0, 1, 1], [], []>} : vector<16x32xf32>, vector<32x32xf32>, vector<16x32xf32> -> vector<16x32xf32>
    %c328 = arith.constant 328 : index
    %c0_75 = arith.constant 0 : index
    %205 = vector.load %arg1[%c328, %c0_75] : memref<560x32xf32, #tpu.memory_space<vmem>>, vector<1x32xf32>
    %206 = vector.broadcast %205 : vector<1x32xf32> to vector<16x32xf32>
    %207 = arith.addf %204, %206 : vector<16x32xf32>
    %c336 = arith.constant 336 : index
    %c0_76 = arith.constant 0 : index
    %208 = vector.load %arg1[%c336, %c0_76] : memref<560x32xf32, #tpu.memory_space<vmem>>, vector<32x32xf32>
    %cst_77 = arith.constant dense<0.000000e+00> : vector<16x32xf32>
    %209 = tpu.matmul %202, %208, %cst_77 {dimension_numbers = #tpu.dot_dimension_numbers<[1], [0], [0], [1], [0, 0, 1, 1], [], []>} : vector<16x32xf32>, vector<32x32xf32>, vector<16x32xf32> -> vector<16x32xf32>
    %c368 = arith.constant 368 : index
    %c0_78 = arith.constant 0 : index
    %210 = vector.load %arg1[%c368, %c0_78] : memref<560x32xf32, #tpu.memory_space<vmem>>, vector<1x32xf32>
    %211 = vector.broadcast %210 : vector<1x32xf32> to vector<16x32xf32>
    %212 = arith.addf %209, %211 : vector<16x32xf32>
    %c376 = arith.constant 376 : index
    %c0_79 = arith.constant 0 : index
    %213 = vector.load %arg1[%c376, %c0_79] : memref<560x32xf32, #tpu.memory_space<vmem>>, vector<32x32xf32>
    %cst_80 = arith.constant dense<0.000000e+00> : vector<16x32xf32>
    %214 = tpu.matmul %202, %213, %cst_80 {dimension_numbers = #tpu.dot_dimension_numbers<[1], [0], [0], [1], [0, 0, 1, 1], [], []>} : vector<16x32xf32>, vector<32x32xf32>, vector<16x32xf32> -> vector<16x32xf32>
    %c408 = arith.constant 408 : index
    %c0_81 = arith.constant 0 : index
    %215 = vector.load %arg1[%c408, %c0_81] : memref<560x32xf32, #tpu.memory_space<vmem>>, vector<1x32xf32>
    %216 = vector.broadcast %215 : vector<1x32xf32> to vector<16x32xf32>
    %217 = arith.addf %214, %216 : vector<16x32xf32>
    %c416 = arith.constant 416 : index
    %c0_82 = arith.constant 0 : index
    %218 = vector.load %arg1[%c416, %c0_82] : memref<560x32xf32, #tpu.memory_space<vmem>>, vector<32x32xf32>
    %cst_83 = arith.constant 0.000000e+00 : f32
    %219 = vector.broadcast %cst_83 : f32 to vector<16x32xf32>
    %220 = vector.extract_strided_slice %207 {offsets = [0, 0], sizes = [16, 8], strides = [1, 1]} : vector<16x32xf32> to vector<16x8xf32>
    %221 = vector.extract_strided_slice %212 {offsets = [0, 0], sizes = [16, 8], strides = [1, 1]} : vector<16x32xf32> to vector<16x8xf32>
    %cst_84 = arith.constant dense<0.000000e+00> : vector<16x16xf32>
    %222 = tpu.matmul %220, %221, %cst_84 {dimension_numbers = #tpu.dot_dimension_numbers<[1], [1], [0], [0], [0, 0, 1, 0], [], []>} : vector<16x8xf32>, vector<16x8xf32>, vector<16x16xf32> -> vector<16x16xf32>
    %cst_85 = arith.constant 0.353553385 : f32
    %223 = vector.broadcast %cst_85 : f32 to vector<16x16xf32>
    %224 = arith.mulf %222, %223 : vector<16x16xf32>
    %225 = arith.addf %224, %40 : vector<16x16xf32>
    %cst_86 = arith.constant dense<0xFF800000> : vector<16xf32>
    %226 = vector.multi_reduction <maximumf>, %225, %cst_86 [1] : vector<16x16xf32> to vector<16xf32>
    %227 = vector.shape_cast %226 : vector<16xf32> to vector<16x1xf32>
    %228 = vector.broadcast %227 : vector<16x1xf32> to vector<16x16xf32>
    %229 = arith.subf %225, %228 : vector<16x16xf32>
    %230 = math.exp %229 : vector<16x16xf32>
    %cst_87 = arith.constant dense<0.000000e+00> : vector<16xf32>
    %231 = vector.multi_reduction <add>, %230, %cst_87 [1] : vector<16x16xf32> to vector<16xf32>
    %232 = vector.shape_cast %231 : vector<16xf32> to vector<16x1xf32>
    %233 = tpu.reciprocal %232 {approx = true} : vector<16x1xf32> -> vector<16x1xf32>
    %234 = vector.broadcast %233 : vector<16x1xf32> to vector<16x16xf32>
    %235 = arith.mulf %230, %234 : vector<16x16xf32>
    %236 = vector.extract_strided_slice %217 {offsets = [0, 0], sizes = [16, 8], strides = [1, 1]} : vector<16x32xf32> to vector<16x8xf32>
    %cst_88 = arith.constant dense<0.000000e+00> : vector<16x8xf32>
    %237 = tpu.matmul %235, %236, %cst_88 {dimension_numbers = #tpu.dot_dimension_numbers<[1], [0], [0], [1], [0, 0, 1, 1], [], []>} : vector<16x16xf32>, vector<16x8xf32>, vector<16x8xf32> -> vector<16x8xf32>
    %238 = vector.extract_strided_slice %218 {offsets = [0, 0], sizes = [8, 32], strides = [1, 1]} : vector<32x32xf32> to vector<8x32xf32>
    %cst_89 = arith.constant dense<0.000000e+00> : vector<16x32xf32>
    %239 = tpu.matmul %237, %238, %cst_89 {dimension_numbers = #tpu.dot_dimension_numbers<[1], [0], [0], [1], [0, 0, 1, 1], [], []>} : vector<16x8xf32>, vector<8x32xf32>, vector<16x32xf32> -> vector<16x32xf32>
    %240 = arith.addf %219, %239 : vector<16x32xf32>
    %241 = vector.extract_strided_slice %207 {offsets = [0, 8], sizes = [16, 8], strides = [1, 1]} : vector<16x32xf32> to vector<16x8xf32>
    %242 = vector.extract_strided_slice %212 {offsets = [0, 8], sizes = [16, 8], strides = [1, 1]} : vector<16x32xf32> to vector<16x8xf32>
    %cst_90 = arith.constant dense<0.000000e+00> : vector<16x16xf32>
    %243 = tpu.matmul %241, %242, %cst_90 {dimension_numbers = #tpu.dot_dimension_numbers<[1], [1], [0], [0], [0, 0, 1, 0], [], []>} : vector<16x8xf32>, vector<16x8xf32>, vector<16x16xf32> -> vector<16x16xf32>
    %cst_91 = arith.constant 0.353553385 : f32
    %244 = vector.broadcast %cst_91 : f32 to vector<16x16xf32>
    %245 = arith.mulf %243, %244 : vector<16x16xf32>
    %246 = arith.addf %245, %40 : vector<16x16xf32>
    %cst_92 = arith.constant dense<0xFF800000> : vector<16xf32>
    %247 = vector.multi_reduction <maximumf>, %246, %cst_92 [1] : vector<16x16xf32> to vector<16xf32>
    %248 = vector.shape_cast %247 : vector<16xf32> to vector<16x1xf32>
    %249 = vector.broadcast %248 : vector<16x1xf32> to vector<16x16xf32>
    %250 = arith.subf %246, %249 : vector<16x16xf32>
    %251 = math.exp %250 : vector<16x16xf32>
    %cst_93 = arith.constant dense<0.000000e+00> : vector<16xf32>
    %252 = vector.multi_reduction <add>, %251, %cst_93 [1] : vector<16x16xf32> to vector<16xf32>
    %253 = vector.shape_cast %252 : vector<16xf32> to vector<16x1xf32>
    %254 = tpu.reciprocal %253 {approx = true} : vector<16x1xf32> -> vector<16x1xf32>
    %255 = vector.broadcast %254 : vector<16x1xf32> to vector<16x16xf32>
    %256 = arith.mulf %251, %255 : vector<16x16xf32>
    %257 = vector.extract_strided_slice %217 {offsets = [0, 8], sizes = [16, 8], strides = [1, 1]} : vector<16x32xf32> to vector<16x8xf32>
    %cst_94 = arith.constant dense<0.000000e+00> : vector<16x8xf32>
    %258 = tpu.matmul %256, %257, %cst_94 {dimension_numbers = #tpu.dot_dimension_numbers<[1], [0], [0], [1], [0, 0, 1, 1], [], []>} : vector<16x16xf32>, vector<16x8xf32>, vector<16x8xf32> -> vector<16x8xf32>
    %259 = vector.extract_strided_slice %218 {offsets = [8, 0], sizes = [8, 32], strides = [1, 1]} : vector<32x32xf32> to vector<8x32xf32>
    %cst_95 = arith.constant dense<0.000000e+00> : vector<16x32xf32>
    %260 = tpu.matmul %258, %259, %cst_95 {dimension_numbers = #tpu.dot_dimension_numbers<[1], [0], [0], [1], [0, 0, 1, 1], [], []>} : vector<16x8xf32>, vector<8x32xf32>, vector<16x32xf32> -> vector<16x32xf32>
    %261 = arith.addf %240, %260 : vector<16x32xf32>
    %262 = vector.extract_strided_slice %207 {offsets = [0, 16], sizes = [16, 8], strides = [1, 1]} : vector<16x32xf32> to vector<16x8xf32>
    %263 = vector.extract_strided_slice %212 {offsets = [0, 16], sizes = [16, 8], strides = [1, 1]} : vector<16x32xf32> to vector<16x8xf32>
    %cst_96 = arith.constant dense<0.000000e+00> : vector<16x16xf32>
    %264 = tpu.matmul %262, %263, %cst_96 {dimension_numbers = #tpu.dot_dimension_numbers<[1], [1], [0], [0], [0, 0, 1, 0], [], []>} : vector<16x8xf32>, vector<16x8xf32>, vector<16x16xf32> -> vector<16x16xf32>
    %cst_97 = arith.constant 0.353553385 : f32
    %265 = vector.broadcast %cst_97 : f32 to vector<16x16xf32>
    %266 = arith.mulf %264, %265 : vector<16x16xf32>
    %267 = arith.addf %266, %40 : vector<16x16xf32>
    %cst_98 = arith.constant dense<0xFF800000> : vector<16xf32>
    %268 = vector.multi_reduction <maximumf>, %267, %cst_98 [1] : vector<16x16xf32> to vector<16xf32>
    %269 = vector.shape_cast %268 : vector<16xf32> to vector<16x1xf32>
    %270 = vector.broadcast %269 : vector<16x1xf32> to vector<16x16xf32>
    %271 = arith.subf %267, %270 : vector<16x16xf32>
    %272 = math.exp %271 : vector<16x16xf32>
    %cst_99 = arith.constant dense<0.000000e+00> : vector<16xf32>
    %273 = vector.multi_reduction <add>, %272, %cst_99 [1] : vector<16x16xf32> to vector<16xf32>
    %274 = vector.shape_cast %273 : vector<16xf32> to vector<16x1xf32>
    %275 = tpu.reciprocal %274 {approx = true} : vector<16x1xf32> -> vector<16x1xf32>
    %276 = vector.broadcast %275 : vector<16x1xf32> to vector<16x16xf32>
    %277 = arith.mulf %272, %276 : vector<16x16xf32>
    %278 = vector.extract_strided_slice %217 {offsets = [0, 16], sizes = [16, 8], strides = [1, 1]} : vector<16x32xf32> to vector<16x8xf32>
    %cst_100 = arith.constant dense<0.000000e+00> : vector<16x8xf32>
    %279 = tpu.matmul %277, %278, %cst_100 {dimension_numbers = #tpu.dot_dimension_numbers<[1], [0], [0], [1], [0, 0, 1, 1], [], []>} : vector<16x16xf32>, vector<16x8xf32>, vector<16x8xf32> -> vector<16x8xf32>
    %280 = vector.extract_strided_slice %218 {offsets = [16, 0], sizes = [8, 32], strides = [1, 1]} : vector<32x32xf32> to vector<8x32xf32>
    %cst_101 = arith.constant dense<0.000000e+00> : vector<16x32xf32>
    %281 = tpu.matmul %279, %280, %cst_101 {dimension_numbers = #tpu.dot_dimension_numbers<[1], [0], [0], [1], [0, 0, 1, 1], [], []>} : vector<16x8xf32>, vector<8x32xf32>, vector<16x32xf32> -> vector<16x32xf32>
    %282 = arith.addf %261, %281 : vector<16x32xf32>
    %283 = vector.extract_strided_slice %207 {offsets = [0, 24], sizes = [16, 8], strides = [1, 1]} : vector<16x32xf32> to vector<16x8xf32>
    %284 = vector.extract_strided_slice %212 {offsets = [0, 24], sizes = [16, 8], strides = [1, 1]} : vector<16x32xf32> to vector<16x8xf32>
    %cst_102 = arith.constant dense<0.000000e+00> : vector<16x16xf32>
    %285 = tpu.matmul %283, %284, %cst_102 {dimension_numbers = #tpu.dot_dimension_numbers<[1], [1], [0], [0], [0, 0, 1, 0], [], []>} : vector<16x8xf32>, vector<16x8xf32>, vector<16x16xf32> -> vector<16x16xf32>
    %cst_103 = arith.constant 0.353553385 : f32
    %286 = vector.broadcast %cst_103 : f32 to vector<16x16xf32>
    %287 = arith.mulf %285, %286 : vector<16x16xf32>
    %288 = arith.addf %287, %40 : vector<16x16xf32>
    %cst_104 = arith.constant dense<0xFF800000> : vector<16xf32>
    %289 = vector.multi_reduction <maximumf>, %288, %cst_104 [1] : vector<16x16xf32> to vector<16xf32>
    %290 = vector.shape_cast %289 : vector<16xf32> to vector<16x1xf32>
    %291 = vector.broadcast %290 : vector<16x1xf32> to vector<16x16xf32>
    %292 = arith.subf %288, %291 : vector<16x16xf32>
    %293 = math.exp %292 : vector<16x16xf32>
    %cst_105 = arith.constant dense<0.000000e+00> : vector<16xf32>
    %294 = vector.multi_reduction <add>, %293, %cst_105 [1] : vector<16x16xf32> to vector<16xf32>
    %295 = vector.shape_cast %294 : vector<16xf32> to vector<16x1xf32>
    %296 = tpu.reciprocal %295 {approx = true} : vector<16x1xf32> -> vector<16x1xf32>
    %297 = vector.broadcast %296 : vector<16x1xf32> to vector<16x16xf32>
    %298 = arith.mulf %293, %297 : vector<16x16xf32>
    %299 = vector.extract_strided_slice %217 {offsets = [0, 24], sizes = [16, 8], strides = [1, 1]} : vector<16x32xf32> to vector<16x8xf32>
    %cst_106 = arith.constant dense<0.000000e+00> : vector<16x8xf32>
    %300 = tpu.matmul %298, %299, %cst_106 {dimension_numbers = #tpu.dot_dimension_numbers<[1], [0], [0], [1], [0, 0, 1, 1], [], []>} : vector<16x16xf32>, vector<16x8xf32>, vector<16x8xf32> -> vector<16x8xf32>
    %301 = vector.extract_strided_slice %218 {offsets = [24, 0], sizes = [8, 32], strides = [1, 1]} : vector<32x32xf32> to vector<8x32xf32>
    %cst_107 = arith.constant dense<0.000000e+00> : vector<16x32xf32>
    %302 = tpu.matmul %300, %301, %cst_107 {dimension_numbers = #tpu.dot_dimension_numbers<[1], [0], [0], [1], [0, 0, 1, 1], [], []>} : vector<16x8xf32>, vector<8x32xf32>, vector<16x32xf32> -> vector<16x32xf32>
    %303 = arith.addf %282, %302 : vector<16x32xf32>
    %c448 = arith.constant 448 : index
    %c0_108 = arith.constant 0 : index
    %304 = vector.load %arg1[%c448, %c0_108] : memref<560x32xf32, #tpu.memory_space<vmem>>, vector<1x32xf32>
    %305 = vector.broadcast %304 : vector<1x32xf32> to vector<16x32xf32>
    %306 = arith.addf %303, %305 : vector<16x32xf32>
    %307 = arith.addf %202, %306 : vector<16x32xf32>
    %c528 = arith.constant 528 : index
    %c0_109 = arith.constant 0 : index
    %308 = vector.load %arg1[%c528, %c0_109] : memref<560x32xf32, #tpu.memory_space<vmem>>, vector<1x32xf32>
    %c536 = arith.constant 536 : index
    %c0_110 = arith.constant 0 : index
    %309 = vector.load %arg1[%c536, %c0_110] : memref<560x32xf32, #tpu.memory_space<vmem>>, vector<1x32xf32>
    %cst_111 = arith.constant dense<0.000000e+00> : vector<16xf32>
    %310 = vector.multi_reduction <add>, %307, %cst_111 [1] : vector<16x32xf32> to vector<16xf32>
    %311 = vector.shape_cast %310 : vector<16xf32> to vector<16x1xf32>
    %cst_112 = arith.constant 3.200000e+01 : f32
    %312 = vector.broadcast %cst_112 : f32 to vector<16x1xf32>
    %313 = arith.divf %311, %312 : vector<16x1xf32>
    %314 = vector.broadcast %313 : vector<16x1xf32> to vector<16x32xf32>
    %315 = arith.subf %307, %314 : vector<16x32xf32>
    %316 = arith.mulf %315, %315 : vector<16x32xf32>
    %cst_113 = arith.constant dense<0.000000e+00> : vector<16xf32>
    %317 = vector.multi_reduction <add>, %316, %cst_113 [1] : vector<16x32xf32> to vector<16xf32>
    %318 = vector.shape_cast %317 : vector<16xf32> to vector<16x1xf32>
    %cst_114 = arith.constant 3.200000e+01 : f32
    %319 = vector.broadcast %cst_114 : f32 to vector<16x1xf32>
    %320 = arith.divf %318, %319 : vector<16x1xf32>
    %cst_115 = arith.constant 9.99999974E-6 : f32
    %321 = vector.broadcast %cst_115 : f32 to vector<16x1xf32>
    %322 = arith.addf %320, %321 : vector<16x1xf32>
    %323 = math.rsqrt %322 : vector<16x1xf32>
    %324 = vector.broadcast %323 : vector<16x1xf32> to vector<16x32xf32>
    %325 = arith.mulf %315, %324 : vector<16x32xf32>
    %326 = vector.broadcast %308 : vector<1x32xf32> to vector<16x32xf32>
    %327 = arith.mulf %325, %326 : vector<16x32xf32>
    %328 = vector.broadcast %309 : vector<1x32xf32> to vector<16x32xf32>
    %329 = arith.addf %327, %328 : vector<16x32xf32>
    %c88 = arith.constant 88 : index
    %c0_116 = arith.constant 0 : index
    %330 = vector.load %arg2[%c88, %c0_116] : memref<128x64xf32, #tpu.memory_space<vmem>>, vector<32x64xf32>
    %cst_117 = arith.constant dense<0.000000e+00> : vector<16x64xf32>
    %331 = tpu.matmul %329, %330, %cst_117 {dimension_numbers = #tpu.dot_dimension_numbers<[1], [0], [0], [1], [0, 0, 1, 1], [], []>} : vector<16x32xf32>, vector<32x64xf32>, vector<16x64xf32> -> vector<16x64xf32>
    %c120 = arith.constant 120 : index
    %c0_118 = arith.constant 0 : index
    %332 = vector.load %arg2[%c120, %c0_118] : memref<128x64xf32, #tpu.memory_space<vmem>>, vector<1x64xf32>
    %333 = vector.broadcast %332 : vector<1x64xf32> to vector<16x64xf32>
    %334 = arith.addf %331, %333 : vector<16x64xf32>
    %cst_119 = arith.constant 0.000000e+00 : f32
    %335 = vector.broadcast %cst_119 : f32 to vector<16x64xf32>
    %336 = arith.maximumf %334, %335 : vector<16x64xf32>
    %c456 = arith.constant 456 : index
    %c0_120 = arith.constant 0 : index
    %337 = vector.load %arg1[%c456, %c0_120] : memref<560x32xf32, #tpu.memory_space<vmem>>, vector<64x32xf32>
    %cst_121 = arith.constant dense<0.000000e+00> : vector<16x32xf32>
    %338 = tpu.matmul %336, %337, %cst_121 {dimension_numbers = #tpu.dot_dimension_numbers<[1], [0], [0], [1], [0, 0, 1, 1], [], []>} : vector<16x64xf32>, vector<64x32xf32>, vector<16x32xf32> -> vector<16x32xf32>
    %c520 = arith.constant 520 : index
    %c0_122 = arith.constant 0 : index
    %339 = vector.load %arg1[%c520, %c0_122] : memref<560x32xf32, #tpu.memory_space<vmem>>, vector<1x32xf32>
    %340 = vector.broadcast %339 : vector<1x32xf32> to vector<16x32xf32>
    %341 = arith.addf %338, %340 : vector<16x32xf32>
    %342 = arith.addf %329, %341 : vector<16x32xf32>
    %c544 = arith.constant 544 : index
    %c0_123 = arith.constant 0 : index
    %343 = vector.load %arg1[%c544, %c0_123] : memref<560x32xf32, #tpu.memory_space<vmem>>, vector<1x32xf32>
    %c552 = arith.constant 552 : index
    %c0_124 = arith.constant 0 : index
    %344 = vector.load %arg1[%c552, %c0_124] : memref<560x32xf32, #tpu.memory_space<vmem>>, vector<1x32xf32>
    %cst_125 = arith.constant dense<0.000000e+00> : vector<16xf32>
    %345 = vector.multi_reduction <add>, %342, %cst_125 [1] : vector<16x32xf32> to vector<16xf32>
    %346 = vector.shape_cast %345 : vector<16xf32> to vector<16x1xf32>
    %cst_126 = arith.constant 3.200000e+01 : f32
    %347 = vector.broadcast %cst_126 : f32 to vector<16x1xf32>
    %348 = arith.divf %346, %347 : vector<16x1xf32>
    %349 = vector.broadcast %348 : vector<16x1xf32> to vector<16x32xf32>
    %350 = arith.subf %342, %349 : vector<16x32xf32>
    %351 = arith.mulf %350, %350 : vector<16x32xf32>
    %cst_127 = arith.constant dense<0.000000e+00> : vector<16xf32>
    %352 = vector.multi_reduction <add>, %351, %cst_127 [1] : vector<16x32xf32> to vector<16xf32>
    %353 = vector.shape_cast %352 : vector<16xf32> to vector<16x1xf32>
    %cst_128 = arith.constant 3.200000e+01 : f32
    %354 = vector.broadcast %cst_128 : f32 to vector<16x1xf32>
    %355 = arith.divf %353, %354 : vector<16x1xf32>
    %cst_129 = arith.constant 9.99999974E-6 : f32
    %356 = vector.broadcast %cst_129 : f32 to vector<16x1xf32>
    %357 = arith.addf %355, %356 : vector<16x1xf32>
    %358 = math.rsqrt %357 : vector<16x1xf32>
    %359 = vector.broadcast %358 : vector<16x1xf32> to vector<16x32xf32>
    %360 = arith.mulf %350, %359 : vector<16x32xf32>
    %361 = vector.broadcast %343 : vector<1x32xf32> to vector<16x32xf32>
    %362 = arith.mulf %360, %361 : vector<16x32xf32>
    %363 = vector.broadcast %344 : vector<1x32xf32> to vector<16x32xf32>
    %364 = arith.addf %362, %363 : vector<16x32xf32>
    %c16 = arith.constant 16 : index
    %c0_130 = arith.constant 0 : index
    %365 = vector.load %arg1[%c16, %c0_130] : memref<560x32xf32, #tpu.memory_space<vmem>>, vector<1x32xf32>
    %c24 = arith.constant 24 : index
    %c0_131 = arith.constant 0 : index
    %366 = vector.load %arg1[%c24, %c0_131] : memref<560x32xf32, #tpu.memory_space<vmem>>, vector<1x32xf32>
    %cst_132 = arith.constant dense<0.000000e+00> : vector<16xf32>
    %367 = vector.multi_reduction <add>, %364, %cst_132 [1] : vector<16x32xf32> to vector<16xf32>
    %368 = vector.shape_cast %367 : vector<16xf32> to vector<16x1xf32>
    %cst_133 = arith.constant 3.200000e+01 : f32
    %369 = vector.broadcast %cst_133 : f32 to vector<16x1xf32>
    %370 = arith.divf %368, %369 : vector<16x1xf32>
    %371 = vector.broadcast %370 : vector<16x1xf32> to vector<16x32xf32>
    %372 = arith.subf %364, %371 : vector<16x32xf32>
    %373 = arith.mulf %372, %372 : vector<16x32xf32>
    %cst_134 = arith.constant dense<0.000000e+00> : vector<16xf32>
    %374 = vector.multi_reduction <add>, %373, %cst_134 [1] : vector<16x32xf32> to vector<16xf32>
    %375 = vector.shape_cast %374 : vector<16xf32> to vector<16x1xf32>
    %cst_135 = arith.constant 3.200000e+01 : f32
    %376 = vector.broadcast %cst_135 : f32 to vector<16x1xf32>
    %377 = arith.divf %375, %376 : vector<16x1xf32>
    %cst_136 = arith.constant 9.99999974E-6 : f32
    %378 = vector.broadcast %cst_136 : f32 to vector<16x1xf32>
    %379 = arith.addf %377, %378 : vector<16x1xf32>
    %380 = math.rsqrt %379 : vector<16x1xf32>
    %381 = vector.broadcast %380 : vector<16x1xf32> to vector<16x32xf32>
    %382 = arith.mulf %372, %381 : vector<16x32xf32>
    %383 = vector.broadcast %365 : vector<1x32xf32> to vector<16x32xf32>
    %384 = arith.mulf %382, %383 : vector<16x32xf32>
    %385 = vector.broadcast %366 : vector<1x32xf32> to vector<16x32xf32>
    %386 = arith.addf %384, %385 : vector<16x32xf32>
    %c0_137 = arith.constant 0 : index
    %c0_138 = arith.constant 0 : index
    %387 = vector.load %arg2[%c0_137, %c0_138] : memref<128x64xf32, #tpu.memory_space<vmem>>, vector<8x64xf32>
    %cst_139 = arith.constant dense<0.000000e+00> : vector<16x64xf32>
    %388 = tpu.matmul %25, %387, %cst_139 {dimension_numbers = #tpu.dot_dimension_numbers<[1], [0], [0], [1], [0, 0, 1, 1], [], []>} : vector<16x8xf32>, vector<8x64xf32>, vector<16x64xf32> -> vector<16x64xf32>
    %c8_140 = arith.constant 8 : index
    %c0_141 = arith.constant 0 : index
    %389 = vector.load %arg2[%c8_140, %c0_141] : memref<128x64xf32, #tpu.memory_space<vmem>>, vector<32x64xf32>
    %cst_142 = arith.constant dense<0.000000e+00> : vector<16x64xf32>
    %390 = tpu.matmul %386, %389, %cst_142 {dimension_numbers = #tpu.dot_dimension_numbers<[1], [0], [0], [1], [0, 0, 1, 1], [], []>} : vector<16x32xf32>, vector<32x64xf32>, vector<16x64xf32> -> vector<16x64xf32>
    %391 = arith.addf %388, %390 : vector<16x64xf32>
    %c40 = arith.constant 40 : index
    %c0_143 = arith.constant 0 : index
    %392 = vector.load %arg2[%c40, %c0_143] : memref<128x64xf32, #tpu.memory_space<vmem>>, vector<1x64xf32>
    %393 = vector.broadcast %392 : vector<1x64xf32> to vector<16x64xf32>
    %394 = arith.addf %391, %393 : vector<16x64xf32>
    %c0_144 = arith.constant 0 : index
    %c0_145 = arith.constant 0 : index
    %395 = vector.load %arg3[%c0_144, %c0_145] : memref<72x256xf32, #tpu.memory_space<vmem>>, vector<64x256xf32>
    %cst_146 = arith.constant dense<0.000000e+00> : vector<16x256xf32>
    %396 = tpu.matmul %394, %395, %cst_146 {dimension_numbers = #tpu.dot_dimension_numbers<[1], [0], [0], [1], [0, 0, 1, 1], [], []>} : vector<16x64xf32>, vector<64x256xf32>, vector<16x256xf32> -> vector<16x256xf32>
    %c64_147 = arith.constant 64 : index
    %c0_148 = arith.constant 0 : index
    %397 = vector.load %arg3[%c64_147, %c0_148] : memref<72x256xf32, #tpu.memory_space<vmem>>, vector<1x256xf32>
    %398 = vector.broadcast %397 : vector<1x256xf32> to vector<16x256xf32>
    %399 = arith.addf %396, %398 : vector<16x256xf32>
    %cst_149 = arith.constant 2.000000e+01 : f32
    %400 = vector.broadcast %cst_149 : f32 to vector<16x256xf32>
    %401 = arith.minimumf %399, %400 : vector<16x256xf32>
    %402 = math.exp %401 : vector<16x256xf32>
    %cst_150 = arith.constant 1.000000e+00 : f32
    %403 = vector.broadcast %cst_150 : f32 to vector<16x256xf32>
    %404 = arith.addf %403, %402 : vector<16x256xf32>
    %cst_151 = arith.constant 1.000000e+00 : f32
    %405 = vector.broadcast %cst_151 : f32 to vector<16x256xf32>
    %406 = arith.addf %405, %402 : vector<16x256xf32>
    %407 = arith.mulf %404, %406 : vector<16x256xf32>
    %cst_152 = arith.constant 1.000000e+00 : f32
    %408 = vector.broadcast %cst_152 : f32 to vector<16x256xf32>
    %409 = arith.subf %407, %408 : vector<16x256xf32>
    %410 = arith.mulf %399, %409 : vector<16x256xf32>
    %cst_153 = arith.constant 1.000000e+00 : f32
    %411 = vector.broadcast %cst_153 : f32 to vector<16x256xf32>
    %412 = arith.addf %407, %411 : vector<16x256xf32>
    %413 = tpu.reciprocal %412 {approx = true} : vector<16x256xf32> -> vector<16x256xf32>
    %414 = arith.mulf %410, %413 : vector<16x256xf32>
    %c0_154 = arith.constant 0 : index
    %c0_155 = arith.constant 0 : index
    %415 = vector.load %arg4[%c0_154, %c0_155] : memref<264x128xf32, #tpu.memory_space<vmem>>, vector<256x128xf32>
    %cst_156 = arith.constant dense<0.000000e+00> : vector<16x128xf32>
    %416 = tpu.matmul %414, %415, %cst_156 {dimension_numbers = #tpu.dot_dimension_numbers<[1], [0], [0], [1], [0, 0, 1, 1], [], []>} : vector<16x256xf32>, vector<256x128xf32>, vector<16x128xf32> -> vector<16x128xf32>
    %c256_157 = arith.constant 256 : index
    %c0_158 = arith.constant 0 : index
    %417 = vector.load %arg4[%c256_157, %c0_158] : memref<264x128xf32, #tpu.memory_space<vmem>>, vector<1x128xf32>
    %418 = vector.broadcast %417 : vector<1x128xf32> to vector<16x128xf32>
    %419 = arith.addf %416, %418 : vector<16x128xf32>
    %cst_159 = arith.constant 2.000000e+01 : f32
    %420 = vector.broadcast %cst_159 : f32 to vector<16x128xf32>
    %421 = arith.minimumf %419, %420 : vector<16x128xf32>
    %422 = math.exp %421 : vector<16x128xf32>
    %cst_160 = arith.constant 1.000000e+00 : f32
    %423 = vector.broadcast %cst_160 : f32 to vector<16x128xf32>
    %424 = arith.addf %423, %422 : vector<16x128xf32>
    %cst_161 = arith.constant 1.000000e+00 : f32
    %425 = vector.broadcast %cst_161 : f32 to vector<16x128xf32>
    %426 = arith.addf %425, %422 : vector<16x128xf32>
    %427 = arith.mulf %424, %426 : vector<16x128xf32>
    %cst_162 = arith.constant 1.000000e+00 : f32
    %428 = vector.broadcast %cst_162 : f32 to vector<16x128xf32>
    %429 = arith.subf %427, %428 : vector<16x128xf32>
    %430 = arith.mulf %419, %429 : vector<16x128xf32>
    %cst_163 = arith.constant 1.000000e+00 : f32
    %431 = vector.broadcast %cst_163 : f32 to vector<16x128xf32>
    %432 = arith.addf %427, %431 : vector<16x128xf32>
    %433 = tpu.reciprocal %432 {approx = true} : vector<16x128xf32> -> vector<16x128xf32>
    %434 = arith.mulf %430, %433 : vector<16x128xf32>
    %c0_164 = arith.constant 0 : index
    %c0_165 = arith.constant 0 : index
    %435 = vector.load %arg5[%c0_164, %c0_165] : memref<136x4xf32, #tpu.memory_space<vmem>>, vector<128x4xf32>
    %cst_166 = arith.constant dense<0.000000e+00> : vector<16x4xf32>
    %436 = tpu.matmul %434, %435, %cst_166 {dimension_numbers = #tpu.dot_dimension_numbers<[1], [0], [0], [1], [0, 0, 1, 1], [], []>} : vector<16x128xf32>, vector<128x4xf32>, vector<16x4xf32> -> vector<16x4xf32>
    %c128 = arith.constant 128 : index
    %c0_167 = arith.constant 0 : index
    %437 = vector.load %arg5[%c128, %c0_167] : memref<136x4xf32, #tpu.memory_space<vmem>>, vector<1x4xf32>
    %438 = vector.broadcast %437 : vector<1x4xf32> to vector<16x4xf32>
    %439 = arith.addf %436, %438 : vector<16x4xf32>
    %440 = vector.broadcast %20 : vector<16x1xf32> to vector<16x4xf32>
    %441 = arith.mulf %439, %440 : vector<16x4xf32>
    %442 = vector.broadcast %10 : vector<16x1xf32> to vector<16x4xf32>
    %443 = arith.addf %441, %442 : vector<16x4xf32>
    %444 = vector.extract_strided_slice %443 {offsets = [0, 0], sizes = [8, 4], strides = [1, 1]} : vector<16x4xf32> to vector<8x4xf32>
    %445 = tpu.transpose %444, [1, 0] : vector<8x4xf32> -> vector<4x8xf32>
    %c0_168 = arith.constant 0 : index
    %c0_169 = arith.constant 0 : index
    %c0_170 = arith.constant 0 : index
    %446 = vector.load %arg6[%c0_168, %c0_169, %c0_170] : memref<2x4x8xf32, #tpu.memory_space<vmem>>, vector<1x4x8xf32>
    %447 = vector.shape_cast %446 : vector<1x4x8xf32> to vector<4x8xf32>
    %448 = vector.shape_cast %445 : vector<4x8xf32> to vector<1x4x8xf32>
    tpu.vector_store %arg6[%c0_168, %c0_169, %c0_170], %448 {strides = array<i32>} : memref<2x4x8xf32, #tpu.memory_space<vmem>>, vector<1x4x8xf32>,
    %449 = vector.extract_strided_slice %443 {offsets = [8, 0], sizes = [8, 4], strides = [1, 1]} : vector<16x4xf32> to vector<8x4xf32>
    %450 = tpu.transpose %449, [1, 0] : vector<8x4xf32> -> vector<4x8xf32>
    %c1_171 = arith.constant 1 : index
    %c0_172 = arith.constant 0 : index
    %c0_173 = arith.constant 0 : index
    %451 = vector.load %arg6[%c1_171, %c0_172, %c0_173] : memref<2x4x8xf32, #tpu.memory_space<vmem>>, vector<1x4x8xf32>
    %452 = vector.shape_cast %451 : vector<1x4x8xf32> to vector<4x8xf32>
    %453 = vector.shape_cast %450 : vector<4x8xf32> to vector<1x4x8xf32>
    tpu.vector_store %arg6[%c1_171, %c0_172, %c0_173], %453 {strides = array<i32>} : memref<2x4x8xf32, #tpu.memory_space<vmem>>, vector<1x4x8xf32>,
    return
  }
}

</mosaic_0001>

<bundles_post_ra>
// kernel: tpu_custom_call.1
= control target key start
LH: loop header
LB: loop body
LE: loop exit
PB: predicated region body
PF: predicated region fallthrough
CT: control target
= control target key end

     0   :  { %s3401_s0 = inlined_call_operand.vmem [shape: f32[2,8,8], index: 0, kind: input, shape index: {}]   ;;  %s3402_s1 = inlined_call_operand.vmem [shape: f32[560,32], index: 1, kind: input, shape index: {}]   ;;  %s3403_s2 = inlined_call_operand.vmem [shape: f32[128,64], index: 2, kind: input, shape index: {}]   ;;  %s3404_s3 = inlined_call_operand.vmem [shape: f32[72,256], index: 3, kind: input, shape index: {}]   ;;  %s3405_s4 = inlined_call_operand.vmem [shape: f32[264,128], index: 4, kind: input, shape index: {}]   ;;  %s3406_s5 = inlined_call_operand.vmem [shape: f32[136,4], index: 5, kind: input, shape index: {}]   ;;  %s3407_s6 = inlined_call_operand.hbm [shape: f32[2,4,8], index: 6, kind: output, shape index: {}]  }
   0x1   :  { %v24_v0 = vld [vmem:[%s3401_s0] sm:$0xff]  ;;  %v2274_v1 = vld [vmem:[%s3401_s0 + $0x8] sm:$0xff] }
   0x2   :  { %25 = vxpose.xlu0.b32.start.end [1/1] (short) (narrow) %v24_v0, 8 }
   0xa   :  { %59 = vxpose.xlu0.b32.start.end [1/1] (short) (narrow) %v2274_v1, 8 }
   0xb   :  { %11 = vsyncpa [#allocation3], 0  ;;  %vm91_vm0 = vcmask 64512   ;;  %v2585_v6 = vmov 8.0   ;;  %v167_v23 = vld [vmem:[%s3402_s1] sm:$0xff]  ;;  %v214_v26 = vld [vmem:[%s3402_s1 + $0x38] sm:$0xff] }
   0xc   :  { %2443 = vrcp.f32 %v2585_v6  ;;  %191 = vmatpush.msra.mxu0 %v167_v23  ;;  %2376 = vmatpush.msra.mxu1 %v167_v23  ;;  %v279_v27 = vld [vmem:[%s3402_s1 + $0x88] sm:$0xff]  ;;  %v213_v28 = vld [vmem:[%s3402_s1 + $0x30] sm:$0xff]  ;;  %v278_v29 = vld [vmem:[%s3402_s1 + $0x80] sm:$0xff]  ;;  %vm217_vm12 = vcmask 261120   ;;  %vm348_vm14 = vcmask 130048   ;;  %s2587_s9 = smov 120  }
   0xd   :  { %236 = vmatpush.msra.mxu2 %v214_v26  ;;  %294 = vmatpush.msra.mxu3 %v279_v27  ;;  %v212_v58 = vld [vmem:[%s3402_s1 + $0x28] sm:$0xff]  ;;  %v277_v59 = vld [vmem:[%s3402_s1 + $0x78] sm:$0xff]  ;;  %v211_v60 = vld [vmem:[%s3402_s1 + $0x20] sm:$0xff]  ;;  %s2588_s10 = smov 112   ;;  %s2589_s11 = smov 104  }
   0xe   :  { %v276_v61 = vld [vmem:[%s3402_s1 + $0x70] sm:$0xff]  ;;  %v250_v62 = vld [vmem:[%s3402_s1 + $0x60] sm:$0xff]  ;;  %v249_v63 = vld [vmem:[%s3402_s1 + $0x58] sm:$0xff]  ;;  %s2591_s27 = smov [#allocation2]   ;;  %s2592_s7 = smov 64  }
   0xf   :  { %237 = vmatpush.msra.mxu2 %v213_v28  ;;  %295 = vmatpush.msra.mxu3 %v278_v29  ;;  %v248_v0 = vld [vmem:[%s3402_s1 + $0x50] sm:$0xff]  ;;  %v247_v1 = vld [vmem:[%s3402_s1 + $0x48] sm:$0xff]  ;;  %s2260_s28 = sshll.u32 %s2591_s27, 4  ;;  %s2593_s8 = smov 4   ;;  %s2261_s28 = int_to_ptr.vmem [resolvable:$true] %s2260_s28 }
  0x11   :  { %238 = vmatpush.msra.mxu2 %v212_v58  ;;  %296 = vmatpush.msra.mxu3 %v277_v59 }
  0x12   :  { %v2444_v7 = vpop.eup %2443 }
  0x13   :  { %v99_v8 = vmul.f32 8.0, %v2444_v7  ;;  %vm103_vm1 = vweird.f32 %v2444_v7  ;;  %239 = vmatpush.msra.mxu2 %v211_v60  ;;  %297 = vmatpush.msra.mxu3 %v276_v61 }
  0x15   :  { %v100_v9 = vsub.f32 1.0, %v99_v8  ;;  %265 = vmatpush.msrb.mxu2 %v250_v62 }
  0x17   :  { %v101_v10 = vmul.f32 %v2444_v7, %v100_v9  ;;  %266 = vmatpush.msrb.mxu2 %v249_v63  ;;  %v2419_v9 = vld [vmem:[%s3402_s1 + $0x90] ss:$0 sm:$0xff] }
  0x19   :  { %v102_v11 = vadd.f32 %v2444_v7, %v101_v10  ;;  %267 = vmatpush.msrb.mxu2 %v248_v0 }
  0x1b   :  { %v104_v12 = vsel %vm103_vm1, %v2444_v7, %v102_v11  ;;  %268 = vmatpush.msrb.mxu2 %v247_v1 }
  0xa6   :  { %v41_v2 = vpop.trf.xlu0 }
  0xa7   :  { %v92_v3 = vsel %vm91_vm0, %v41_v2, 0.0 }
  0xa8   :  { %93 = vadd.xlane.f32.xlu1 %v92_v3 }
  0xae   :  { %v75_v4 = vpop.trf.xlu0 }
  0xaf   :  { %v95_v5 = vsel %vm91_vm0, %v75_v4, 0.0 }
  0xb0   :  { %96 = vadd.xlane.f32.xlu1 %v95_v5 }
 0x11b   :  { %v94_v13 = vpop.xlane.xlu1 %93 }
 0x11c   :  { %v2637_v14 = vmul.f32 %v104_v12, %v94_v13 }
 0x11e   :  { %v107_v15 = vsub.f32 %v41_v2, %v2637_v14  ;;  %v2417_v2 = vld [vmem:[%s3402_s1 + $0x8] ss:$0 sm:$0xff] }
 0x120   :  { %v109_v16 = vmul.f32 %v107_v15, %v107_v15 }
 0x122   :  { %v111_v17 = vsel %vm91_vm0, %v109_v16, 0.0 }
 0x123   :  { %112 = vadd.xlane.f32.xlu2 %v111_v17  ;;  %v97_v18 = vpop.xlane.xlu1 %96  ;;  %v2420_v17 = vld [vmem:[%s3402_s1 + $0x68] ss:$0 sm:$0xff] }
 0x124   :  { %v2641_v19 = vmul.f32 %v104_v12, %v97_v18 }
 0x126   :  { %v108_v20 = vsub.f32 %v75_v4, %v2641_v19 }
 0x128   :  { %v110_v21 = vmul.f32 %v108_v20, %v108_v20 }
 0x12a   :  { %v114_v22 = vsel %vm91_vm0, %v110_v21, 0.0  ;;  %v2418_v21 = vld [vmem:[%s3402_s1 + $0x40] ss:$0 sm:$0xff] }
 0x12b   :  { %115 = vadd.xlane.f32.xlu2 %v114_v22 }
 0x196   :  { %v113_v24 = vpop.xlane.xlu2 %112 }
 0x197   :  { %v117_v25 = vmul.f32 %v113_v24, %v104_v12 }
 0x199   :  { %v119_v30 = vadd.f32 1e-05, %v117_v25  ;;  %v199_v25 = vlaneseq }
 0x19b   :  { %2445 = vrsqrt.f32 %v119_v30  ;;  %vm151_vm3 = vweird.f32 %v119_v30  ;;  %vm128_vm5 = vcmp.eq.f32.partialorder %v119_v30, inf  ;;  %v131_v46 = vand.u32 2147483648, %v119_v30 }
 0x19c   :  { %vm130_vm6 = vcmp.eq.f32.partialorder %v119_v30, 0.0  ;;  %v200_v26 = vshrl.u32 %v199_v25, 7  ;;  %v203_v27 = vand.u32 127, %v199_v25 }
 0x19e   :  { %v116_v31 = vpop.xlane.xlu2 %115  ;;  %v204_v28 = vshra.s32 %v200_v26, 3  ;;  %v206_v29 = vshra.s32 %v203_v27, 3 }
 0x19f   :  { %v118_v32 = vmul.f32 %v116_v31, %v104_v12 }
 0x1a0   :  { %vm207_vm13 = vcmp.eq.s32.totalorder %v204_v28, %v206_v29 }
 0x1a1   :  { %v2446_v33 = vpop.eup %2445  ;;  %v120_v34 = vadd.f32 1e-05, %v118_v32  ;;  %v2586_v32 = vmov -1e+30  }
 0x1a2   :  { %v122_v35 = vmul.f32 %v2446_v33, %v119_v30  ;;  %vm152_vm2 = vweird.f32 %v2446_v33 }
 0x1a3   :  { %2447 = vrsqrt.f32 %v120_v34  ;;  %vm153_vm4 = vmor %vm151_vm3, %vm152_vm2  ;;  %vm161_vm8 = vweird.f32 %v120_v34  ;;  %vm140_vm10 = vcmp.eq.f32.partialorder %v120_v34, inf  ;;  %v143_v55 = vand.u32 2147483648, %v120_v34 }
 0x1a4   :  { %v123_v36 = vmul.f32 %v2446_v33, %v122_v35  ;;  %vm142_vm11 = vcmp.eq.f32.partialorder %v120_v34, 0.0 }
 0x1a6   :  { %v124_v37 = vmul.f32 0.5, %v123_v36 }
 0x1a8   :  { %v125_v38 = vsub.f32 1.5, %v124_v37 }
 0x1a9   :  { %v2448_v39 = vpop.eup %2447 }
 0x1aa   :  { %v126_v40 = vmul.f32 %v2446_v33, %v125_v38  ;;  %v134_v41 = vmul.f32 %v2448_v39, %v120_v34  ;;  %vm162_vm7 = vweird.f32 %v2448_v39 }
 0x1ab   :  { %vm163_vm9 = vmor %vm161_vm8, %vm162_vm7  ;;  %vm934_vm8 = vcmask 523264  }
 0x1ac   :  { %v154_v42 = vsel %vm153_vm4, %v2446_v33, %v126_v40  ;;  %v135_v43 = vmul.f32 %v2448_v39, %v134_v41  ;;  %v127_v44 = vmul.f32 %v126_v40, %v119_v30  ;;  %v2730_v33 = vsel %vm207_vm13, 0.0, %v2586_v32 }
 0x1ad   :  { %v2660_v45 = vmul.f32 %v154_v42, %v107_v15 }
 0x1ae   :  { %v136_v47 = vmul.f32 0.5, %v135_v43  ;;  %v129_v48 = vsel %vm128_vm5, %v119_v30, %v127_v44  ;;  %v201_v30 = vadd.s32 8, %v200_v26 }
 0x1af   :  { %2275 = vmatmul.msk.f32.vlgmr.msra.gmra.mxu0 %vm91_vm0, %v2660_v45  ;;  %v2664_v49 = vsel %vm130_vm6, %v131_v46, %v129_v48 }
 0x1b0   :  { %v137_v50 = vsub.f32 1.5, %v136_v47  ;;  %v205_v35 = vshra.s32 %v201_v30, 3 }
 0x1b2   :  { %v138_v51 = vmul.f32 %v2448_v39, %v137_v50  ;;  %vm208_vm15 = vcmp.eq.s32.totalorder %v205_v35, %v206_v29 }
 0x1b4   :  { %v164_v52 = vsel %vm163_vm9, %v2448_v39, %v138_v51  ;;  %v139_v53 = vmul.f32 %v138_v51, %v120_v34  ;;  %v2734_v39 = vsel %vm208_vm15, 0.0, %v2586_v32 }
 0x1b5   :  { %v2666_v54 = vmul.f32 %v164_v52, %v108_v20 }
 0x1b6   :  { %v141_v56 = vsel %vm140_vm10, %v120_v34, %v139_v53 }
 0x1b7   :  { %2276 = vmatmul.msk.f32.vlgmr.msra.gmra.mxu1 %vm91_vm0, %v2666_v54  ;;  %v2670_v57 = vsel %vm142_vm11, %v143_v55, %v141_v56  ;;  %v305_v56 = vld [vmem:[%s3402_s1 + $0x98] sm:$0xff] }
 0x22c   :  { %v193_v3 = vpop.f32.mrf.mxu0 }
 0x22d   :  { %v2699_v4 = vadd.f32 %v2417_v2, %v193_v3 }
 0x22f   :  { %2277 = vmatmul.msk.f32.vlgmr.msra.gmra.mxu2 %vm217_vm12, %v2699_v4  ;;  %2281 = vmatmul.msk.f32.vlgmr.msra.gmra.mxu3 %vm217_vm12, %v2699_v4 }
 0x234   :  { %v196_v5 = vpop.f32.mrf.mxu1 }
 0x235   :  { %v2705_v6 = vadd.f32 %v2417_v2, %v196_v5 }
 0x237   :  { %2278 = vmatmul.msk.f32.gmra.mxu2 %vm217_vm12, %v2705_v6  ;;  %2282 = vmatmul.msk.f32.gmra.mxu3 %vm217_vm12, %v2705_v6 }
 0x23f   :  { %2279 = vmatmul.msk.f32.vlgmr.msrb.gmra.mxu2 %vm217_vm12, %v2699_v4 }
 0x247   :  { %2280 = vmatmul.msk.f32.gmra.mxu2 %vm217_vm12, %v2705_v6 }
 0x2b2   :  { %v241_v7 = vpop.f32.mrf.mxu2  ;;  %v299_v8 = vpop.f32.mrf.mxu3 }
 0x2b3   :  { %v300_v12 = vadd.f32 %v2419_v9, %v299_v8  ;;  %v242_v23 = vadd.f32 %v2418_v21, %v241_v7 }
 0x2ba   :  { %v244_v10 = vpop.f32.mrf.mxu2  ;;  %v302_v11 = vpop.f32.mrf.mxu3 }
 0x2bb   :  { %v303_v13 = vadd.f32 %v2419_v9, %v302_v11  ;;  %v245_v24 = vadd.f32 %v2418_v21, %v244_v10 }
 0x2bd   :  { %391 = vmatpush.msrb.mxu1 %v303_v13  ;;  %v2718_v15 = vpack.i.bf16 %v300_v12, %v303_v13 }
 0x2bf   :  { %392 = vmatpush.msrb.mxu1 %v300_v12 }
 0x2c1   :  { %552 = vmatpush.msra.mxu1 %v305_v56 }
 0x2c2   :  { %v270_v16 = vpop.f32.mrf.mxu2 }
 0x2c3   :  { %v271_v22 = vadd.f32 %v2420_v17, %v270_v16 }
 0x2ca   :  { %v273_v18 = vpop.f32.mrf.mxu2 }
 0x2cb   :  { %v274_v20 = vadd.f32 %v2420_v17, %v273_v18 }
 0x2cd   :  { %2283 = vmatpush.xpose.msk.msrb.mxu0 %vm91_vm0, %v274_v20 }
 0x2d1   :  { %2284 = vmatpush.xpose.msk.msrb.mxu0 %vm91_vm0, %v271_v22 }
 0x2d4   :  { %2285 = vmatmul.msk.f32.vlgmr.msrb.gmra.mxu0 %vm91_vm0, %v242_v23 }
 0x2dc   :  { %2286 = vmatmul.msk.f32.gmra.mxu0 %vm91_vm0, %v245_v24 }
 0x351   :  { %v338_v31 = vpop.f32.mrf.mxu0 }
 0x352   :  { %v344_v34 = vmul.f32 0.35355338, %v338_v31 }
 0x354   :  { %v346_v36 = vadd.f32 %v344_v34, %v2730_v33 }
 0x356   :  { %v349_v37 = vsel %vm348_vm14, %v346_v36, -inf }
 0x357   :  { %350 = vmax.xlane.f32.xlu0 %v349_v37 }
 0x359   :  { %v341_v38 = vpop.f32.mrf.mxu0 }
 0x35a   :  { %v345_v40 = vmul.f32 0.35355338, %v341_v38 }
 0x35c   :  { %v347_v41 = vadd.f32 %v345_v40, %v2734_v39 }
 0x35e   :  { %v352_v42 = vsel %vm348_vm14, %v347_v41, -inf }
 0x35f   :  { %353 = vmax.xlane.f32.xlu1 %v352_v42 }
 0x3ca   :  { %v351_v43 = vpop.xlane.xlu0 %350 }
 0x3cb   :  { %v355_v44 = vsub.f32 %v346_v36, %v351_v43 }
 0x3cd   :  { %v357_v46 = vmul.f32 1.442695, %v355_v44 }
 0x3cf   :  { %2449 = vpow2.f32 %v357_v46 }
 0x3d2   :  { %v354_v47 = vpop.xlane.xlu1 %353 }
 0x3d3   :  { %v356_v48 = vsub.f32 %v347_v41, %v354_v47 }
 0x3d5   :  { %v2450_v50 = vpop.eup %2449  ;;  %v359_v51 = vmul.f32 1.442695, %v356_v48 }
 0x3d6   :  { %v361_v52 = vsel %vm348_vm14, %v2450_v50, 0.0 }
 0x3d7   :  { %2451 = vpow2.f32 %v359_v51  ;;  %362 = vadd.xlane.f32.xlu2 %v361_v52 }
 0x3dd   :  { %v2452_v53 = vpop.eup %2451 }
 0x3de   :  { %v364_v55 = vsel %vm348_vm14, %v2452_v53, 0.0 }
 0x3df   :  { %365 = vadd.xlane.f32.xlu1 %v364_v55 }
 0x3ef   :  { %406 = vrot.lane.b32.xlu2 %v274_v20, %s2587_s9 }
 0x3f7   :  { %400 = vrot.lane.b32.xlu2 %v242_v23, %s2587_s9 }
 0x3f8   :  { %404 = vrot.lane.b32.xlu1 %v271_v22, %s2587_s9 }
 0x3ff   :  { %402 = vrot.lane.b32.xlu2 %v245_v24, %s2587_s9 }
 0x400   :  { %566 = vrot.lane.b32.xlu1 %v274_v20, %s2588_s10 }
 0x407   :  { %697 = vrot.lane.b32.xlu2 %v274_v20, %s2589_s11 }
 0x408   :  { %564 = vrot.lane.b32.xlu1 %v271_v22, %s2588_s10 }
 0x40f   :  { %695 = vrot.lane.b32.xlu2 %v271_v22, %s2589_s11 }
 0x410   :  { %560 = vrot.lane.b32.xlu1 %v242_v23, %s2588_s10 }
 0x417   :  { %691 = vrot.lane.b32.xlu2 %v242_v23, %s2589_s11 }
 0x418   :  { %562 = vrot.lane.b32.xlu1 %v245_v24, %s2588_s10 }
 0x41f   :  { %693 = vrot.lane.b32.xlu2 %v245_v24, %s2589_s11 }
 0x44a   :  { %v363_v58 = vpop.xlane.xlu2 %362 }
 0x44b   :  { %2453 = vrcp.f32 %v363_v58 }
 0x451   :  { %v2454_v59 = vpop.eup %2453 }
 0x452   :  { %v407_v60 = vpop.permute.xlu2 %406  ;;  %v366_v61 = vpop.xlane.xlu1 %365  ;;  %v369_v62 = vmul.f32 %v2454_v59, %v2450_v50 }
 0x453   :  { %2455 = vrcp.f32 %v366_v61  ;;  %2289 = vmatpush.xpose.msk.msra.mxu2 %vm91_vm0, %v407_v60 }
 0x454   :  { %2287 = vmatmul.msk.f32.vlgmr.msrb.gmra.mxu1 %vm348_vm14, %v369_v62 }
 0x459   :  { %v2456_v63 = vpop.eup %2455 }
 0x45a   :  { %v401_v0 = vpop.permute.xlu2 %400  ;;  %v370_v1 = vmul.f32 %v2456_v63, %v2452_v53 }
 0x45c   :  { %2288 = vmatmul.msk.f32.gmra.mxu1 %vm348_vm14, %v370_v1 }
 0x462   :  { %v403_v2 = vpop.permute.xlu2 %402 }
 0x46a   :  { %v698_v3 = vpop.permute.xlu2 %697  ;;  %v405_v5 = vpop.permute.xlu1 %404 }
 0x46b   :  { %2290 = vmatpush.xpose.msk.msra.mxu2 %vm91_vm0, %v405_v5  ;;  %2307 = vmatpush.xpose.msk.msrb.mxu1 %vm91_vm0, %v698_v3 }
 0x46e   :  { %2291 = vmatmul.msk.f32.vlgmr.msra.gmra.mxu2 %vm91_vm0, %v401_v0 }
 0x472   :  { %v696_v7 = vpop.permute.xlu2 %695  ;;  %v567_v8 = vpop.permute.xlu1 %566 }
 0x473   :  { %2299 = vmatpush.xpose.msk.msrb.mxu2 %vm91_vm0, %v567_v8  ;;  %2308 = vmatpush.xpose.msk.msrb.mxu1 %vm91_vm0, %v696_v7 }
 0x476   :  { %2292 = vmatmul.msk.f32.gmra.mxu2 %vm91_vm0, %v403_v2 }
 0x47a   :  { %v565_v9 = vpop.permute.xlu1 %564  ;;  %v692_v16 = vpop.permute.xlu2 %691 }
 0x47b   :  { %2300 = vmatpush.xpose.msk.msrb.mxu2 %vm91_vm0, %v565_v9 }
 0x482   :  { %v561_v10 = vpop.permute.xlu1 %560  ;;  %v694_v17 = vpop.permute.xlu2 %693 }
 0x483   :  { %2301 = vmatmul.msk.f32.vlgmr.msrb.gmra.mxu2 %vm91_vm0, %v561_v10 }
 0x48a   :  { %v563_v11 = vpop.permute.xlu1 %562 }
 0x48b   :  { %2302 = vmatmul.msk.f32.gmra.mxu2 %vm91_vm0, %v563_v11 }
 0x4d1   :  { %v394_v12 = vpop.f32.mrf.mxu1 }
 0x4d2   :  { %2297 = vmatmul.msk.f32.vlgmr.msra.gmra.mxu1 %vm91_vm0, %v394_v12 }
 0x4d9   :  { %v397_v13 = vpop.f32.mrf.mxu1 }
 0x4da   :  { %2298 = vmatmul.msk.f32.gmra.mxu1 %vm91_vm0, %v397_v13 }
 0x4e2   :  { %2309 = vmatmul.msk.f32.vlgmr.msrb.gmra.mxu1 %vm91_vm0, %v692_v16 }
 0x4ea   :  { %2310 = vmatmul.msk.f32.gmra.mxu1 %vm91_vm0, %v694_v17 }
 0x4f1   :  { %v433_v18 = vpop.f32.mrf.mxu2 }
 0x4f2   :  { %v439_v20 = vmul.f32 0.35355338, %v433_v18 }
 0x4f4   :  { %v441_v21 = vadd.f32 %v439_v20, %v2730_v33 }
 0x4f6   :  { %v443_v22 = vsel %vm348_vm14, %v441_v21, -inf }
 0x4f7   :  { %444 = vmax.xlane.f32.xlu1 %v443_v22 }
 0x4f9   :  { %v436_v23 = vpop.f32.mrf.mxu2 }
 0x4fa   :  { %v440_v24 = vmul.f32 0.35355338, %v436_v23 }
 0x4fc   :  { %v442_v25 = vadd.f32 %v440_v24, %v2734_v39 }
 0x4fe   :  { %v446_v26 = vsel %vm348_vm14, %v442_v25, -inf }
 0x4ff   :  { %447 = vmax.xlane.f32.xlu2 %v446_v26 }
 0x506   :  { %v593_v27 = vpop.f32.mrf.mxu2 }
 0x507   :  { %v599_v28 = vmul.f32 0.35355338, %v593_v27 }
 0x509   :  { %v601_v29 = vadd.f32 %v599_v28, %v2730_v33 }
 0x50b   :  { %v603_v30 = vsel %vm348_vm14, %v601_v29, -inf }
 0x50c   :  { %604 = vmax.xlane.f32.xlu1 %v603_v30 }
 0x50e   :  { %v596_v31 = vpop.f32.mrf.mxu2 }
 0x50f   :  { %v600_v32 = vmul.f32 0.35355338, %v596_v31 }
 0x511   :  { %v602_v34 = vadd.f32 %v600_v32, %v2734_v39 }
 0x513   :  { %v606_v35 = vsel %vm348_vm14, %v602_v34, -inf }
 0x514   :  { %607 = vmax.xlane.f32.xlu2 %v606_v35 }
 0x54f   :  { %v2779_v36 = vpop.f32.mrf.mxu1 }
 0x557   :  { %v2781_v37 = vpop.f32.mrf.mxu1 }
 0x55f   :  { %v724_v38 = vpop.f32.mrf.mxu1 }
 0x560   :  { %v730_v40 = vmul.f32 0.35355338, %v724_v38 }
 0x562   :  { %v732_v41 = vadd.f32 %v730_v40, %v2730_v33 }
 0x564   :  { %v734_v42 = vsel %vm348_vm14, %v732_v41, -inf }
 0x565   :  { %735 = vmax.xlane.f32.xlu0 %v734_v42 }
 0x567   :  { %v727_v43 = vpop.f32.mrf.mxu1 }
 0x568   :  { %v731_v44 = vmul.f32 0.35355338, %v727_v43 }
 0x56a   :  { %v445_v46 = vpop.xlane.xlu1 %444  ;;  %v733_v47 = vadd.f32 %v731_v44, %v2734_v39 }
 0x56b   :  { %v449_v48 = vsub.f32 %v441_v21, %v445_v46 }
 0x56c   :  { %v737_v50 = vsel %vm348_vm14, %v733_v47, -inf }
 0x56d   :  { %v451_v51 = vmul.f32 1.442695, %v449_v48  ;;  %738 = vmax.xlane.f32.xlu0 %v737_v50 }
 0x56f   :  { %2457 = vpow2.f32 %v451_v51 }
 0x572   :  { %v448_v52 = vpop.xlane.xlu2 %447 }
 0x573   :  { %v450_v53 = vsub.f32 %v442_v25, %v448_v52 }
 0x575   :  { %v2458_v55 = vpop.eup %2457  ;;  %v453_v56 = vmul.f32 1.442695, %v450_v53 }
 0x576   :  { %v455_v58 = vsel %vm348_vm14, %v2458_v55, 0.0 }
 0x577   :  { %2459 = vpow2.f32 %v453_v56  ;;  %456 = vadd.xlane.f32.xlu1 %v455_v58 }
 0x57d   :  { %v2460_v59 = vpop.eup %2459 }
 0x57e   :  { %v458_v60 = vsel %vm348_vm14, %v2460_v59, 0.0 }
 0x57f   :  { %459 = vadd.xlane.f32.xlu2 %v458_v60  ;;  %v605_v61 = vpop.xlane.xlu1 %604 }
 0x580   :  { %v609_v62 = vsub.f32 %v601_v29, %v605_v61  ;;  %v308_v61 = vld [vmem:[%s3402_s1 + $0xb0] sm:$0xff] }
 0x581   :  { %2388 = vrot.lane.b32.xlu0 %v2718_v15, %s2587_s9 }
 0x582   :  { %v611_v63 = vmul.f32 1.442695, %v609_v62 }
 0x584   :  { %2461 = vpow2.f32 %v611_v63 }
 0x587   :  { %v608_v7 = vpop.xlane.xlu2 %607 }
 0x588   :  { %v610_v11 = vsub.f32 %v602_v34, %v608_v7 }
 0x589   :  { %2398 = vrot.lane.b32.xlu0 %v2718_v15, %s2588_s10 }
 0x58a   :  { %v2462_v0 = vpop.eup %2461  ;;  %v613_v16 = vmul.f32 1.442695, %v610_v11 }
 0x58b   :  { %v615_v1 = vsel %vm348_vm14, %v2462_v0, 0.0 }
 0x58c   :  { %616 = vadd.xlane.f32.xlu2 %v615_v1 }
 0x5d8   :  { %v736_v2 = vpop.xlane.xlu0 %735 }
 0x5d9   :  { %v740_v3 = vsub.f32 %v732_v41, %v736_v2  ;;  %v306_v41 = vld [vmem:[%s3402_s1 + $0xa0] sm:$0xff] }
 0x5da   :  { %523 = vmatpush.msra.mxu0 %v306_v41 }
 0x5db   :  { %v742_v5 = vmul.f32 1.442695, %v740_v3 }
 0x5dd   :  { %2463 = vpow2.f32 %v742_v5 }
 0x5e0   :  { %v739_v8 = vpop.xlane.xlu0 %738 }
 0x5e1   :  { %v741_v9 = vsub.f32 %v733_v47, %v739_v8  ;;  %v2421_v8 = vld [vmem:[%s3402_s1 + $0xb8] ss:$0 sm:$0xff] }
 0x5e3   :  { %v2464_v10 = vpop.eup %2463  ;;  %v744_v12 = vmul.f32 1.442695, %v741_v9 }
 0x5e4   :  { %v746_v13 = vsel %vm348_vm14, %v2464_v10, 0.0 }
 0x5e5   :  { %2465 = vpow2.f32 %v744_v12  ;;  %747 = vadd.xlane.f32.xlu1 %v746_v13 }
 0x5e6   :  { %2467 = vpow2.f32 %v613_v16 }
 0x5ea   :  { %v457_v18 = vpop.xlane.xlu1 %456 }
 0x5eb   :  { %v2466_v17 = vpop.eup %2465  ;;  %2469 = vrcp.f32 %v457_v18 }
 0x5ec   :  { %v749_v20 = vsel %vm348_vm14, %v2466_v17, 0.0  ;;  %v2468_v21 = vpop.eup %2467 }
 0x5ed   :  { %750 = vadd.xlane.f32.xlu2 %v749_v20  ;;  %v618_v25 = vsel %vm348_vm14, %v2468_v21, 0.0 }
 0x5f1   :  { %v2470_v24 = vpop.eup %2469 }
 0x5f2   :  { %v460_v22 = vpop.xlane.xlu2 %459  ;;  %v463_v28 = vmul.f32 %v2470_v24, %v2458_v55  ;;  %v2590_v24 = vmov 32.0  }
 0x5f3   :  { %v2389_v23 = vpop.permute.xlu0 %2388  ;;  %2471 = vrcp.f32 %v460_v22 }
 0x5f4   :  { %v2390_v26 = vunpack.i.l.bf16 %v2389_v23  ;;  %v2391_v27 = vunpack.i.h.bf16 %v2389_v23 }
 0x5f5   :  { %619 = vadd.xlane.f32.xlu2 %v618_v25 }
 0x5f6   :  { %493 = vmatpush.msrb.mxu3 %v2390_v26 }
 0x5f8   :  { %494 = vmatpush.msrb.mxu3 %v2391_v27 }
 0x5f9   :  { %2293 = vmatmul.msk.f32.vlgmr.msrb.gmra.mxu3 %vm348_vm14, %v463_v28  ;;  %v2472_v30 = vpop.eup %2471 }
 0x5fa   :  { %v464_v35 = vmul.f32 %v2472_v30, %v2460_v59 }
 0x5fb   :  { %v2399_v29 = vpop.permute.xlu0 %2398 }
 0x5fc   :  { %v2400_v31 = vunpack.i.l.bf16 %v2399_v29  ;;  %v2401_v32 = vunpack.i.h.bf16 %v2399_v29 }
 0x5fe   :  { %651 = vmatpush.msra.mxu3 %v2400_v31  ;;  %2393 = vrot.lane.b32.xlu1 %v2718_v15, %s2589_s11  ;;  %v307_v15 = vld [vmem:[%s3402_s1 + $0xa8] sm:$0xff] }
 0x5ff   :  { %v617_v34 = vpop.xlane.xlu2 %616  ;;  %681 = vmatpush.msrb.mxu0 %v307_v15  ;;  %v887_v15 = vld [vmem:[%s3403_s2 + $0x30] sm:$0xff] }
 0x600   :  { %2473 = vrcp.f32 %v617_v34  ;;  %652 = vmatpush.msra.mxu3 %v2401_v32 }
 0x601   :  { %2294 = vmatmul.msk.f32.gmra.mxu3 %vm348_vm14, %v464_v35 }
 0x602   :  { %812 = vmatpush.msrb.mxu3 %v308_v61 }
 0x606   :  { %v2474_v38 = vpop.eup %2473 }
 0x607   :  { %v623_v40 = vmul.f32 %v2474_v38, %v2462_v0 }
 0x609   :  { %2303 = vmatmul.msk.f32.vlgmr.msra.gmra.mxu3 %vm348_vm14, %v623_v40 }
 0x658   :  { %v748_v43 = vpop.xlane.xlu1 %747 }
 0x660   :  { %v751_v42 = vpop.xlane.xlu2 %750 }
 0x668   :  { %v620_v44 = vpop.xlane.xlu2 %619 }
 0x669   :  { %2475 = vrcp.f32 %v620_v44  ;;  %v888_v44 = vld [vmem:[%s3403_s2 + $0x38] sm:$0xff] }
 0x66a   :  { %2477 = vrcp.f32 %v748_v43  ;;  %v889_v43 = vld [vmem:[%s3403_s2 + $0x40] sm:$0xff] }
 0x66b   :  { %2479 = vrcp.f32 %v751_v42  ;;  %v890_v42 = vld [vmem:[%s3403_s2 + $0x48] sm:$0xff] }
 0x66c   :  { %2481 = vrcp.f32 %v2590_v24  ;;  %v924_v24 = vld [vmem:[%s3402_s1 + $0xc0] sm:$0xff] }
 0x66f   :  { %v2476_v46 = vpop.eup %2475 }
 0x670   :  { %v2394_v47 = vpop.permute.xlu1 %2393  ;;  %v624_v48 = vmul.f32 %v2476_v46, %v2468_v21  ;;  %v2478_v50 = vpop.eup %2477 }
 0x671   :  { %v2395_v51 = vunpack.i.l.bf16 %v2394_v47  ;;  %v2396_v52 = vunpack.i.h.bf16 %v2394_v47  ;;  %v754_v53 = vmul.f32 %v2478_v50, %v2464_v10  ;;  %v2480_v55 = vpop.eup %2479  ;;  %v931_v50 = vld [vmem:[%s3402_s1 + $0xf8] sm:$0xff] }
 0x672   :  { %2304 = vmatmul.msk.f32.gmra.mxu3 %vm348_vm14, %v624_v48  ;;  %v755_v58 = vmul.f32 %v2480_v55, %v2466_v17  ;;  %v2482_v25 = vpop.eup %2481  ;;  %949 = vmatpush.msra.mxu1 %v931_v50 }
 0x673   :  { %782 = vmatpush.msra.mxu2 %v2395_v51  ;;  %v837_v26 = vmul.f32 32.0, %v2482_v25  ;;  %vm841_vm1 = vweird.f32 %v2482_v25  ;;  %v930_v51 = vld [vmem:[%s3402_s1 + $0xf0] sm:$0xff] }
 0x674   :  { %950 = vmatpush.msra.mxu1 %v930_v51 }
 0x675   :  { %783 = vmatpush.msra.mxu2 %v2396_v52  ;;  %v838_v27 = vsub.f32 1.0, %v837_v26  ;;  %v929_v52 = vld [vmem:[%s3402_s1 + $0xe8] sm:$0xff] }
 0x676   :  { %2311 = vmatmul.msk.f32.vlgmr.msra.gmra.mxu2 %vm348_vm14, %v754_v53  ;;  %951 = vmatpush.msra.mxu1 %v929_v52 }
 0x67c   :  { %v496_v56 = vpop.f32.mrf.mxu3 }
 0x67d   :  { %2295 = vmatmul.msk.f32.vlgmr.msra.gmra.mxu0 %vm91_vm0, %v496_v56  ;;  %v928_v56 = vld [vmem:[%s3402_s1 + $0xe0] sm:$0xff] }
 0x67e   :  { %2312 = vmatmul.msk.f32.gmra.mxu2 %vm348_vm14, %v755_v58  ;;  %911 = vmatpush.msra.mxu0 %v890_v42 }
 0x67f   :  { %952 = vmatpush.msra.mxu1 %v928_v56  ;;  %v1056_v56 = vld [vmem:[%s3402_s1 + $0x168] sm:$0xff] }
 0x680   :  { %912 = vmatpush.msra.mxu0 %v889_v43  ;;  %1071 = vmatpush.msra.mxu3 %v1056_v56 }
 0x682   :  { %913 = vmatpush.msra.mxu0 %v888_v44 }
 0x684   :  { %v499_v59 = vpop.f32.mrf.mxu3  ;;  %914 = vmatpush.msra.mxu0 %v887_v15 }
 0x685   :  { %2296 = vmatmul.msk.f32.gmra.mxu0 %vm91_vm0, %v499_v59 }
 0x68c   :  { %v654_v60 = vpop.f32.mrf.mxu3 }
 0x68d   :  { %2305 = vmatmul.msk.f32.vlgmr.msrb.gmra.mxu0 %vm91_vm0, %v654_v60  ;;  %v927_v60 = vld [vmem:[%s3402_s1 + $0xd8] sm:$0xff] }
 0x68e   :  { %953 = vmatpush.msra.mxu1 %v927_v60  ;;  %v1055_v60 = vld [vmem:[%s3402_s1 + $0x160] sm:$0xff] }
 0x68f   :  { %1072 = vmatpush.msra.mxu3 %v1055_v60 }
 0x6f5   :  { %v657_v62 = vpop.f32.mrf.mxu3 }
 0x6f6   :  { %2306 = vmatmul.msk.f32.gmra.mxu0 %vm91_vm0, %v657_v62 }
 0x6f9   :  { %v785_v63 = vpop.f32.mrf.mxu2 }
 0x6fa   :  { %2313 = vmatmul.msk.f32.vlgmr.msrb.gmra.mxu3 %vm91_vm0, %v785_v63  ;;  %v525_v1 = vpop.f32.mrf.mxu0 }
 0x6fb   :  { %v555_v5 = vadd.f32 %v2779_v36, %v525_v1 }
 0x701   :  { %v788_v0 = vpop.f32.mrf.mxu2 }
 0x702   :  { %2314 = vmatmul.msk.f32.gmra.mxu3 %vm91_vm0, %v788_v0  ;;  %v528_v2 = vpop.f32.mrf.mxu0 }
 0x703   :  { %v558_v13 = vadd.f32 %v2781_v37, %v528_v2  ;;  %v839_v37 = vmul.f32 %v2482_v25, %v838_v27 }
 0x705   :  { %v840_v28 = vadd.f32 %v2482_v25, %v839_v37 }
 0x70a   :  { %v683_v3 = vpop.f32.mrf.mxu0 }
 0x70b   :  { %v689_v7 = vadd.f32 %v683_v3, %v555_v5  ;;  %v2422_v5 = vld [vmem:[%s3402_s1 + $0x108] ss:$0 sm:$0xff] }
 0x773   :  { %v686_v12 = vpop.f32.mrf.mxu0 }
 0x774   :  { %v690_v17 = vadd.f32 %v686_v12, %v558_v13 }
 0x77d   :  { %v814_v9 = vpop.f32.mrf.mxu3 }
 0x77e   :  { %v820_v10 = vadd.f32 %v814_v9, %v689_v7 }
 0x780   :  { %v824_v11 = vadd.f32 %v2421_v8, %v820_v10  ;;  %v2423_v10 = vld [vmem:[%s3402_s1 + $0x110] ss:$0 sm:$0xff] }
 0x782   :  { %v826_v16 = vadd.f32 %v824_v11, %v2699_v4  ;;  %v2829_v4 = vsel %vm841_vm1, %v2482_v25, %v840_v28  ;;  %v2424_v25 = vld [vmem:[%s3403_s2 + $0x50] ss:$0 sm:$0xff] }
 0x784   :  { %v830_v18 = vsel %vm217_vm12, %v826_v16, 0.0 }
 0x785   :  { %831 = vadd.xlane.f32.xlu0 %v830_v18  ;;  %v817_v20 = vpop.f32.mrf.mxu3 }
 0x786   :  { %v821_v21 = vadd.f32 %v817_v20, %v690_v17 }
 0x788   :  { %v825_v36 = vadd.f32 %v2421_v8, %v821_v21 }
 0x78a   :  { %v827_v22 = vadd.f32 %v825_v36, %v2705_v6 }
 0x78c   :  { %v833_v23 = vsel %vm217_vm12, %v827_v22, 0.0 }
 0x78d   :  { %834 = vadd.xlane.f32.xlu2 %v833_v23  ;;  %v925_v23 = vld [vmem:[%s3402_s1 + $0xc8] sm:$0xff] }
 0x7f8   :  { %v832_v29 = vpop.xlane.xlu0 %831 }
 0x7f9   :  { %v843_v30 = vmul.f32 %v2829_v4, %v832_v29 }
 0x7fb   :  { %v845_v31 = vsub.f32 %v826_v16, %v843_v30 }
 0x7fd   :  { %v847_v32 = vmul.f32 %v845_v31, %v845_v31 }
 0x7ff   :  { %v849_v6 = vsel %vm217_vm12, %v847_v32, 0.0 }
 0x800   :  { %850 = vadd.xlane.f32.xlu1 %v849_v6  ;;  %v835_v34 = vpop.xlane.xlu2 %834 }
 0x801   :  { %v844_v35 = vmul.f32 %v2829_v4, %v835_v34 }
 0x803   :  { %v846_v38 = vsub.f32 %v827_v22, %v844_v35  ;;  %v926_v22 = vld [vmem:[%s3402_s1 + $0xd0] sm:$0xff] }
 0x804   :  { %954 = vmatpush.msra.mxu1 %v926_v22  ;;  %v2426_v22 = vld [vmem:[%s3402_s1 + $0x118] ss:$0 sm:$0xff] }
 0x805   :  { %v848_v40 = vmul.f32 %v846_v38, %v846_v38 }
 0x806   :  { %955 = vmatpush.msra.mxu1 %v925_v23 }
 0x807   :  { %v852_v41 = vsel %vm217_vm12, %v848_v40, 0.0 }
 0x808   :  { %853 = vadd.xlane.f32.xlu2 %v852_v41  ;;  %956 = vmatpush.msra.mxu1 %v924_v24 }
 0x873   :  { %v851_v46 = vpop.xlane.xlu1 %850 }
 0x874   :  { %v855_v47 = vmul.f32 %v851_v46, %v2829_v4 }
 0x876   :  { %v857_v48 = vadd.f32 1e-05, %v855_v47 }
 0x878   :  { %2483 = vrsqrt.f32 %v857_v48  ;;  %vm865_vm3 = vweird.f32 %v857_v48 }
 0x87b   :  { %v854_v53 = vpop.xlane.xlu2 %853 }
 0x87c   :  { %v856_v55 = vmul.f32 %v854_v53, %v2829_v4 }
 0x87e   :  { %v2484_v58 = vpop.eup %2483  ;;  %v858_v59 = vadd.f32 1e-05, %v856_v55  ;;  %v1021_v55 = vld [vmem:[%s3402_s1 + $0x140] sm:$0xff] }
 0x87f   :  { %v860_v61 = vmul.f32 %v2484_v58, %v857_v48  ;;  %vm866_vm2 = vweird.f32 %v2484_v58  ;;  %1042 = vmatpush.msrb.mxu2 %v1021_v55 }
 0x880   :  { %2485 = vrsqrt.f32 %v858_v59  ;;  %vm867_vm4 = vmor %vm865_vm3, %vm866_vm2  ;;  %vm875_vm6 = vweird.f32 %v858_v59 }
 0x881   :  { %v861_v62 = vmul.f32 %v2484_v58, %v860_v61  ;;  %v1084_v61 = vld [vmem:[%s3402_s1 + $0x188] sm:$0xff] }
 0x883   :  { %v862_v63 = vmul.f32 0.5, %v861_v62  ;;  %v1019_v62 = vld [vmem:[%s3402_s1 + $0x130] sm:$0xff] }
 0x885   :  { %v863_v0 = vsub.f32 1.5, %v862_v63  ;;  %v1054_v63 = vld [vmem:[%s3402_s1 + $0x158] sm:$0xff] }
 0x886   :  { %v2486_v1 = vpop.eup %2485  ;;  %1073 = vmatpush.msra.mxu3 %v1054_v63 }
 0x887   :  { %v864_v2 = vmul.f32 %v2484_v58, %v863_v0  ;;  %v870_v3 = vmul.f32 %v2486_v1, %v858_v59  ;;  %vm876_vm5 = vweird.f32 %v2486_v1  ;;  %v1020_v59 = vld [vmem:[%s3402_s1 + $0x138] sm:$0xff]  ;;  %v1083_v0 = vld [vmem:[%s3402_s1 + $0x180] sm:$0xff] }
 0x888   :  { %vm877_vm7 = vmor %vm875_vm6, %vm876_vm5  ;;  %1043 = vmatpush.msrb.mxu2 %v1020_v59 }
 0x889   :  { %v868_v7 = vsel %vm867_vm4, %v2484_v58, %v864_v2  ;;  %v871_v8 = vmul.f32 %v2486_v1, %v870_v3  ;;  %v1085_v58 = vld [vmem:[%s3402_s1 + $0x190] sm:$0xff]  ;;  %v1082_v3 = vld [vmem:[%s3402_s1 + $0x178] sm:$0xff] }
 0x88a   :  { %v879_v9 = vmul.f32 %v868_v7, %v845_v31  ;;  %v2425_v31 = vld [vmem:[%s3402_s1 + $0x100] ss:$0 sm:$0xff]  ;;  %1100 = vmatpush.msrb.mxu0 %v1085_v58  ;;  %1044 = vmatpush.msrb.mxu2 %v1019_v62  ;;  %v1053_v2 = vld [vmem:[%s3402_s1 + $0x150] sm:$0xff] }
 0x88b   :  { %v872_v11 = vmul.f32 0.5, %v871_v8  ;;  %1074 = vmatpush.msra.mxu3 %v1053_v2 }
 0x88c   :  { %v882_v12 = vmul.f32 %v2422_v5, %v879_v9  ;;  %1101 = vmatpush.msrb.mxu0 %v1084_v61 }
 0x88d   :  { %v873_v13 = vsub.f32 1.5, %v872_v11 }
 0x88e   :  { %v885_v16 = vadd.f32 %v2423_v10, %v882_v12  ;;  %1102 = vmatpush.msrb.mxu0 %v1083_v0 }
 0x88f   :  { %v874_v17 = vmul.f32 %v2486_v1, %v873_v13 }
 0x890   :  { %2315 = vmatmul.msk.f32.vlgmr.msra.gmra.mxu0 %vm217_vm12, %v885_v16 }
 0x891   :  { %v878_v18 = vsel %vm877_vm7, %v2486_v1, %v874_v17  ;;  %v1018_v1 = vld [vmem:[%s3402_s1 + $0x128] sm:$0xff]  ;;  %1103 = vmatpush.msrb.mxu0 %v1082_v3 }
 0x892   :  { %v880_v20 = vmul.f32 %v878_v18, %v846_v38  ;;  %1045 = vmatpush.msrb.mxu2 %v1018_v1 }
 0x894   :  { %v883_v21 = vmul.f32 %v2422_v5, %v880_v20 }
 0x896   :  { %v886_v36 = vadd.f32 %v2423_v10, %v883_v21 }
 0x898   :  { %2316 = vmatmul.msk.f32.gmra.mxu0 %vm217_vm12, %v886_v36 }
 0x90d   :  { %v916_v26 = vpop.f32.mrf.mxu0 }
 0x90e   :  { %v917_v27 = vadd.f32 %v2424_v25, %v916_v26  ;;  %v2427_v26 = vld [vmem:[%s3402_s1 + $0x120] ss:$0 sm:$0xff] }
 0x910   :  { %v922_v37 = vmax.f32 %v917_v27, 0.0 }
 0x912   :  { %2317 = vmatmul.msk.f32.vlgmr.msra.gmra.mxu1 %vm934_vm8, %v922_v37 }
 0x915   :  { %v919_v28 = vpop.f32.mrf.mxu0 }
 0x916   :  { %v920_v29 = vadd.f32 %v2424_v25, %v919_v28 }
 0x918   :  { %v923_v30 = vmax.f32 %v920_v29, 0.0 }
 0x91a   :  { %2318 = vmatmul.msk.f32.gmra.mxu1 %vm934_vm8, %v923_v30 }
 0x98f   :  { %v958_v32 = vpop.f32.mrf.mxu1 }
 0x990   :  { %v959_v6 = vadd.f32 %v2425_v31, %v958_v32 }
 0x992   :  { %v964_v34 = vadd.f32 %v959_v6, %v885_v16 }
 0x994   :  { %v968_v35 = vsel %vm217_vm12, %v964_v34, 0.0 }
 0x995   :  { %969 = vadd.xlane.f32.xlu2 %v968_v35 }
 0x997   :  { %v961_v38 = vpop.f32.mrf.mxu1 }
 0x998   :  { %v962_v40 = vadd.f32 %v2425_v31, %v961_v38  ;;  %v2428_v38 = vld [vmem:[%s3402_s1 + $0x198] ss:$0 sm:$0xff] }
 0x99a   :  { %v965_v41 = vadd.f32 %v962_v40, %v886_v36 }
 0x99c   :  { %v971_v42 = vsel %vm217_vm12, %v965_v41, 0.0 }
 0x99d   :  { %972 = vadd.xlane.f32.xlu2 %v971_v42 }
 0xa08   :  { %v970_v43 = vpop.xlane.xlu2 %969 }
 0xa09   :  { %v974_v44 = vmul.f32 %v970_v43, %v2829_v4 }
 0xa0b   :  { %v976_v15 = vsub.f32 %v964_v34, %v974_v44 }
 0xa0d   :  { %v978_v46 = vmul.f32 %v976_v15, %v976_v15 }
 0xa0f   :  { %v980_v47 = vsel %vm217_vm12, %v978_v46, 0.0 }
 0xa10   :  { %981 = vadd.xlane.f32.xlu2 %v980_v47  ;;  %v973_v48 = vpop.xlane.xlu2 %972 }
 0xa11   :  { %v975_v50 = vmul.f32 %v973_v48, %v2829_v4 }
 0xa13   :  { %v2894_v51 = vsub.f32 %v965_v41, %v975_v50  ;;  %v2429_v50 = vld [vmem:[%s3402_s1 + $0x148] ss:$0 sm:$0xff] }
 0xa15   :  { %v979_v52 = vmul.f32 %v2894_v51, %v2894_v51 }
 0xa17   :  { %v983_v53 = vsel %vm217_vm12, %v979_v52, 0.0 }
 0xa18   :  { %984 = vadd.xlane.f32.xlu0 %v983_v53 }
 0xa83   :  { %v982_v5 = vpop.xlane.xlu2 %981 }
 0xa84   :  { %v986_v7 = vmul.f32 %v982_v5, %v2829_v4 }
 0xa86   :  { %v988_v8 = vadd.f32 1e-05, %v986_v7 }
 0xa88   :  { %2487 = vrsqrt.f32 %v988_v8  ;;  %vm996_vm10 = vweird.f32 %v988_v8 }
 0xa8b   :  { %v985_v9 = vpop.xlane.xlu0 %984 }
 0xa8c   :  { %v987_v10 = vmul.f32 %v985_v9, %v2829_v4 }
 0xa8e   :  { %v2488_v11 = vpop.eup %2487  ;;  %v989_v12 = vadd.f32 1e-05, %v987_v10 }
 0xa8f   :  { %v991_v13 = vmul.f32 %v2488_v11, %v988_v8  ;;  %vm997_vm9 = vweird.f32 %v2488_v11 }
 0xa90   :  { %2489 = vrsqrt.f32 %v989_v12  ;;  %vm998_vm11 = vmor %vm996_vm10, %vm997_vm9  ;;  %vm1006_vm15 = vweird.f32 %v989_v12 }
 0xa91   :  { %v992_v16 = vmul.f32 %v2488_v11, %v991_v13 }
 0xa93   :  { %v993_v17 = vmul.f32 0.5, %v992_v16  ;;  %v1111_v16 = vld [vmem:[%s3402_s1 + $0x1a0] sm:$0xff] }
 0xa95   :  { %v994_v18 = vsub.f32 1.5, %v993_v17 }
 0xa96   :  { %v2490_v20 = vpop.eup %2489 }
 0xa97   :  { %v995_v21 = vmul.f32 %v2488_v11, %v994_v18  ;;  %v1001_v36 = vmul.f32 %v2490_v20, %v989_v12  ;;  %vm1007_vm13 = vweird.f32 %v2490_v20 }
 0xa98   :  { %vm1008_vm1 = vmor %vm1006_vm15, %vm1007_vm13 }
 0xa99   :  { %v999_v23 = vsel %vm998_vm11, %v2488_v11, %v995_v21  ;;  %v1002_v24 = vmul.f32 %v2490_v20, %v1001_v36 }
 0xa9a   :  { %v1010_v25 = vmul.f32 %v999_v23, %v976_v15  ;;  %v2430_v15 = vld [vmem:[%s3402_s1 + $0x170] ss:$0 sm:$0xff] }
 0xa9b   :  { %v1003_v27 = vmul.f32 0.5, %v1002_v24 }
 0xa9c   :  { %v1013_v37 = vmul.f32 %v2426_v22, %v1010_v25 }
 0xa9d   :  { %v1004_v28 = vsub.f32 1.5, %v1003_v27 }
 0xa9e   :  { %v2943_v29 = vadd.f32 %v2427_v26, %v1013_v37 }
 0xa9f   :  { %v1005_v30 = vmul.f32 %v2490_v20, %v1004_v28 }
 0xaa0   :  { %2319 = vmatmul.msk.f32.vlgmr.msrb.gmra.mxu2 %vm217_vm12, %v2943_v29  ;;  %2321 = vmatmul.msk.f32.vlgmr.msra.gmra.mxu3 %vm217_vm12, %v2943_v29 }
 0xaa1   :  { %v1009_v31 = vsel %vm1008_vm1, %v2490_v20, %v1005_v30  ;;  %2323 = vmatmul.msk.f32.vlgmr.msrb.gmra.mxu0 %vm217_vm12, %v2943_v29 }
 0xaa2   :  { %v1011_v32 = vmul.f32 %v1009_v31, %v2894_v51 }
 0xaa4   :  { %v1014_v6 = vmul.f32 %v2426_v22, %v1011_v32 }
 0xaa6   :  { %v2952_v34 = vadd.f32 %v2427_v26, %v1014_v6 }
 0xaa8   :  { %2320 = vmatmul.msk.f32.gmra.mxu2 %vm217_vm12, %v2952_v34  ;;  %2322 = vmatmul.msk.f32.gmra.mxu3 %vm217_vm12, %v2952_v34 }
 0xaa9   :  { %2324 = vmatmul.msk.f32.gmra.mxu0 %vm217_vm12, %v2952_v34 }
 0xb1e   :  { %v1105_v35 = vpop.f32.mrf.mxu0 }
 0xb1f   :  { %v1106_v42 = vadd.f32 %v2428_v38, %v1105_v35 }
 0xb23   :  { %v1076_v40 = vpop.f32.mrf.mxu3  ;;  %v1047_v48 = vpop.f32.mrf.mxu2 }
 0xb24   :  { %v1077_v51 = vadd.f32 %v2430_v15, %v1076_v40  ;;  %v1048_v52 = vadd.f32 %v2429_v50, %v1047_v48 }
 0xb26   :  { %v1108_v41 = vpop.f32.mrf.mxu0 }
 0xb27   :  { %v1109_v43 = vadd.f32 %v2428_v38, %v1108_v41 }
 0xb29   :  { %1196 = vmatpush.msra.mxu2 %v1109_v43  ;;  %v2963_v44 = vpack.i.bf16 %v1106_v42, %v1109_v43 }
 0xb2b   :  { %1197 = vmatpush.msra.mxu2 %v1106_v42  ;;  %v1079_v46 = vpop.f32.mrf.mxu3  ;;  %v1050_v53 = vpop.f32.mrf.mxu2 }
 0xb2c   :  { %v1080_v47 = vadd.f32 %v2430_v15, %v1079_v46  ;;  %v1051_v55 = vadd.f32 %v2429_v50, %v1050_v53 }
 0xb2d   :  { %1357 = vmatpush.msrb.mxu2 %v1111_v16 }
 0xb2e   :  { %2325 = vmatpush.xpose.msk.msrb.mxu1 %vm91_vm0, %v1080_v47 }
 0xb32   :  { %2326 = vmatpush.xpose.msk.msrb.mxu1 %vm91_vm0, %v1077_v51 }
 0xb35   :  { %2327 = vmatmul.msk.f32.vlgmr.msrb.gmra.mxu1 %vm91_vm0, %v1048_v52 }
 0xb3d   :  { %2328 = vmatmul.msk.f32.gmra.mxu1 %vm91_vm0, %v1051_v55 }
 0xbb2   :  { %v1144_v56 = vpop.f32.mrf.mxu1 }
 0xbb3   :  { %v1150_v58 = vmul.f32 0.35355338, %v1144_v56 }
 0xbb5   :  { %v1152_v59 = vadd.f32 %v1150_v58, %v2730_v33 }
 0xbb7   :  { %v1154_v60 = vsel %vm348_vm14, %v1152_v59, -inf }
 0xbb8   :  { %1155 = vmax.xlane.f32.xlu2 %v1154_v60 }
 0xbba   :  { %v1147_v61 = vpop.f32.mrf.mxu1 }
 0xbbb   :  { %v1151_v62 = vmul.f32 0.35355338, %v1147_v61 }
 0xbbd   :  { %v1153_v63 = vadd.f32 %v1151_v62, %v2734_v39 }
 0xbbf   :  { %v1157_v0 = vsel %vm348_vm14, %v1153_v63, -inf }
 0xbc0   :  { %1158 = vmax.xlane.f32.xlu1 %v1157_v0 }
 0xbd9   :  { %1211 = vrot.lane.b32.xlu1 %v1080_v47, %s2587_s9 }
 0xbe1   :  { %1207 = vrot.lane.b32.xlu1 %v1051_v55, %s2587_s9 }
 0xbe9   :  { %1496 = vrot.lane.b32.xlu1 %v1048_v52, %s2589_s11 }
 0xbf1   :  { %1498 = vrot.lane.b32.xlu1 %v1051_v55, %s2589_s11 }
 0xc2b   :  { %v1156_v1 = vpop.xlane.xlu2 %1155 }
 0xc2c   :  { %v1160_v2 = vsub.f32 %v1152_v59, %v1156_v1 }
 0xc2e   :  { %v1162_v3 = vmul.f32 1.442695, %v1160_v2 }
 0xc30   :  { %2491 = vpow2.f32 %v1162_v3 }
 0xc33   :  { %v1159_v5 = vpop.xlane.xlu1 %1158 }
 0xc34   :  { %v1161_v7 = vsub.f32 %v1153_v63, %v1159_v5 }
 0xc36   :  { %v2492_v8 = vpop.eup %2491  ;;  %v1164_v9 = vmul.f32 1.442695, %v1161_v7 }
 0xc37   :  { %v1166_v10 = vsel %vm348_vm14, %v2492_v8, 0.0 }
 0xc38   :  { %2493 = vpow2.f32 %v1164_v9  ;;  %1167 = vadd.xlane.f32.xlu0 %v1166_v10 }
 0xc3e   :  { %v2494_v11 = vpop.eup %2493 }
 0xc3f   :  { %v1169_v12 = vsel %vm348_vm14, %v2494_v11, 0.0 }
 0xc40   :  { %1170 = vadd.xlane.f32.xlu2 %v1169_v12 }
 0xc4b   :  { %v1212_v13 = vpop.permute.xlu1 %1211 }
 0xc4c   :  { %1209 = vrot.lane.b32.xlu0 %v1077_v51, %s2587_s9  ;;  %2331 = vmatpush.xpose.msk.msrb.mxu3 %vm91_vm0, %v1212_v13 }
 0xc53   :  { %v1208_v27 = vpop.permute.xlu1 %1207 }
 0xc54   :  { %1502 = vrot.lane.b32.xlu0 %v1080_v47, %s2589_s11 }
 0xc58   :  { %1205 = vrot.lane.b32.xlu2 %v1048_v52, %s2587_s9 }
 0xc5b   :  { %v1497_v38 = vpop.permute.xlu1 %1496 }
 0xc5c   :  { %1500 = vrot.lane.b32.xlu0 %v1077_v51, %s2589_s11 }
 0xc60   :  { %1371 = vrot.lane.b32.xlu2 %v1080_v47, %s2588_s10 }
 0xc63   :  { %v1499_v46 = vpop.permute.xlu1 %1498 }
 0xc64   :  { %1365 = vrot.lane.b32.xlu0 %v1048_v52, %s2588_s10 }
 0xc68   :  { %1369 = vrot.lane.b32.xlu2 %v1077_v51, %s2588_s10 }
 0xc70   :  { %1367 = vrot.lane.b32.xlu2 %v1051_v55, %s2588_s10 }
 0xcab   :  { %v1168_v17 = vpop.xlane.xlu0 %1167 }
 0xcac   :  { %2495 = vrcp.f32 %v1168_v17 }
 0xcb2   :  { %v2496_v18 = vpop.eup %2495 }
 0xcb3   :  { %v1174_v20 = vmul.f32 %v2496_v18, %v2492_v8  ;;  %v1171_v21 = vpop.xlane.xlu2 %1170 }
 0xcb4   :  { %2497 = vrcp.f32 %v1171_v21 }
 0xcb5   :  { %2329 = vmatmul.msk.f32.vlgmr.msra.gmra.mxu2 %vm348_vm14, %v1174_v20 }
 0xcba   :  { %v2498_v36 = vpop.eup %2497 }
 0xcbb   :  { %v1206_v22 = vpop.permute.xlu2 %1205  ;;  %v1175_v23 = vmul.f32 %v2498_v36, %v2494_v11 }
 0xcbd   :  { %2330 = vmatmul.msk.f32.gmra.mxu2 %vm348_vm14, %v1175_v23 }
 0xcbe   :  { %v1210_v24 = vpop.permute.xlu0 %1209 }
 0xcbf   :  { %2332 = vmatpush.xpose.msk.msrb.mxu3 %vm91_vm0, %v1210_v24 }
 0xcc2   :  { %2333 = vmatmul.msk.f32.vlgmr.msrb.gmra.mxu3 %vm91_vm0, %v1206_v22 }
 0xcc3   :  { %v1372_v25 = vpop.permute.xlu2 %1371 }
 0xcc4   :  { %2341 = vmatpush.xpose.msk.msra.mxu3 %vm91_vm0, %v1372_v25 }
 0xcc6   :  { %v1503_v26 = vpop.permute.xlu0 %1502 }
 0xcc7   :  { %2349 = vmatpush.xpose.msk.msra.mxu2 %vm91_vm0, %v1503_v26 }
 0xcca   :  { %2334 = vmatmul.msk.f32.gmra.mxu3 %vm91_vm0, %v1208_v27 }
 0xccb   :  { %v1370_v37 = vpop.permute.xlu2 %1369 }
 0xccc   :  { %2342 = vmatpush.xpose.msk.msra.mxu3 %vm91_vm0, %v1370_v37 }
 0xcce   :  { %v1501_v28 = vpop.permute.xlu0 %1500 }
 0xccf   :  { %2350 = vmatpush.xpose.msk.msra.mxu2 %vm91_vm0, %v1501_v28 }
 0xcd3   :  { %v1368_v31 = vpop.permute.xlu2 %1367 }
 0xcd6   :  { %v1366_v30 = vpop.permute.xlu0 %1365 }
 0xcd7   :  { %2343 = vmatmul.msk.f32.vlgmr.msra.gmra.mxu3 %vm91_vm0, %v1366_v30 }
 0xcdf   :  { %2344 = vmatmul.msk.f32.gmra.mxu3 %vm91_vm0, %v1368_v31 }
 0xd38   :  { %v1199_v32 = vpop.f32.mrf.mxu2 }
 0xd39   :  { %2339 = vmatmul.msk.f32.vlgmr.msrb.gmra.mxu2 %vm91_vm0, %v1199_v32 }
 0xd40   :  { %v1202_v6 = vpop.f32.mrf.mxu2 }
 0xd41   :  { %2340 = vmatmul.msk.f32.gmra.mxu2 %vm91_vm0, %v1202_v6 }
 0xd45   :  { %v1238_v35 = vpop.f32.mrf.mxu3 }
 0xd46   :  { %v1244_v40 = vmul.f32 0.35355338, %v1238_v35 }
 0xd48   :  { %v1246_v41 = vadd.f32 %v1244_v40, %v2730_v33 }
 0xd49   :  { %2351 = vmatmul.msk.f32.vlgmr.msra.gmra.mxu2 %vm91_vm0, %v1497_v38 }
 0xd4a   :  { %v1248_v42 = vsel %vm348_vm14, %v1246_v41, -inf }
 0xd4b   :  { %1249 = vmax.xlane.f32.xlu0 %v1248_v42 }
 0xd4d   :  { %v1241_v43 = vpop.f32.mrf.mxu3 }
 0xd4e   :  { %v1245_v15 = vmul.f32 0.35355338, %v1241_v43 }
 0xd50   :  { %v1247_v47 = vadd.f32 %v1245_v15, %v2734_v39 }
 0xd51   :  { %2352 = vmatmul.msk.f32.gmra.mxu2 %vm91_vm0, %v1499_v46 }
 0xd52   :  { %v1251_v48 = vsel %vm348_vm14, %v1247_v47, -inf }
 0xd53   :  { %1252 = vmax.xlane.f32.xlu1 %v1251_v48 }
 0xd5a   :  { %v1398_v50 = vpop.f32.mrf.mxu3 }
 0xd5b   :  { %v1404_v51 = vmul.f32 0.35355338, %v1398_v50 }
 0xd5d   :  { %v1406_v52 = vadd.f32 %v1404_v51, %v2730_v33 }
 0xd5f   :  { %v1408_v53 = vsel %vm348_vm14, %v1406_v52, -inf }
 0xd60   :  { %1409 = vmax.xlane.f32.xlu0 %v1408_v53 }
 0xd62   :  { %v1401_v2 = vpop.f32.mrf.mxu3 }
 0xd63   :  { %v1405_v7 = vmul.f32 0.35355338, %v1401_v2 }
 0xd65   :  { %v1407_v13 = vadd.f32 %v1405_v7, %v2734_v39 }
 0xd67   :  { %v1411_v18 = vsel %vm348_vm14, %v1407_v13, -inf }
 0xdbc   :  { %v3018_v55 = vpop.f32.mrf.mxu2 }
 0xdbe   :  { %v1250_v56 = vpop.xlane.xlu0 %1249 }
 0xdbf   :  { %v1254_v58 = vsub.f32 %v1246_v41, %v1250_v56 }
 0xdc1   :  { %v1256_v59 = vmul.f32 1.442695, %v1254_v58 }
 0xdc3   :  { %2499 = vpow2.f32 %v1256_v59 }
 0xdc4   :  { %v3020_v60 = vpop.f32.mrf.mxu2 }
 0xdc6   :  { %v1253_v0 = vpop.xlane.xlu1 %1252 }
 0xdc7   :  { %v1255_v5 = vsub.f32 %v1247_v47, %v1253_v0 }
 0xdc9   :  { %v3022_v61 = vpop.eup %2499  ;;  %v1258_v9 = vmul.f32 1.442695, %v1255_v5 }
 0xdca   :  { %v1260_v62 = vsel %vm348_vm14, %v3022_v61, 0.0 }
 0xdcb   :  { %1261 = vadd.xlane.f32.xlu0 %v1260_v62  ;;  %2501 = vpow2.f32 %v1258_v9 }
 0xdcc   :  { %v1529_v63 = vpop.f32.mrf.mxu2 }
 0xdcd   :  { %v1535_v1 = vmul.f32 0.35355338, %v1529_v63 }
 0xdcf   :  { %v1537_v3 = vadd.f32 %v1535_v1, %v2730_v33 }
 0xdd1   :  { %v1539_v8 = vsel %vm348_vm14, %v1537_v3, -inf  ;;  %v2502_v21 = vpop.eup %2501 }
 0xdd2   :  { %1540 = vmax.xlane.f32.xlu2 %v1539_v8  ;;  %v1263_v36 = vsel %vm348_vm14, %v2502_v21, 0.0 }
 0xdd3   :  { %v1410_v11 = vpop.xlane.xlu0 %1409 }
 0xdd4   :  { %v1532_v10 = vpop.f32.mrf.mxu2  ;;  %v1414_v17 = vsub.f32 %v1406_v52, %v1410_v11 }
 0xdd5   :  { %v1536_v12 = vmul.f32 0.35355338, %v1532_v10 }
 0xdd6   :  { %v1416_v33 = vmul.f32 1.442695, %v1414_v17 }
 0xdd7   :  { %v1538_v16 = vadd.f32 %v1536_v12, %v2734_v39 }
 0xdd8   :  { %2503 = vpow2.f32 %v1416_v33  ;;  %v1867_v33 = vld [vmem:[%s3403_s2] sm:$0xff] }
 0xdd9   :  { %v1542_v20 = vsel %vm348_vm14, %v1538_v16, -inf }
 0xdda   :  { %1412 = vmax.xlane.f32.xlu2 %v1411_v18  ;;  %1543 = vmax.xlane.f32.xlu1 %v1542_v20  ;;  %v1114_v20 = vld [vmem:[%s3402_s1 + $0x1b8] sm:$0xff] }
 0xdde   :  { %v2504_v22 = vpop.eup %2503 }
 0xddf   :  { %v1420_v23 = vsel %vm348_vm14, %v2504_v22, 0.0 }
 0xde2   :  { %1264 = vadd.xlane.f32.xlu2 %v1263_v36 }
 0xdea   :  { %1421 = vadd.xlane.f32.xlu2 %v1420_v23 }
 0xdf3   :  { %2403 = vrot.lane.b32.xlu1 %v2963_v44, %s2587_s9 }
 0xdfb   :  { %2413 = vrot.lane.b32.xlu1 %v2963_v44, %s2588_s10 }
 0xe3e   :  { %v1262_v40 = vpop.xlane.xlu0 %1261 }
 0xe45   :  { %v1541_v39 = vpop.xlane.xlu2 %1540 }
 0xe46   :  { %v1545_v24 = vsub.f32 %v1537_v3, %v1541_v39  ;;  %v1113_v3 = vld [vmem:[%s3402_s1 + $0x1b0] sm:$0xff] }
 0xe48   :  { %v1547_v25 = vmul.f32 1.442695, %v1545_v24 }
 0xe4a   :  { %2505 = vpow2.f32 %v1547_v25 }
 0xe4d   :  { %v1544_v26 = vpop.xlane.xlu1 %1543  ;;  %v1413_v27 = vpop.xlane.xlu2 %1412 }
 0xe4e   :  { %v1546_v37 = vsub.f32 %v1538_v16, %v1544_v26  ;;  %v1415_v31 = vsub.f32 %v1407_v13, %v1413_v27  ;;  %v2431_v27 = vld [vmem:[%s3402_s1 + $0x1c0] ss:$0 sm:$0xff] }
 0xe50   :  { %v2506_v28 = vpop.eup %2505  ;;  %v1549_v30 = vmul.f32 1.442695, %v1546_v37  ;;  %v1418_v6 = vmul.f32 1.442695, %v1415_v31 }
 0xe51   :  { %v1551_v32 = vsel %vm348_vm14, %v2506_v28, 0.0 }
 0xe52   :  { %1552 = vadd.xlane.f32.xlu0 %v1551_v32  ;;  %2507 = vpow2.f32 %v1549_v30 }
 0xe53   :  { %2509 = vpow2.f32 %v1418_v6 }
 0xe54   :  { %2511 = vrcp.f32 %v1262_v40 }
 0xe55   :  { %v1265_v43 = vpop.xlane.xlu2 %1264 }
 0xe56   :  { %2513 = vrcp.f32 %v1265_v43 }
 0xe58   :  { %v2508_v35 = vpop.eup %2507 }
 0xe59   :  { %v1554_v38 = vsel %vm348_vm14, %v2508_v35, 0.0  ;;  %v2510_v41 = vpop.eup %2509 }
 0xe5a   :  { %1555 = vadd.xlane.f32.xlu2 %v1554_v38  ;;  %v1423_v42 = vsel %vm348_vm14, %v2510_v41, 0.0  ;;  %v2512_v46 = vpop.eup %2511 }
 0xe5b   :  { %v1268_v50 = vmul.f32 %v2512_v46, %v3022_v61  ;;  %v1112_v61 = vld [vmem:[%s3402_s1 + $0x1a8] sm:$0xff] }
 0xe5c   :  { %v2514_v53 = vpop.eup %2513  ;;  %1328 = vmatpush.msra.mxu1 %v1112_v61  ;;  %v1728_v61 = vld [vmem:[%s3402_s1 + $0x1f8] sm:$0xff] }
 0xe5d   :  { %v1422_v51 = vpop.xlane.xlu2 %1421  ;;  %v1269_v59 = vmul.f32 %v2514_v53, %v2502_v21  ;;  %v1686_v53 = vld [vmem:[%s3403_s2 + $0x60] sm:$0xff] }
 0xe5e   :  { %2515 = vrcp.f32 %v1422_v51  ;;  %1486 = vmatpush.msrb.mxu1 %v1113_v3 }
 0xe62   :  { %1424 = vadd.xlane.f32.xlu2 %v1423_v42 }
 0xe65   :  { %v2404_v15 = vpop.permute.xlu1 %2403 }
 0xe66   :  { %v2405_v47 = vunpack.i.l.bf16 %v2404_v15  ;;  %2408 = vrot.lane.b32.xlu0 %v2963_v44, %s2589_s11  ;;  %v2406_v48 = vunpack.i.h.bf16 %v2404_v15  ;;  %v2516_v44 = vpop.eup %2515 }
 0xe67   :  { %v1428_v62 = vmul.f32 %v2516_v44, %v2504_v22 }
 0xe68   :  { %1298 = vmatpush.msra.mxu0 %v2405_v47 }
 0xe6a   :  { %1299 = vmatpush.msra.mxu0 %v2406_v48 }
 0xe6b   :  { %2335 = vmatmul.msk.f32.vlgmr.msra.gmra.mxu0 %vm348_vm14, %v1268_v50 }
 0xe6d   :  { %v2414_v52 = vpop.permute.xlu1 %2413 }
 0xe6e   :  { %v2415_v56 = vunpack.i.l.bf16 %v2414_v52  ;;  %v2416_v58 = vunpack.i.h.bf16 %v2414_v52  ;;  %v1687_v52 = vld [vmem:[%s3403_s2 + $0x68] sm:$0xff] }
 0xe70   :  { %1456 = vmatpush.msrb.mxu0 %v2415_v56  ;;  %v1685_v56 = vld [vmem:[%s3403_s2 + $0x58] sm:$0xff] }
 0xe72   :  { %1457 = vmatpush.msrb.mxu0 %v2416_v58 }
 0xe73   :  { %2336 = vmatmul.msk.f32.gmra.mxu0 %vm348_vm14, %v1269_v59 }
 0xe74   :  { %1617 = vmatpush.msra.mxu0 %v1114_v20 }
 0xe7b   :  { %2345 = vmatmul.msk.f32.vlgmr.msrb.gmra.mxu0 %vm348_vm14, %v1428_v62  ;;  %v1729_v62 = vld [vmem:[%s3402_s1 + $0x200] sm:$0xff] }
 0xe7c   :  { %1916 = vmatpush.msrb.mxu0 %v1867_v33  ;;  %1746 = vmatpush.msrb.mxu2 %v1729_v62 }
 0xe7e   :  { %1747 = vmatpush.msrb.mxu2 %v1728_v61 }
 0xec5   :  { %v1553_v0 = vpop.xlane.xlu0 %1552 }
 0xec6   :  { %2517 = vrcp.f32 %v1553_v0 }
 0xecc   :  { %v2518_v5 = vpop.eup %2517 }
 0xecd   :  { %v1556_v63 = vpop.xlane.xlu2 %1555  ;;  %v1559_v9 = vmul.f32 %v2518_v5, %v2506_v28 }
 0xed5   :  { %v1425_v1 = vpop.xlane.xlu2 %1424 }
 0xed6   :  { %2519 = vrcp.f32 %v1425_v1 }
 0xed7   :  { %2521 = vrcp.f32 %v1556_v63  ;;  %v1727_v63 = vld [vmem:[%s3402_s1 + $0x1f0] sm:$0xff] }
 0xed8   :  { %v2409_v2 = vpop.permute.xlu0 %2408  ;;  %1748 = vmatpush.msrb.mxu2 %v1727_v63 }
 0xed9   :  { %v2410_v7 = vunpack.i.l.bf16 %v2409_v2  ;;  %v2411_v8 = vunpack.i.h.bf16 %v2409_v2  ;;  %v1726_v2 = vld [vmem:[%s3402_s1 + $0x1e8] sm:$0xff] }
 0xeda   :  { %1749 = vmatpush.msrb.mxu2 %v1726_v2 }
 0xedb   :  { %1587 = vmatpush.msrb.mxu3 %v2410_v7  ;;  %v1725_v7 = vld [vmem:[%s3402_s1 + $0x1e0] sm:$0xff] }
 0xedc   :  { %v2520_v10 = vpop.eup %2519  ;;  %1750 = vmatpush.msrb.mxu2 %v1725_v7 }
 0xedd   :  { %1588 = vmatpush.msrb.mxu3 %v2411_v8  ;;  %v1429_v11 = vmul.f32 %v2520_v10, %v2510_v41  ;;  %v2522_v12 = vpop.eup %2521 }
 0xede   :  { %2353 = vmatmul.msk.f32.vlgmr.msrb.gmra.mxu3 %vm348_vm14, %v1559_v9  ;;  %v1560_v13 = vmul.f32 %v2522_v12, %v2508_v35 }
 0xedf   :  { %2346 = vmatmul.msk.f32.gmra.mxu0 %vm348_vm14, %v1429_v11 }
 0xee6   :  { %2354 = vmatmul.msk.f32.gmra.mxu3 %vm348_vm14, %v1560_v13 }
 0xee8   :  { %v1301_v16 = vpop.f32.mrf.mxu0 }
 0xee9   :  { %2337 = vmatmul.msk.f32.vlgmr.msra.gmra.mxu1 %vm91_vm0, %v1301_v16 }
 0xef0   :  { %v1304_v17 = vpop.f32.mrf.mxu0 }
 0xef1   :  { %2338 = vmatmul.msk.f32.gmra.mxu1 %vm91_vm0, %v1304_v17  ;;  %v2432_v17 = vld [vmem:[%s3402_s1 + $0x210] ss:$0 sm:$0xff] }
 0xef8   :  { %v1459_v18 = vpop.f32.mrf.mxu0 }
 0xef9   :  { %2347 = vmatmul.msk.f32.vlgmr.msrb.gmra.mxu1 %vm91_vm0, %v1459_v18 }
 0xf5c   :  { %v1462_v21 = vpop.f32.mrf.mxu0 }
 0xf5d   :  { %2348 = vmatmul.msk.f32.gmra.mxu1 %vm91_vm0, %v1462_v21  ;;  %v2433_v21 = vld [vmem:[%s3402_s1 + $0x218] ss:$0 sm:$0xff] }
 0xf61   :  { %v1590_v36 = vpop.f32.mrf.mxu3 }
 0xf62   :  { %2355 = vmatmul.msk.f32.vlgmr.msra.gmra.mxu0 %vm91_vm0, %v1590_v36 }
 0xf66   :  { %v1330_v23 = vpop.f32.mrf.mxu1 }
 0xf67   :  { %v1360_v25 = vadd.f32 %v3018_v55, %v1330_v23 }
 0xf69   :  { %v1593_v22 = vpop.f32.mrf.mxu3 }
 0xf6a   :  { %2356 = vmatmul.msk.f32.gmra.mxu0 %vm91_vm0, %v1593_v22 }
 0xf6e   :  { %v1333_v39 = vpop.f32.mrf.mxu1 }
 0xf6f   :  { %v1363_v32 = vadd.f32 %v3020_v60, %v1333_v39 }
 0xf72   :  { %2363 = vmatmul.msk.f32.vlgmr.msrb.gmra.mxu0 %vm91_vm0, %v2660_v45 }
 0xf76   :  { %v1488_v24 = vpop.f32.mrf.mxu1 }
 0xf77   :  { %v1494_v26 = vadd.f32 %v1488_v24, %v1360_v25 }
 0xf7a   :  { %2364 = vmatmul.msk.f32.gmra.mxu0 %vm91_vm0, %v2666_v54 }
 0xfda   :  { %v1491_v31 = vpop.f32.mrf.mxu1 }
 0xfdb   :  { %v1495_v6 = vadd.f32 %v1491_v31, %v1363_v32  ;;  %v1722_v31 = vld [vmem:[%s3402_s1 + $0x1c8] sm:$0xff]  ;;  %v2434_v32 = vld [vmem:[%s3403_s2 + $0x78] ss:$0 sm:$0xff] }
 0xfdf   :  { %v1619_v37 = vpop.f32.mrf.mxu0 }
 0xfe0   :  { %v1625_v28 = vadd.f32 %v1619_v37, %v1494_v26 }
 0xfe2   :  { %v1629_v30 = vadd.f32 %v2431_v27, %v1625_v28  ;;  %v1724_v28 = vld [vmem:[%s3402_s1 + $0x1d8] sm:$0xff] }
 0xfe3   :  { %1751 = vmatpush.msrb.mxu2 %v1724_v28 }
 0xfe4   :  { %v1631_v45 = vadd.f32 %v1629_v30, %v2943_v29  ;;  %v1723_v30 = vld [vmem:[%s3402_s1 + $0x1d0] sm:$0xff] }
 0xfe5   :  { %1752 = vmatpush.msrb.mxu2 %v1723_v30 }
 0xfe6   :  { %v1635_v54 = vsel %vm217_vm12, %v1631_v45, 0.0 }
 0xfe7   :  { %v1622_v35 = vpop.f32.mrf.mxu0  ;;  %1636 = vadd.xlane.f32.xlu0 %v1635_v54  ;;  %1753 = vmatpush.msrb.mxu2 %v1722_v31 }
 0xfe8   :  { %v1626_v38 = vadd.f32 %v1622_v35, %v1495_v6 }
 0xfea   :  { %v1630_v55 = vadd.f32 %v2431_v27, %v1626_v38 }
 0xfec   :  { %v1632_v40 = vadd.f32 %v1630_v55, %v2952_v34  ;;  %v1688_v34 = vld [vmem:[%s3403_s2 + $0x70] sm:$0xff] }
 0xfed   :  { %1709 = vmatpush.msra.mxu1 %v1688_v34 }
 0xfee   :  { %v1638_v41 = vsel %vm217_vm12, %v1632_v40, 0.0 }
 0xfef   :  { %1639 = vadd.xlane.f32.xlu1 %v1638_v41  ;;  %1710 = vmatpush.msra.mxu1 %v1687_v52 }
 0xff1   :  { %1711 = vmatpush.msra.mxu1 %v1686_v53 }
 0xff3   :  { %1712 = vmatpush.msra.mxu1 %v1685_v56 }
0x105a   :  { %v1637_v42 = vpop.xlane.xlu0 %1636 }
0x105b   :  { %v1641_v43 = vmul.f32 %v1637_v42, %v2829_v4 }
0x105d   :  { %v1643_v15 = vsub.f32 %v1631_v45, %v1641_v43 }
0x105f   :  { %v1645_v46 = vmul.f32 %v1643_v15, %v1643_v15 }
0x1061   :  { %v1647_v60 = vsel %vm217_vm12, %v1645_v46, 0.0 }
0x1062   :  { %1648 = vadd.xlane.f32.xlu2 %v1647_v60  ;;  %v1640_v29 = vpop.xlane.xlu1 %1639 }
0x1063   :  { %v1642_v47 = vmul.f32 %v1640_v29, %v2829_v4 }
0x1065   :  { %v1644_v48 = vsub.f32 %v1632_v40, %v1642_v47  ;;  %v2435_v40 = vld [vmem:[%s3402_s1 + $0x208] ss:$0 sm:$0xff] }
0x1067   :  { %v1646_v50 = vmul.f32 %v1644_v48, %v1644_v48 }
0x1069   :  { %v1650_v51 = vsel %vm217_vm12, %v1646_v50, 0.0 }
0x106a   :  { %1651 = vadd.xlane.f32.xlu2 %v1650_v51 }
0x10d5   :  { %v1649_v58 = vpop.xlane.xlu2 %1648 }
0x10d6   :  { %v1653_v59 = vmul.f32 %v1649_v58, %v2829_v4 }
0x10d8   :  { %v1655_v44 = vadd.f32 1e-05, %v1653_v59 }
0x10da   :  { %2523 = vrsqrt.f32 %v1655_v44  ;;  %vm1663_vm14 = vweird.f32 %v1655_v44 }
0x10dd   :  { %v1652_v0 = vpop.xlane.xlu2 %1651 }
0x10de   :  { %v1654_v1 = vmul.f32 %v1652_v0, %v2829_v4 }
0x10e0   :  { %v2524_v3 = vpop.eup %2523  ;;  %v1656_v5 = vadd.f32 1e-05, %v1654_v1 }
0x10e1   :  { %v1658_v8 = vmul.f32 %v2524_v3, %v1655_v44  ;;  %vm1664_vm0 = vweird.f32 %v2524_v3 }
0x10e2   :  { %2525 = vrsqrt.f32 %v1656_v5  ;;  %vm1665_vm2 = vmor %vm1663_vm14, %vm1664_vm0  ;;  %vm1673_vm4 = vweird.f32 %v1656_v5 }
0x10e3   :  { %v1659_v9 = vmul.f32 %v2524_v3, %v1658_v8 }
0x10e5   :  { %v1660_v10 = vmul.f32 0.5, %v1659_v9 }
0x10e7   :  { %v1661_v11 = vsub.f32 1.5, %v1660_v10 }
0x10e8   :  { %v2526_v12 = vpop.eup %2525 }
0x10e9   :  { %v1662_v13 = vmul.f32 %v2524_v3, %v1661_v11  ;;  %v1668_v16 = vmul.f32 %v2526_v12, %v1656_v5  ;;  %vm1674_vm3 = vweird.f32 %v2526_v12 }
0x10ea   :  { %vm1675_vm5 = vmor %vm1673_vm4, %vm1674_vm3 }
0x10eb   :  { %v1666_v18 = vsel %vm1665_vm2, %v2524_v3, %v1662_v13  ;;  %v1669_v20 = vmul.f32 %v2526_v12, %v1668_v16  ;;  %v2436_v13 = vld [vmem:[%s3402_s1 + $0x220] ss:$0 sm:$0xff] }
0x10ec   :  { %v1677_v33 = vmul.f32 %v1666_v18, %v1643_v15 }
0x10ed   :  { %v1670_v36 = vmul.f32 0.5, %v1669_v20  ;;  %v2437_v20 = vld [vmem:[%s3402_s1 + $0x228] ss:$0 sm:$0xff] }
0x10ee   :  { %v1680_v22 = vmul.f32 %v2432_v17, %v1677_v33 }
0x10ef   :  { %v1671_v23 = vsub.f32 1.5, %v1670_v36 }
0x10f0   :  { %v1683_v39 = vadd.f32 %v2433_v21, %v1680_v22 }
0x10f1   :  { %v1672_v24 = vmul.f32 %v2526_v12, %v1671_v23 }
0x10f2   :  { %2357 = vmatmul.msk.f32.vlgmr.msra.gmra.mxu1 %vm217_vm12, %v1683_v39 }
0x10f3   :  { %v1676_v25 = vsel %vm1675_vm5, %v2526_v12, %v1672_v24 }
0x10f4   :  { %v1678_v26 = vmul.f32 %v1676_v25, %v1644_v48 }
0x10f6   :  { %v1681_v27 = vmul.f32 %v2432_v17, %v1678_v26 }
0x10f8   :  { %v1684_v37 = vadd.f32 %v2433_v21, %v1681_v27 }
0x10fa   :  { %2358 = vmatmul.msk.f32.gmra.mxu1 %vm217_vm12, %v1684_v37 }
0x116f   :  { %v1714_v45 = vpop.f32.mrf.mxu1 }
0x1170   :  { %v1715_v6 = vadd.f32 %v2434_v32, %v1714_v45 }
0x1172   :  { %v1720_v54 = vmax.f32 %v1715_v6, 0.0 }
0x1174   :  { %2359 = vmatmul.msk.f32.vlgmr.msrb.gmra.mxu2 %vm934_vm8, %v1720_v54 }
0x1177   :  { %v1717_v35 = vpop.f32.mrf.mxu1 }
0x1178   :  { %v1718_v38 = vadd.f32 %v2434_v32, %v1717_v35 }
0x117a   :  { %v1721_v55 = vmax.f32 %v1718_v38, 0.0 }
0x117c   :  { %2360 = vmatmul.msk.f32.gmra.mxu2 %vm934_vm8, %v1721_v55 }
0x11f7   :  { %v1755_v41 = vpop.f32.mrf.mxu2 }
0x11f8   :  { %v1756_v42 = vadd.f32 %v2435_v40, %v1755_v41  ;;  %v1870_v41 = vld [vmem:[%s3403_s2 + $0x18] sm:$0xff] }
0x11fa   :  { %v1761_v43 = vadd.f32 %v1756_v42, %v1683_v39  ;;  %v1869_v42 = vld [vmem:[%s3403_s2 + $0x10] sm:$0xff] }
0x11fc   :  { %v1765_v15 = vsel %vm217_vm12, %v1761_v43, 0.0 }
0x11fd   :  { %1766 = vadd.xlane.f32.xlu2 %v1765_v15 }
0x11ff   :  { %v1758_v46 = vpop.f32.mrf.mxu2 }
0x1200   :  { %v1759_v60 = vadd.f32 %v2435_v40, %v1758_v46  ;;  %v1871_v40 = vld [vmem:[%s3403_s2 + $0x20] sm:$0xff] }
0x1201   :  { %1890 = vmatpush.msra.mxu3 %v1871_v40  ;;  %v2055_v40 = vld [vmem:[%s3405_s4 + $0x60] sm:$0xff] }
0x1202   :  { %v1762_v29 = vadd.f32 %v1759_v60, %v1684_v37 }
0x1203   :  { %1891 = vmatpush.msra.mxu3 %v1870_v41  ;;  %v2074_v41 = vld [vmem:[%s3405_s4 + $0xf8] sm:$0xff] }
0x1204   :  { %v1768_v47 = vsel %vm217_vm12, %v1762_v29, 0.0  ;;  %2100 = vmatpush.msra.mxu0 %v2074_v41 }
0x1205   :  { %1769 = vadd.xlane.f32.xlu2 %v1768_v47  ;;  %1892 = vmatpush.msra.mxu3 %v1869_v42  ;;  %v1943_v47 = vld [vmem:[%s3404_s3 + $0x78] sm:$0xff] }
0x1206   :  { %1988 = vmatpush.msra.mxu2 %v1943_v47  ;;  %v2054_v42 = vld [vmem:[%s3405_s4 + $0x58] sm:$0xff]  ;;  %v2051_v47 = vld [vmem:[%s3405_s4 + $0x40] sm:$0xff] }
0x1270   :  { %v1767_v48 = vpop.xlane.xlu2 %1766 }
0x1271   :  { %v1771_v50 = vmul.f32 %v1767_v48, %v2829_v4  ;;  %v1940_v48 = vld [vmem:[%s3404_s3 + $0x60] sm:$0xff] }
0x1273   :  { %v1773_v51 = vsub.f32 %v1761_v43, %v1771_v50  ;;  %v1868_v43 = vld [vmem:[%s3403_s2 + $0x8] sm:$0xff] }
0x1274   :  { %1893 = vmatpush.msra.mxu3 %v1868_v43  ;;  %v1941_v50 = vld [vmem:[%s3404_s3 + $0x68] sm:$0xff]  ;;  %v2073_v43 = vld [vmem:[%s3405_s4 + $0xf0] sm:$0xff] }
0x1275   :  { %v1775_v34 = vmul.f32 %v1773_v51, %v1773_v51  ;;  %1989 = vmatpush.msra.mxu2 %v1941_v50  ;;  %2101 = vmatpush.msra.mxu0 %v2073_v43  ;;  %v2050_v50 = vld [vmem:[%s3405_s4 + $0x38] sm:$0xff] }
0x1277   :  { %v1777_v52 = vsel %vm217_vm12, %v1775_v34, 0.0  ;;  %v1939_v34 = vld [vmem:[%s3404_s3 + $0x58] sm:$0xff] }
0x1278   :  { %1778 = vadd.xlane.f32.xlu2 %v1777_v52  ;;  %v1770_v53 = vpop.xlane.xlu2 %1769  ;;  %1990 = vmatpush.msra.mxu2 %v1939_v34  ;;  %v2049_v34 = vld [vmem:[%s3405_s4 + $0x30] sm:$0xff] }
0x1279   :  { %v1772_v56 = vmul.f32 %v1770_v53, %v2829_v4 }
0x127b   :  { %v1774_v58 = vsub.f32 %v1762_v29, %v1772_v56  ;;  %v1942_v29 = vld [vmem:[%s3404_s3 + $0x70] sm:$0xff]  ;;  %v1936_v56 = vld [vmem:[%s3404_s3 + $0x40] sm:$0xff] }
0x127c   :  { %1965 = vmatpush.msrb.mxu1 %v1942_v29  ;;  %v2071_v29 = vld [vmem:[%s3405_s4 + $0xe0] sm:$0xff] }
0x127d   :  { %v1776_v59 = vmul.f32 %v1774_v58, %v1774_v58 }
0x127e   :  { %1966 = vmatpush.msrb.mxu1 %v1940_v48  ;;  %v2070_v48 = vld [vmem:[%s3405_s4 + $0xd8] sm:$0xff] }
0x127f   :  { %v1780_v44 = vsel %vm217_vm12, %v1776_v59, 0.0 }
0x1280   :  { %1781 = vadd.xlane.f32.xlu2 %v1780_v44 }
0x12eb   :  { %v1779_v62 = vpop.xlane.xlu2 %1778 }
0x12ec   :  { %v1783_v61 = vmul.f32 %v1779_v62, %v2829_v4  ;;  %v1934_v62 = vld [vmem:[%s3404_s3 + $0x30] sm:$0xff] }
0x12ee   :  { %v1785_v63 = vadd.f32 1e-05, %v1783_v61 }
0x12f0   :  { %2527 = vrsqrt.f32 %v1785_v63  ;;  %vm1793_vm7 = vweird.f32 %v1785_v63 }
0x12f3   :  { %v1782_v0 = vpop.xlane.xlu2 %1781 }
0x12f4   :  { %v1784_v1 = vmul.f32 %v1782_v0, %v2829_v4 }
0x12f6   :  { %v2528_v2 = vpop.eup %2527  ;;  %v1786_v3 = vadd.f32 1e-05, %v1784_v1 }
0x12f7   :  { %v1788_v5 = vmul.f32 %v2528_v2, %v1785_v63  ;;  %vm1794_vm6 = vweird.f32 %v2528_v2 }
0x12f8   :  { %2529 = vrsqrt.f32 %v1786_v3  ;;  %vm1795_vm9 = vmor %vm1793_vm7, %vm1794_vm6  ;;  %vm1803_vm11 = vweird.f32 %v1786_v3 }
0x12f9   :  { %v1789_v7 = vmul.f32 %v2528_v2, %v1788_v5 }
0x12fb   :  { %v1790_v8 = vmul.f32 0.5, %v1789_v7  ;;  %v2438_v7 = vld [vmem:[%s3402_s1 + $0x10] ss:$0 sm:$0xff] }
0x12fd   :  { %v1791_v9 = vsub.f32 1.5, %v1790_v8 }
0x12fe   :  { %v2530_v10 = vpop.eup %2529 }
0x12ff   :  { %v1792_v11 = vmul.f32 %v2528_v2, %v1791_v9  ;;  %v1798_v12 = vmul.f32 %v2530_v10, %v1786_v3  ;;  %vm1804_vm10 = vweird.f32 %v2530_v10 }
0x1300   :  { %vm1805_vm13 = vmor %vm1803_vm11, %vm1804_vm10 }
0x1301   :  { %v1799_v16 = vmul.f32 %v2530_v10, %v1798_v12  ;;  %v1796_v17 = vsel %vm1795_vm9, %v2528_v2, %v1792_v11  ;;  %v2439_v11 = vld [vmem:[%s3402_s1 + $0x18] ss:$0 sm:$0xff] }
0x1302   :  { %v1807_v18 = vmul.f32 %v1796_v17, %v1773_v51  ;;  %v1938_v51 = vld [vmem:[%s3404_s3 + $0x50] sm:$0xff] }
0x1303   :  { %v1800_v33 = vmul.f32 0.5, %v1799_v16  ;;  %1967 = vmatpush.msrb.mxu1 %v1938_v51  ;;  %v2069_v51 = vld [vmem:[%s3405_s4 + $0xd0] sm:$0xff] }
0x1304   :  { %v1810_v21 = vmul.f32 %v2436_v13, %v1807_v18 }
0x1305   :  { %v1801_v36 = vsub.f32 1.5, %v1800_v33  ;;  %1968 = vmatpush.msrb.mxu1 %v1936_v56  ;;  %v2067_v56 = vld [vmem:[%s3405_s4 + $0xc0] sm:$0xff] }
0x1306   :  { %v1813_v22 = vadd.f32 %v2437_v20, %v1810_v21 }
0x1307   :  { %v1802_v23 = vmul.f32 %v2530_v10, %v1801_v36  ;;  %1969 = vmatpush.msrb.mxu1 %v1934_v62  ;;  %v2065_v62 = vld [vmem:[%s3405_s4 + $0xb0] sm:$0xff] }
0x1308   :  { %v1817_v39 = vsel %vm217_vm12, %v1813_v22, 0.0 }
0x1309   :  { %1818 = vadd.xlane.f32.xlu0 %v1817_v39  ;;  %v1806_v24 = vsel %vm1805_vm13, %v2530_v10, %v1802_v23  ;;  %v1933_v23 = vld [vmem:[%s3404_s3 + $0x28] sm:$0xff]  ;;  %v1930_v39 = vld [vmem:[%s3404_s3 + $0x10] sm:$0xff] }
0x130a   :  { %v1808_v25 = vmul.f32 %v1806_v24, %v1774_v58  ;;  %v1937_v58 = vld [vmem:[%s3404_s3 + $0x48] sm:$0xff]  ;;  %v1931_v24 = vld [vmem:[%s3404_s3 + $0x18] sm:$0xff] }
0x130b   :  { %1991 = vmatpush.msra.mxu2 %v1937_v58  ;;  %v2047_v58 = vld [vmem:[%s3405_s4 + $0x20] sm:$0xff] }
0x130c   :  { %v1811_v26 = vmul.f32 %v2436_v13, %v1808_v25  ;;  %v1928_v25 = vld [vmem:[%s3404_s3] sm:$0xff] }
0x130e   :  { %v1814_v27 = vadd.f32 %v2437_v20, %v1811_v26  ;;  %v1929_v26 = vld [vmem:[%s3404_s3 + $0x8] sm:$0xff] }
0x1310   :  { %v1820_v37 = vsel %vm217_vm12, %v1814_v27, 0.0 }
0x1311   :  { %1821 = vadd.xlane.f32.xlu1 %v1820_v37  ;;  %v1918_v37 = vpop.f32.mrf.mxu0 }
0x137c   :  { %v1819_v28 = vpop.xlane.xlu0 %1818 }
0x137d   :  { %v1823_v30 = vmul.f32 %v1819_v28, %v2829_v4  ;;  %v2440_v28 = vld [vmem:[%s3403_s2 + $0x28] ss:$0 sm:$0xff] }
0x137f   :  { %v1825_v31 = vsub.f32 %v1813_v22, %v1823_v30  ;;  %v1932_v22 = vld [vmem:[%s3404_s3 + $0x20] sm:$0xff] }
0x1380   :  { %1970 = vmatpush.msrb.mxu1 %v1932_v22 }
0x1381   :  { %v1827_v32 = vmul.f32 %v1825_v31, %v1825_v31 }
0x1382   :  { %1971 = vmatpush.msrb.mxu1 %v1930_v39 }
0x1383   :  { %v1829_v45 = vsel %vm217_vm12, %v1827_v32, 0.0 }
0x1384   :  { %1830 = vadd.xlane.f32.xlu2 %v1829_v45  ;;  %v1822_v6 = vpop.xlane.xlu1 %1821  ;;  %1972 = vmatpush.msrb.mxu1 %v1928_v25  ;;  %v1921_v45 = vpop.f32.mrf.mxu0 }
0x1385   :  { %v1824_v54 = vmul.f32 %v1822_v6, %v2829_v4 }
0x1387   :  { %v3158_v35 = vsub.f32 %v1814_v27, %v1824_v54  ;;  %v2058_v27 = vld [vmem:[%s3405_s4 + $0x78] sm:$0xff] }
0x1388   :  { %2077 = vmatpush.msrb.mxu3 %v2058_v27 }
0x1389   :  { %v1828_v38 = vmul.f32 %v3158_v35, %v3158_v35 }
0x138b   :  { %v1832_v55 = vsel %vm217_vm12, %v1828_v38, 0.0  ;;  %v2057_v38 = vld [vmem:[%s3405_s4 + $0x70] sm:$0xff] }
0x138c   :  { %1833 = vadd.xlane.f32.xlu0 %v1832_v55  ;;  %2078 = vmatpush.msrb.mxu3 %v2057_v38  ;;  %v2056_v55 = vld [vmem:[%s3405_s4 + $0x68] sm:$0xff] }
0x138e   :  { %2079 = vmatpush.msrb.mxu3 %v2056_v55 }
0x1390   :  { %2080 = vmatpush.msrb.mxu3 %v2055_v40 }
0x1392   :  { %2081 = vmatpush.msrb.mxu3 %v2054_v42 }
0x13f7   :  { %v1831_v15 = vpop.xlane.xlu2 %1830 }
0x13f8   :  { %v1835_v46 = vmul.f32 %v1831_v15, %v2829_v4  ;;  %v2053_v15 = vld [vmem:[%s3405_s4 + $0x50] sm:$0xff] }
0x13f9   :  { %2082 = vmatpush.msrb.mxu3 %v2053_v15 }
0x13fa   :  { %v1837_v60 = vadd.f32 1e-05, %v1835_v46  ;;  %v2072_v46 = vld [vmem:[%s3405_s4 + $0xe8] sm:$0xff] }
0x13fb   :  { %2102 = vmatpush.msra.mxu0 %v2072_v46 }
0x13fc   :  { %2531 = vrsqrt.f32 %v1837_v60  ;;  %vm1845_vm1 = vweird.f32 %v1837_v60 }
0x13fd   :  { %2103 = vmatpush.msra.mxu0 %v2071_v29 }
0x13ff   :  { %v1834_v52 = vpop.xlane.xlu0 %1833  ;;  %2104 = vmatpush.msra.mxu0 %v2070_v48 }
0x1400   :  { %v1836_v53 = vmul.f32 %v1834_v52, %v2829_v4  ;;  %v1935_v4 = vld [vmem:[%s3404_s3 + $0x38] sm:$0xff]  ;;  %v2068_v52 = vld [vmem:[%s3405_s4 + $0xc8] sm:$0xff] }
0x1401   :  { %1992 = vmatpush.msra.mxu2 %v1935_v4  ;;  %2105 = vmatpush.msra.mxu0 %v2069_v51  ;;  %v2045_v4 = vld [vmem:[%s3405_s4 + $0x10] sm:$0xff] }
0x1402   :  { %v2532_v59 = vpop.eup %2531  ;;  %v1838_v44 = vadd.f32 1e-05, %v1836_v53  ;;  %v2048_v53 = vld [vmem:[%s3405_s4 + $0x28] sm:$0xff] }
0x1403   :  { %v1840_v61 = vmul.f32 %v2532_v59, %v1837_v60  ;;  %vm1846_vm15 = vweird.f32 %v2532_v59  ;;  %1993 = vmatpush.msra.mxu2 %v1933_v23  ;;  %v2052_v60 = vld [vmem:[%s3405_s4 + $0x48] sm:$0xff]  ;;  %2106 = vmatpush.msra.mxu0 %v2068_v52 }
0x1404   :  { %2533 = vrsqrt.f32 %v1838_v44  ;;  %vm1847_vm0 = vmor %vm1845_vm1, %vm1846_vm15  ;;  %vm1855_vm2 = vweird.f32 %v1838_v44  ;;  %2083 = vmatpush.msrb.mxu3 %v2052_v60 }
0x1405   :  { %v1841_v63 = vmul.f32 %v2532_v59, %v1840_v61  ;;  %1994 = vmatpush.msra.mxu2 %v1931_v24  ;;  %2107 = vmatpush.msra.mxu0 %v2067_v56  ;;  %v2064_v61 = vld [vmem:[%s3405_s4 + $0xa8] sm:$0xff] }
0x1406   :  { %2084 = vmatpush.msrb.mxu3 %v2051_v47 }
0x1407   :  { %v1842_v0 = vmul.f32 0.5, %v1841_v63  ;;  %1995 = vmatpush.msra.mxu2 %v1929_v26  ;;  %v2365_v63 = vld [vmem:[%s3404_s3 + $0x80] ss:$8 sm:$0x3] }
0x1408   :  { %2085 = vmatpush.msrb.mxu3 %v2050_v50 }
0x1409   :  { %v1843_v1 = vsub.f32 1.5, %v1842_v0  ;;  %v2044_v0 = vld [vmem:[%s3405_s4 + $0x8] sm:$0xff] }
0x140a   :  { %v2534_v2 = vpop.eup %2533  ;;  %2086 = vmatpush.msrb.mxu3 %v2049_v34 }
0x140b   :  { %v1844_v3 = vmul.f32 %v2532_v59, %v1843_v1  ;;  %v1850_v5 = vmul.f32 %v2534_v2, %v1838_v44  ;;  %vm1856_vm14 = vweird.f32 %v2534_v2  ;;  %v2046_v44 = vld [vmem:[%s3405_s4 + $0x18] sm:$0xff]  ;;  %v2063_v1 = vld [vmem:[%s3405_s4 + $0xa0] sm:$0xff] }
0x140c   :  { %vm1857_vm3 = vmor %vm1855_vm2, %vm1856_vm14  ;;  %2087 = vmatpush.msrb.mxu3 %v2048_v53 }
0x140d   :  { %v1848_v8 = vsel %vm1847_vm0, %v2532_v59, %v1844_v3  ;;  %v1851_v9 = vmul.f32 %v2534_v2, %v1850_v5  ;;  %v2066_v59 = vld [vmem:[%s3405_s4 + $0xb8] sm:$0xff]  ;;  %v1947_v5 = vperm.slane %v2365_v63, 0 }
0x140e   :  { %v1859_v10 = vmul.f32 %v1848_v8, %v1825_v31  ;;  %2088 = vmatpush.msrb.mxu3 %v2047_v58  ;;  %2108 = vmatpush.msra.mxu0 %v2066_v59  ;;  %v2062_v3 = vld [vmem:[%s3405_s4 + $0x98] sm:$0xff] }
0x140f   :  { %v1852_v12 = vmul.f32 0.5, %v1851_v9  ;;  %v2060_v9 = vld [vmem:[%s3405_s4 + $0x88] sm:$0xff] }
0x1410   :  { %v1862_v13 = vmul.f32 %v2438_v7, %v1859_v10  ;;  %2089 = vmatpush.msrb.mxu3 %v2046_v44  ;;  %2109 = vmatpush.msra.mxu0 %v2065_v62 }
0x1411   :  { %v1853_v16 = vsub.f32 1.5, %v1852_v12 }
0x1412   :  { %v1865_v17 = vadd.f32 %v2439_v11, %v1862_v13  ;;  %2090 = vmatpush.msrb.mxu3 %v2045_v4  ;;  %2110 = vmatpush.msra.mxu0 %v2064_v61  ;;  %v1948_v13 = vperm.slane %v2365_v63, 1  ;;  %v2158_v4 = vld [vmem:[%s3406_s5 + $0x78] sm:$0xff]  ;;  %v2157_v61 = vld [vmem:[%s3406_s5 + $0x70] sm:$0xff]  ;;  %v2156_v63 = vld [vmem:[%s3406_s5 + $0x68] sm:$0xff] }
0x1413   :  { %v1854_v18 = vmul.f32 %v2534_v2, %v1853_v16  ;;  %2161 = vmatpush.msra.mxu1 %v2158_v4 }
0x1414   :  { %2361 = vmatmul.msk.f32.vlgmr.msra.gmra.mxu3 %vm217_vm12, %v1865_v17  ;;  %2111 = vmatpush.msra.mxu0 %v2063_v1  ;;  %v2154_v1 = vld [vmem:[%s3406_s5 + $0x58] sm:$0xff] }
0x1415   :  { %v1858_v20 = vsel %vm1857_vm3, %v2534_v2, %v1854_v18  ;;  %2091 = vmatpush.msrb.mxu3 %v2044_v0  ;;  %v2043_v2 = vld [vmem:[%s3405_s4] sm:$0xff]  ;;  %2162 = vmatpush.msra.mxu1 %v2157_v61 }
0x1416   :  { %v1860_v33 = vmul.f32 %v1858_v20, %v3158_v35  ;;  %2112 = vmatpush.msra.mxu0 %v2062_v3  ;;  %v2155_v0 = vld [vmem:[%s3406_s5 + $0x60] sm:$0xff]  ;;  %v2152_v3 = vld [vmem:[%s3406_s5 + $0x48] sm:$0xff] }
0x1417   :  { %2092 = vmatpush.msrb.mxu3 %v2043_v2  ;;  %2163 = vmatpush.msra.mxu1 %v2156_v63  ;;  %v2153_v2 = vld [vmem:[%s3406_s5 + $0x50] sm:$0xff] }
0x1418   :  { %v1863_v21 = vmul.f32 %v2438_v7, %v1860_v33  ;;  %v2061_v7 = vld [vmem:[%s3405_s4 + $0x90] sm:$0xff] }
0x1419   :  { %2113 = vmatpush.msra.mxu0 %v2061_v7  ;;  %2164 = vmatpush.msra.mxu1 %v2155_v0  ;;  %v2150_v7 = vld [vmem:[%s3406_s5 + $0x38] sm:$0xff] }
0x141a   :  { %v1866_v36 = vadd.f32 %v2439_v11, %v1863_v21  ;;  %v2059_v11 = vld [vmem:[%s3405_s4 + $0x80] sm:$0xff] }
0x141b   :  { %2114 = vmatpush.msra.mxu0 %v2060_v9  ;;  %2165 = vmatpush.msra.mxu1 %v2154_v1  ;;  %v2148_v9 = vld [vmem:[%s3406_s5 + $0x28] sm:$0xff] }
0x141c   :  { %2362 = vmatmul.msk.f32.gmra.mxu3 %vm217_vm12, %v1866_v36  ;;  %vm2220_vm12 = vcmask 60416  }
0x141d   :  { %2115 = vmatpush.msra.mxu0 %v2059_v11  ;;  %2166 = vmatpush.msra.mxu1 %v2153_v2  ;;  %v2146_v11 = vld [vmem:[%s3406_s5 + $0x18] sm:$0xff] }
0x141f   :  { %2167 = vmatpush.msra.mxu1 %v2152_v3 }
0x1497   :  { %v1895_v30 = vpop.f32.mrf.mxu3 }
0x1498   :  { %v1919_v31 = vadd.f32 %v1918_v37, %v1895_v30 }
0x149a   :  { %v1926_v32 = vadd.f32 %v2440_v28, %v1919_v31 }
0x149c   :  { %2366 = vmatmul.msk.f32.vlgmr.msrb.gmra.mxu1 %vm934_vm8, %v1926_v32  ;;  %2368 = vmatmul.msk.f32.vlgmr.msra.gmra.mxu2 %vm934_vm8, %v1926_v32 }
0x149f   :  { %v1898_v6 = vpop.f32.mrf.mxu3 }
0x14a0   :  { %v1922_v54 = vadd.f32 %v1921_v45, %v1898_v6 }
0x14a2   :  { %v1927_v35 = vadd.f32 %v2440_v28, %v1922_v54 }
0x14a4   :  { %2367 = vmatmul.msk.f32.gmra.mxu1 %vm934_vm8, %v1927_v35  ;;  %2369 = vmatmul.msk.f32.gmra.mxu2 %vm934_vm8, %v1927_v35 }
0x1519   :  { %v1974_v8 = vpop.f32.mrf.mxu1 }
0x151a   :  { %v1975_v10 = vadd.f32 %v1974_v8, %v1947_v5  ;;  %v2149_v8 = vld [vmem:[%s3406_s5 + $0x30] sm:$0xff] }
0x151c   :  { %v2003_v12 = vmin.f32 %v1975_v10, 20.0 }
0x151e   :  { %v2007_v16 = vmul.f32 1.442695, %v2003_v12  ;;  %v2145_v12 = vld [vmem:[%s3406_s5 + $0x10] sm:$0xff] }
0x151f   :  { %v1997_v17 = vpop.f32.mrf.mxu2 }
0x1520   :  { %2535 = vpow2.f32 %v2007_v16  ;;  %v1998_v18 = vadd.f32 %v1997_v17, %v1948_v13  ;;  %v2441_v16 = vld [vmem:[%s3405_s4 + $0x100] ss:$0 sm:$0xff] }
0x1521   :  { %v1977_v20 = vpop.f32.mrf.mxu1  ;;  %v2143_v17 = vld [vmem:[%s3406_s5] sm:$0xff] }
0x1522   :  { %v2004_v33 = vmin.f32 %v1998_v18, 20.0  ;;  %v1978_v21 = vadd.f32 %v1977_v20, %v1947_v5  ;;  %v2151_v5 = vld [vmem:[%s3406_s5 + $0x40] sm:$0xff] }
0x1523   :  { %2168 = vmatpush.msra.mxu1 %v2151_v5 }
0x1524   :  { %v2009_v36 = vmul.f32 1.442695, %v2004_v33  ;;  %v2005_v22 = vmin.f32 %v1978_v21, 20.0 }
0x1525   :  { %2169 = vmatpush.msra.mxu1 %v2150_v7 }
0x1526   :  { %v2536_v23 = vpop.eup %2535  ;;  %2537 = vpow2.f32 %v2009_v36  ;;  %v2011_v39 = vmul.f32 1.442695, %v2005_v22 }
0x1527   :  { %v2015_v24 = vadd.f32 1.0, %v2536_v23  ;;  %v2000_v25 = vpop.f32.mrf.mxu2  ;;  %2170 = vmatpush.msra.mxu1 %v2149_v8 }
0x1528   :  { %2539 = vpow2.f32 %v2011_v39  ;;  %v2001_v26 = vadd.f32 %v2000_v25, %v1948_v13  ;;  %v2144_v13 = vld [vmem:[%s3406_s5 + $0x8] sm:$0xff] }
0x1529   :  { %v2019_v27 = vmul.f32 %v2015_v24, %v2015_v24  ;;  %2171 = vmatpush.msra.mxu1 %v2148_v9 }
0x152a   :  { %v2006_v37 = vmin.f32 %v2001_v26, 20.0 }
0x152b   :  { %v2031_v28 = vadd.f32 1.0, %v2019_v27  ;;  %v2370_v6 = vadd.f32 -1.0, %v2019_v27 }
0x152c   :  { %v2538_v30 = vpop.eup %2537  ;;  %v2013_v31 = vmul.f32 1.442695, %v2006_v37 }
0x152d   :  { %2541 = vrcp.f32 %v2031_v28  ;;  %v2016_v32 = vadd.f32 1.0, %v2538_v30  ;;  %v2027_v40 = vmul.f32 %v2370_v6, %v1975_v10  ;;  %v2147_v10 = vld [vmem:[%s3406_s5 + $0x20] sm:$0xff] }
0x152e   :  { %v2540_v45 = vpop.eup %2539  ;;  %2543 = vpow2.f32 %v2013_v31  ;;  %2172 = vmatpush.msra.mxu1 %v2147_v10 }
0x152f   :  { %v2020_v54 = vmul.f32 %v2016_v32, %v2016_v32  ;;  %v2017_v35 = vadd.f32 1.0, %v2540_v45 }
0x1530   :  { %2173 = vmatpush.msra.mxu1 %v2146_v11 }
0x1531   :  { %v2032_v38 = vadd.f32 1.0, %v2020_v54  ;;  %v2021_v55 = vmul.f32 %v2017_v35, %v2017_v35  ;;  %v2371_v46 = vadd.f32 -1.0, %v2020_v54 }
0x1532   :  { %2174 = vmatpush.msra.mxu1 %v2145_v12 }
0x1533   :  { %v2542_v41 = vpop.eup %2541  ;;  %2545 = vrcp.f32 %v2032_v38  ;;  %v2033_v42 = vadd.f32 1.0, %v2021_v55  ;;  %v2372_v29 = vadd.f32 -1.0, %v2021_v55  ;;  %v2028_v48 = vmul.f32 %v2371_v46, %v1998_v18  ;;  %v2442_v46 = vld [vmem:[%s3406_s5 + $0x80] ss:$0 sm:$0xff]  ;;  %s2262_s5 = sshll.u32 %s3407_s6, 4  ;;  %s2263_s5 = int_to_ptr.hbm [resolvable:$true] %s2262_s5 }
0x1534   :  { %v2544_v43 = vpop.eup %2543  ;;  %v2039_v15 = vmul.f32 %v2542_v41, %v2027_v40  ;;  %2175 = vmatpush.msra.mxu1 %v2144_v13 }
0x1535   :  { %2547 = vrcp.f32 %v2033_v42  ;;  %v2018_v60 = vadd.f32 1.0, %v2544_v43  ;;  %v2029_v52 = vmul.f32 %v2372_v29, %v1978_v21 }
0x1536   :  { %2093 = vmatmul.f32.vlgmr.msrb.gmra.mxu3 %v2039_v15  ;;  %2176 = vmatpush.msra.mxu1 %v2143_v17 }
0x1537   :  { %v2022_v47 = vmul.f32 %v2018_v60, %v2018_v60 }
0x1539   :  { %v2546_v50 = vpop.eup %2545  ;;  %v2034_v51 = vadd.f32 1.0, %v2022_v47  ;;  %v2373_v56 = vadd.f32 -1.0, %v2022_v47 }
0x153a   :  { %v2040_v34 = vmul.f32 %v2546_v50, %v2028_v48 }
0x153b   :  { %v2548_v53 = vpop.eup %2547  ;;  %2549 = vrcp.f32 %v2034_v51  ;;  %v2030_v59 = vmul.f32 %v2373_v56, %v2001_v26 }
0x153c   :  { %2116 = vmatmul.f32.vlgmr.msra.gmra.mxu0 %v2040_v34  ;;  %v2041_v58 = vmul.f32 %v2548_v53, %v2029_v52 }
0x153e   :  { %2096 = vmatmul.f32.gmra.mxu3 %v2041_v58 }
0x1541   :  { %v2550_v44 = vpop.eup %2549 }
0x1542   :  { %v2042_v62 = vmul.f32 %v2550_v44, %v2030_v59 }
0x1544   :  { %2119 = vmatmul.f32.gmra.mxu0 %v2042_v62 }
0x15b9   :  { %v2094_v18 = vpop.f32.mrf.mxu3  ;;  %v2117_v20 = vpop.f32.mrf.mxu0 }
0x15ba   :  { %v2095_v33 = vadd.f32 %v2441_v16, %v2094_v18 }
0x15bc   :  { %v2118_v21 = vadd.f32 %v2117_v20, %v2095_v33 }
0x15be   :  { %v2123_v36 = vmin.f32 %v2118_v21, 20.0 }
0x15c0   :  { %v2125_v22 = vmul.f32 1.442695, %v2123_v36 }
0x15c1   :  { %v2097_v23 = vpop.f32.mrf.mxu3  ;;  %v2120_v24 = vpop.f32.mrf.mxu0 }
0x15c2   :  { %2551 = vpow2.f32 %v2125_v22  ;;  %v2098_v39 = vadd.f32 %v2441_v16, %v2097_v23 }
0x15c4   :  { %v2121_v25 = vadd.f32 %v2120_v24, %v2098_v39 }
0x15c6   :  { %v2124_v26 = vmin.f32 %v2121_v25, 20.0 }
0x15c8   :  { %v2552_v27 = vpop.eup %2551  ;;  %v2127_v37 = vmul.f32 1.442695, %v2124_v26 }
0x15c9   :  { %v2129_v28 = vadd.f32 1.0, %v2552_v27 }
0x15ca   :  { %2553 = vpow2.f32 %v2127_v37 }
0x15cb   :  { %v2131_v30 = vmul.f32 %v2129_v28, %v2129_v28 }
0x15cd   :  { %v2137_v31 = vadd.f32 1.0, %v2131_v30  ;;  %v2374_v45 = vadd.f32 -1.0, %v2131_v30 }
0x15cf   :  { %2555 = vrcp.f32 %v2137_v31  ;;  %v2135_v35 = vmul.f32 %v2374_v45, %v2118_v21 }
0x15d0   :  { %v2554_v32 = vpop.eup %2553 }
0x15d1   :  { %v2130_v6 = vadd.f32 1.0, %v2554_v32 }
0x15d3   :  { %v2132_v54 = vmul.f32 %v2130_v6, %v2130_v6 }
0x15d5   :  { %v2556_v38 = vpop.eup %2555  ;;  %v2138_v55 = vadd.f32 1.0, %v2132_v54  ;;  %v2375_v41 = vadd.f32 -1.0, %v2132_v54 }
0x15d6   :  { %v2141_v40 = vmul.f32 %v2556_v38, %v2135_v35 }
0x15d7   :  { %2557 = vrcp.f32 %v2138_v55  ;;  %v2136_v42 = vmul.f32 %v2375_v41, %v2121_v25 }
0x15d8   :  { %2177 = vmatmul.f32.vlgmr.msra.gmra.mxu1 %v2141_v40 }
0x15dd   :  { %v2558_v43 = vpop.eup %2557 }
0x15de   :  { %v2142_v15 = vmul.f32 %v2558_v43, %v2136_v42 }
0x15e0   :  { %2180 = vmatmul.f32.gmra.mxu1 %v2142_v15 }
0x1655   :  { %v2178_v60 = vpop.f32.mrf.mxu1 }
0x1656   :  { %v2179_v29 = vadd.f32 %v2442_v46, %v2178_v60 }
0x1658   :  { %v2184_v47 = vmul.f32 %v2179_v29, %v2664_v49 }
0x165a   :  { %v2186_v48 = vadd.f32 %v2184_v47, %v2637_v14 }
0x165c   :  { %2188 = vxpose.xlu1.b32.start.end [1/1] (short) (narrow) %v2186_v48, 8 }
0x165d   :  { %v2181_v50 = vpop.f32.mrf.mxu1 }
0x165e   :  { %v2182_v51 = vadd.f32 %v2442_v46, %v2181_v50 }
0x1660   :  { %v2185_v34 = vmul.f32 %v2182_v51, %v2670_v57 }
0x1662   :  { %v2187_v52 = vadd.f32 %v2185_v34, %v2641_v19 }
0x1664   :  { %2222 = vxpose.xlu2.b32.start.end [1/1] (short) (narrow) %v2187_v52, 8 }
0x16fd   :  { %v2238_v53 = vpop.trf.xlu2 }
0x16fe   :  { %2255 = vst.msk [vmem:[#allocation2 + $0x4] sm:$0xf] %vm2220_vm12, %v2238_v53 }
0x1700   :  { %v2204_v14 = vpop.trf.xlu1 }
0x1701   :  { %2221 = vst.msk [vmem:[#allocation2] sm:$0xf] %vm2220_vm12, %v2204_v14 }
0x1702   :  { %2268 = dma.vmem_to_hbm [thread:$0]  %s2261_s28, 128, %s2263_s5, [#allocation3], %s2592_s7, %s2592_s7, %s2593_s8  }
0x1703   :  { %2583 = dma.done.wait [#allocation3], 128  }
0x1704   :  { %2584 = vsyncadd [#allocation3], 4294967168 }
0x1705   :  { %2273 = vsyncpa [#allocation3], 1 }

</bundles_post_ra>
